<compile_context>
chip_gen: v7x
topology: tpu7x:2x2x1
jax: 0.10.0
libtpu: 0.0.40
codegen_flags: <defaults>
</compile_context>

<pallas_src>
import jax
import jax.numpy as jnp
from jax.experimental import pallas as pl
from jax.experimental.pallas import tpu as pltpu


# ----------------------------------------------------------------------------
# small helpers
# ----------------------------------------------------------------------------
def _round_up(x, m):
    return ((x + m - 1) // m) * m


def _pad_to(x, shape):
    pads = [(0, s - d) for d, s in zip(x.shape, shape)]
    if all(p == (0, 0) for p in pads):
        return x
    return jnp.pad(x, pads)


def _vmem_limit_bytes():
    """~3/4 of physical VMEM (v5e/v6e: 128 MiB -> 96 MiB, v7x: 64 MiB -> 48)."""
    cap = 64 << 20
    try:
        info = pltpu.get_tpu_info()
        v = getattr(info, "vmem_capacity_bytes", None)
        if isinstance(v, (int, float)) and v > 0:
            cap = int(v)
    except Exception:
        pass
    return (cap // 4) * 3


_VMEM_LIMIT = _vmem_limit_bytes()


def _pick_div(n, cands):
    for c in cands:
        if n % c == 0:
            return c
    return n


def _max_chunk(Bp, Ep, Hp, *, emits_hidden):
    """Largest timestep-chunk that fits the scoped-VMEM budget."""
    G = 3 * Hp
    # double-buffered bf16 weights + biases + hidden state / final output
    fixed = 2 * (Ep + Hp) * G * 2 + 2 * (G + 2 * Hp) * 4 + 2 * Bp * Hp * 4
    # per timestep: double-buffered bf16 x chunk + f32 gi scratch
    per_step = Bp * (2 * Ep * 2 + G * 4)
    if emits_hidden:
        per_step += 2 * Bp * Hp * 4   # double-buffered (chunk, Bp, Hp) f32 out
    budget = int(_VMEM_LIMIT * 0.7) - fixed
    return max(1, budget // per_step)


def _encoder_chunk(T, Bp, Ep, Hp):
    mc = _max_chunk(Bp, Ep, Hp, emits_hidden=False)
    for c in range(min(T, mc, 256), 0, -1):
        if T % c == 0:          # encoder sequence cannot be padded
            return c
    return 1


def _decoder_chunk(T, Bp, Ep, Hp):
    mc = _max_chunk(Bp, Ep, Hp, emits_hidden=True)
    chunk = max(1, min(mc, T, 256))
    T_pad = _round_up(T, chunk)  # padded steps produce garbage rows, sliced off
    return chunk, T_pad


# ----------------------------------------------------------------------------
# Generic tiled matmul + bias:  (M, K) @ (K, N) + (1, N) -> (M, N) f32
# w is bf16; K, N multiples of 128.  Used for the vocab head.
# ----------------------------------------------------------------------------
def _mm_bias_kernel(x_ref, w_ref, b_ref, o_ref, acc_ref):
    k = pl.program_id(2)

    @pl.when(k == 0)
    def _():
        acc_ref[...] = jnp.zeros_like(acc_ref)

    acc_ref[...] += jnp.dot(x_ref[...].astype(jnp.bfloat16), w_ref[...],
                            preferred_element_type=jnp.float32)

    @pl.when(k == pl.num_programs(2) - 1)
    def _():
        o_ref[...] = (acc_ref[...] + b_ref[...]).astype(o_ref.dtype)


def matmul_bias(x, w, b):
    M, K = x.shape
    _, N = w.shape

    tm = min(256, _round_up(M, 8))
    Mp = _round_up(M, tm)
    if Mp != M:
        x = jnp.pad(x, ((0, Mp - M), (0, 0)))
    tn = _pick_div(N, (512, 384, 256, 128))
    tk = K if K <= 1024 else _pick_div(K, (1024, 512, 256, 128))

    out = pl.pallas_call(
        _mm_bias_kernel,
        out_shape=jax.ShapeDtypeStruct((Mp, N), jnp.float32),
        grid_spec=pltpu.PrefetchScalarGridSpec(
            num_scalar_prefetch=0,
            grid=(Mp // tm, N // tn, K // tk),
            in_specs=[
                pl.BlockSpec((tm, tk), lambda i, j, k: (i, k)),
                pl.BlockSpec((tk, tn), lambda i, j, k: (k, j)),
                pl.BlockSpec((1, tn), lambda i, j, k: (0, j)),
            ],
            out_specs=pl.BlockSpec((tm, tn), lambda i, j, k: (i, j)),
            scratch_shapes=[pltpu.VMEM((tm, tn), jnp.float32)],
        ),
        compiler_params=pltpu.CompilerParams(
            dimension_semantics=("parallel", "parallel", "arbitrary"),
            vmem_limit_bytes=_VMEM_LIMIT),
    )(x, w, b)
    return out if Mp == M else out[:M]


# ----------------------------------------------------------------------------
# Fused-gate GRU step.
#   gi : (B, 3H) f32  precomputed  x @ W_ih + b_ih (+ folded b_hr, b_hz)
#   h  : (B, H)  f32
#   whh: (H, 3H) bf16 (gate order r, z, n along columns)
#   bhn: (1, H)  f32
# ----------------------------------------------------------------------------
def _gru_step(gi, h, whh_ref, bhn_ref, H):
    gh = jnp.dot(h.astype(jnp.bfloat16), whh_ref[...],
                 preferred_element_type=jnp.float32)
    r = jax.nn.sigmoid(gi[:, 0:H] + gh[:, 0:H])
    z = jax.nn.sigmoid(gi[:, H:2 * H] + gh[:, H:2 * H])
    n = jnp.tanh(gi[:, 2 * H:3 * H] + r * (gh[:, 2 * H:3 * H] + bhn_ref[...]))
    return (1.0 - z) * n + z * h


# ----------------------------------------------------------------------------
# Encoder recurrent kernel: per grid step, DMA the x chunk (chunk*B, E),
# compute gi for the whole chunk with one MXU-dense matmul, then run the
# recurrence.  Hidden carried in a VMEM scratch; final hidden emitted on the
# last grid step only.
# ----------------------------------------------------------------------------
def _gru_encoder_kernel(x_ref, h0_ref, wih_ref, whh_ref, gib_ref, bhn_ref,
                        hfin_ref, h_scr, gi_scr):
    t = pl.program_id(0)
    Hp = whh_ref.shape[0]
    Bp = h_scr.shape[0]
    Tc = x_ref.shape[0] // Bp

    @pl.when(t == 0)
    def _():
        h_scr[...] = h0_ref[...]

    # fused input projection for the whole chunk (one big matmul, no HBM gi)
    gi_scr[...] = (jnp.dot(x_ref[...], wih_ref[...],
                           preferred_element_type=jnp.float32)
                   + gib_ref[...])

    def step(i, h):
        off = pl.multiple_of(i * Bp, 8)
        return _gru_step(gi_scr[pl.ds(off, Bp), :], h, whh_ref, bhn_ref, Hp)

    h = jax.lax.fori_loop(0, Tc, step, h_scr[...], unroll=min(Tc, 8))
    h_scr[...] = h

    @pl.when(t == pl.num_programs(0) - 1)
    def _():
        hfin_ref[...] = h


def gru_encode(x_flat, h0, wih, whh, gib, bhn, *, chunk, Bp):
    TB, Ep = x_flat.shape
    T = TB // Bp
    Hp = whh.shape[0]
    G = 3 * Hp
    return pl.pallas_call(
        _gru_encoder_kernel,
        out_shape=jax.ShapeDtypeStruct((Bp, Hp), jnp.float32),
        grid_spec=pltpu.PrefetchScalarGridSpec(
            num_scalar_prefetch=0,
            grid=(T // chunk,),
            in_specs=[
                pl.BlockSpec((chunk * Bp, Ep), lambda t: (t, 0)),
                pl.BlockSpec((Bp, Hp), lambda t: (0, 0)),
                pl.BlockSpec((Ep, G), lambda t: (0, 0)),
                pl.BlockSpec((Hp, G), lambda t: (0, 0)),
                pl.BlockSpec((1, G), lambda t: (0, 0)),
                pl.BlockSpec((1, Hp), lambda t: (0, 0)),
            ],
            out_specs=pl.BlockSpec((Bp, Hp), lambda t: (0, 0)),
            scratch_shapes=[
                pltpu.VMEM((Bp, Hp), jnp.float32),
                pltpu.VMEM((chunk * Bp, G), jnp.float32),
            ],
        ),
        compiler_params=pltpu.CompilerParams(
            dimension_semantics=("arbitrary",),
            vmem_limit_bytes=_VMEM_LIMIT),
    )(x_flat, h0, wih, whh, gib, bhn)


# ----------------------------------------------------------------------------
# Decoder recurrent kernel: same fused input projection + recurrence, emits
# every hidden state (T, B, H); the vocab head runs afterwards as one big,
# lane-dense matmul.
# ----------------------------------------------------------------------------
def _gru_decoder_kernel(x_ref, h0_ref, wih_ref, whh_ref, gib_ref, bhn_ref,
                        hs_ref, h_scr, gi_scr):
    t = pl.program_id(0)
    Hp = whh_ref.shape[0]
    Bp = h_scr.shape[0]
    Tc = hs_ref.shape[0]

    @pl.when(t == 0)
    def _():
        h_scr[...] = h0_ref[...]

    gi_scr[...] = (jnp.dot(x_ref[...], wih_ref[...],
                           preferred_element_type=jnp.float32)
                   + gib_ref[...])

    def step(i, h):
        off = pl.multiple_of(i * Bp, 8)
        h = _gru_step(gi_scr[pl.ds(off, Bp), :], h, whh_ref, bhn_ref, Hp)
        hs_ref[i] = h
        return h

    h = jax.lax.fori_loop(0, Tc, step, h_scr[...], unroll=min(Tc, 8))
    h_scr[...] = h


def gru_decode_hidden(x_flat, h0, wih, whh, gib, bhn, *, chunk, Bp):
    TB, Ep = x_flat.shape
    T = TB // Bp
    Hp = whh.shape[0]
    G = 3 * Hp
    return pl.pallas_call(
        _gru_decoder_kernel,
        out_shape=jax.ShapeDtypeStruct((T, Bp, Hp), jnp.float32),
        grid_spec=pltpu.PrefetchScalarGridSpec(
            num_scalar_prefetch=0,
            grid=(T // chunk,),
            in_specs=[
                pl.BlockSpec((chunk * Bp, Ep), lambda t: (t, 0)),
                pl.BlockSpec((Bp, Hp), lambda t: (0, 0)),
                pl.BlockSpec((Ep, G), lambda t: (0, 0)),
                pl.BlockSpec((Hp, G), lambda t: (0, 0)),
                pl.BlockSpec((1, G), lambda t: (0, 0)),
                pl.BlockSpec((1, Hp), lambda t: (0, 0)),
            ],
            out_specs=pl.BlockSpec((chunk, Bp, Hp), lambda t: (t, 0, 0)),
            scratch_shapes=[
                pltpu.VMEM((Bp, Hp), jnp.float32),
                pltpu.VMEM((chunk * Bp, G), jnp.float32),
            ],
        ),
        compiler_params=pltpu.CompilerParams(
            dimension_semantics=("arbitrary",),
            vmem_limit_bytes=_VMEM_LIMIT),
    )(x_flat, h0, wih, whh, gib, bhn)


# ----------------------------------------------------------------------------
# Parameter init (PyTorch gate order r, z, n; deterministic)
# ----------------------------------------------------------------------------
def init_params(key, vocab_src, vocab_tgt, emb, hidden):
    ks = jax.random.split(key, 12)
    s = 0.1

    def mk(k, shape):
        return jax.random.normal(k, shape, jnp.float32) * s

    return {
        "enc_emb": mk(ks[0], (vocab_src, emb)),
        "enc_wih": mk(ks[1], (3, emb, hidden)),
        "enc_whh": mk(ks[2], (3, hidden, hidden)),
        "enc_bih": mk(ks[3], (3, 1, hidden)),
        "enc_bhh": mk(ks[4], (3, 1, hidden)),
        "dec_emb": mk(ks[5], (vocab_tgt, emb)),
        "dec_wih": mk(ks[6], (3, emb, hidden)),
        "dec_whh": mk(ks[7], (3, hidden, hidden)),
        "dec_bih": mk(ks[8], (3, 1, hidden)),
        "dec_bhh": mk(ks[9], (3, 1, hidden)),
        "dec_wout": mk(ks[10], (hidden, vocab_tgt)),
        "dec_bout": mk(ks[11], (1, vocab_tgt)),
    }


# ----------------------------------------------------------------------------
# Pad + fuse GRU weights:
#   (3, E, H) -> (Ep, 3*Hp) bf16, gate-blocked columns [r | z | n]
#   bih/bhh   -> gi_bias (1, 3*Hp) f32 with b_hr, b_hz folded in; bhn (1, Hp)
# ----------------------------------------------------------------------------
def _prep_gru_params(wih, whh, bih, bhh, in_pad, h_pad):
    wih_p = _pad_to(wih, (3, in_pad, h_pad))
    whh_p = _pad_to(whh, (3, h_pad, h_pad))
    bih_p = _pad_to(bih, (3, 1, h_pad))
    bhh_p = _pad_to(bhh, (3, 1, h_pad))

    wih_f = jnp.transpose(wih_p, (1, 0, 2)).reshape(in_pad, 3 * h_pad)
    whh_f = jnp.transpose(whh_p, (1, 0, 2)).reshape(h_pad, 3 * h_pad)

    bhh_fold = jnp.concatenate(
        [bhh_p[0:2], jnp.zeros_like(bhh_p[2:3])], axis=0)
    gi_bias = jnp.transpose(bih_p + bhh_fold, (1, 0, 2)).reshape(1, 3 * h_pad)
    bhn = bhh_p[2]                                   # (1, h_pad)
    return (wih_f.astype(jnp.bfloat16), whh_f.astype(jnp.bfloat16),
            gi_bias, bhn)


# ----------------------------------------------------------------------------
# Full forward (glue in plain JAX: embedding gathers, padding, small reshape)
# ----------------------------------------------------------------------------
@jax.jit
def seq2seq_gru_forward(params, src, tgt):
    B, T_src = src.shape
    _, T_tgt = tgt.shape
    E = params["enc_emb"].shape[-1]
    H = params["enc_whh"].shape[-1]
    V = params["dec_wout"].shape[-1]

    Bp = _round_up(B, 8)
    Ep = _round_up(E, 128)
    Hp = _round_up(H, 128)
    Vp = _round_up(V, 128)

    enc_wih, enc_whh, enc_gib, enc_bhn = _prep_gru_params(
        params["enc_wih"], params["enc_whh"],
        params["enc_bih"], params["enc_bhh"], Ep, Hp)
    dec_wih, dec_whh, dec_gib, dec_bhn = _prep_gru_params(
        params["dec_wih"], params["dec_whh"],
        params["dec_bih"], params["dec_bhh"], Ep, Hp)
    wout = _pad_to(params["dec_wout"], (Hp, Vp)).astype(jnp.bfloat16)
    bout = _pad_to(params["dec_bout"], (1, Vp))

    # --- encoder: embedding gather (index-side transpose) + fused recurrence
    x_src = params["enc_emb"][src.T]                         # (T_src, B, E)
    x_src = _pad_to(x_src, (T_src, Bp, Ep)).astype(jnp.bfloat16)
    x_src = x_src.reshape(T_src * Bp, Ep)
    enc_chunk = _encoder_chunk(T_src, Bp, Ep, Hp)
    h0 = jnp.zeros((Bp, Hp), jnp.float32)
    hidden = gru_encode(x_src, h0, enc_wih, enc_whh, enc_gib, enc_bhn,
                        chunk=enc_chunk, Bp=Bp)              # (Bp, Hp)

    # --- decoder: fused recurrence emitting all hiddens, then vocab head ---
    dec_chunk, T_pad = _decoder_chunk(T_tgt, Bp, Ep, Hp)
    x_tgt = params["dec_emb"][tgt.T]                         # (T_tgt, B, E)
    x_tgt = _pad_to(x_tgt, (T_pad, Bp, Ep)).astype(jnp.bfloat16)
    x_tgt = x_tgt.reshape(T_pad * Bp, Ep)
    hs = gru_decode_hidden(x_tgt, hidden, dec_wih, dec_whh, dec_gib, dec_bhn,
                           chunk=dec_chunk, Bp=Bp)           # (T_pad, Bp, Hp)

    # transpose the small hidden tensor (T*B*H) instead of the much larger
    # logits tensor (T*B*V): the vocab head then emits (B, T, V) directly.
    hs_bt = jnp.transpose(hs, (1, 0, 2)).reshape(Bp * T_pad, Hp)
    logits = matmul_bias(hs_bt, wout, bout)                  # (Bp*T_pad, Vp)
    logits = logits.reshape(Bp, T_pad, Vp)
    return logits[:B, :T_tgt, :V]                            # (B, T, V)


# ----------------------------------------------------------------------------
# Pure-JAX reference (lax.scan GRU) for a correctness sanity check
# ----------------------------------------------------------------------------
def _gru_cell_ref(x, h, wih, whh, bih, bhh):
    r = jax.nn.sigmoid(x @ wih[0] + bih[0] + h @ whh[0] + bhh[0])
    z = jax.nn.sigmoid(x @ wih[1] + bih[1] + h @ whh[1] + bhh[1])
    n = jnp.tanh(x @ wih[2] + bih[2] + r * (h @ whh[2] + bhh[2]))
    return (1.0 - z) * n + z * h


def seq2seq_gru_reference(params, src, tgt):
    B = src.shape[0]
    H = params["enc_whh"].shape[-1]
    x_src = jnp.transpose(params["enc_emb"][src], (1, 0, 2))
    h = jnp.zeros((B, H), jnp.float32)

    def enc_step(h, x):
        h = _gru_cell_ref(x, h, params["enc_wih"], params["enc_whh"],
                          params["enc_bih"], params["enc_bhh"])
        return h, None
    h, _ = jax.lax.scan(enc_step, h, x_src)

    x_tgt = jnp.transpose(params["dec_emb"][tgt], (1, 0, 2))

    def dec_step(h, x):
        h = _gru_cell_ref(x, h, params["dec_wih"], params["dec_whh"],
                          params["dec_bih"], params["dec_bhh"])
        logits = h @ params["dec_wout"] + params["dec_bout"]
        return h, logits
    _, logits_tbv = jax.lax.scan(dec_step, h, x_tgt)
    return jnp.transpose(logits_tbv, (1, 0, 2))


if __name__ == "__main__":
    B, T_SRC, T_TGT = 2, 8, 8
    EMB, HID = 16, 32
    V_SRC, V_TGT = 32, 32

    key = jax.random.PRNGKey(0)
    kp, ks, kt = jax.random.split(key, 3)
    params = init_params(kp, V_SRC, V_TGT, EMB, HID)
    src = jax.random.randint(ks, (B, T_SRC), 0, V_SRC, dtype=jnp.int32)
    tgt = jax.random.randint(kt, (B, T_TGT), 0, V_TGT, dtype=jnp.int32)

    out = seq2seq_gru_forward(params, src, tgt)
    out = jax.block_until_ready(out)
    assert out.shape == (B, T_TGT, V_TGT), out.shape

    ref = seq2seq_gru_reference(params, src, tgt)
    # bf16 MXU operands vs. f32 reference -> slightly looser tolerance
    assert jnp.allclose(out, ref, atol=2e-2, rtol=2e-2), (
        float(jnp.max(jnp.abs(out - ref))))

    print("KERNEL_OK")
</pallas_src>

<mosaic_0001>
module attributes {stable_mosaic.version = 11 : i64} {
  func.func @_gru_encoder_kernel(%arg0: i32, %arg1: memref<64x128xbf16, #tpu.memory_space<vmem>>, %arg2: memref<8x128xf32, #tpu.memory_space<vmem>>, %arg3: memref<128x384xbf16, #tpu.memory_space<vmem>>, %arg4: memref<128x384xbf16, #tpu.memory_space<vmem>>, %arg5: memref<1x384xf32, #tpu.memory_space<vmem>>, %arg6: memref<1x128xf32, #tpu.memory_space<vmem>>, %arg7: memref<8x128xf32, #tpu.memory_space<vmem>>, %arg8: memref<8x128xf32, #tpu.memory_space<vmem>>, %arg9: memref<64x384xf32, #tpu.memory_space<vmem>>) attributes {dimension_semantics = [#tpu.dimension_semantics<arbitrary>], iteration_bounds = array<i64: 1>, scalar_prefetch = 0 : i64, scratch_operands = 2 : i64, tpu.core_type = #tpu.core_type<tc>, window_params = [{transform_indices = @transform_0, window_bounds = array<i64: 64, 128>}, {pipeline_mode = #tpu.pipeline_mode<synchronous>, transform_indices = @transform_1, window_bounds = array<i64: 8, 128>}, {pipeline_mode = #tpu.pipeline_mode<synchronous>, transform_indices = @transform_2, window_bounds = array<i64: 128, 384>}, {pipeline_mode = #tpu.pipeline_mode<synchronous>, transform_indices = @transform_3, window_bounds = array<i64: 128, 384>}, {pipeline_mode = #tpu.pipeline_mode<synchronous>, transform_indices = @transform_4, window_bounds = array<i64: 1, 384>}, {pipeline_mode = #tpu.pipeline_mode<synchronous>, transform_indices = @transform_5, window_bounds = array<i64: 1, 128>}, {pipeline_mode = #tpu.pipeline_mode<synchronous>, transform_indices = @transform_6, window_bounds = array<i64: 8, 128>}]} {
    %c0_i32 = arith.constant 0 : i32
    %0 = arith.cmpi eq, %arg0, %c0_i32 : i32
    %1 = arith.extui %0 : i1 to i32
    %c0_i32_0 = arith.constant 0 : i32
    %2 = arith.cmpi ne, %1, %c0_i32_0 : i32
    scf.if %2 {
      %c0_95 = arith.constant 0 : index
      %c0_96 = arith.constant 0 : index
      %303 = vector.load %arg2[%c0_95, %c0_96] : memref<8x128xf32, #tpu.memory_space<vmem>>, vector<8x128xf32>
      %c0_97 = arith.constant 0 : index
      %c0_98 = arith.constant 0 : index
      %304 = vector.load %arg8[%c0_97, %c0_98] : memref<8x128xf32, #tpu.memory_space<vmem>>, vector<8x128xf32>
      tpu.vector_store %arg8[%c0_97, %c0_98], %303 {strides = array<i32>} : memref<8x128xf32, #tpu.memory_space<vmem>>, vector<8x128xf32>,
    } else {
    }
    %c0 = arith.constant 0 : index
    %c0_1 = arith.constant 0 : index
    %3 = vector.load %arg1[%c0, %c0_1] : memref<64x128xbf16, #tpu.memory_space<vmem>>, vector<64x128xbf16>
    %c0_2 = arith.constant 0 : index
    %c0_3 = arith.constant 0 : index
    %4 = vector.load %arg3[%c0_2, %c0_3] : memref<128x384xbf16, #tpu.memory_space<vmem>>, vector<128x384xbf16>
    %cst = arith.constant dense<0.000000e+00> : vector<64x384xf32>
    %5 = tpu.matmul %3, %4, %cst {dimension_numbers = #tpu.dot_dimension_numbers<[1], [0], [0], [1], [0, 0, 1, 1], [], []>} : vector<64x128xbf16>, vector<128x384xbf16>, vector<64x384xf32> -> vector<64x384xf32>
    %c0_4 = arith.constant 0 : index
    %c0_5 = arith.constant 0 : index
    %6 = vector.load %arg5[%c0_4, %c0_5] : memref<1x384xf32, #tpu.memory_space<vmem>>, vector<1x384xf32>
    %7 = vector.broadcast %6 : vector<1x384xf32> to vector<64x384xf32>
    %8 = arith.addf %5, %7 : vector<64x384xf32>
    %c0_6 = arith.constant 0 : index
    %c0_7 = arith.constant 0 : index
    %9 = vector.load %arg9[%c0_6, %c0_7] : memref<64x384xf32, #tpu.memory_space<vmem>>, vector<64x384xf32>
    tpu.vector_store %arg9[%c0_6, %c0_7], %8 {strides = array<i32>} : memref<64x384xf32, #tpu.memory_space<vmem>>, vector<64x384xf32>,
    %c0_8 = arith.constant 0 : index
    %c0_9 = arith.constant 0 : index
    %10 = vector.load %arg8[%c0_8, %c0_9] : memref<8x128xf32, #tpu.memory_space<vmem>>, vector<8x128xf32>
    %c0_i32_10 = arith.constant 0 : i32
    %c8_i32 = arith.constant 8 : i32
    %11 = arith.muli %c0_i32_10, %c8_i32 : i32
    %12 = tpu.assume_multiple %11, 8 : i32
    %13 = arith.index_cast %12 : i32 to index
    %c0_11 = arith.constant 0 : index
    %14 = vector.load %arg9[%13, %c0_11] : memref<64x384xf32, #tpu.memory_space<vmem>>, vector<8x384xf32>
    %15 = arith.truncf %10 : vector<8x128xf32> to vector<8x128xbf16>
    %c0_12 = arith.constant 0 : index
    %c0_13 = arith.constant 0 : index
    %16 = vector.load %arg4[%c0_12, %c0_13] : memref<128x384xbf16, #tpu.memory_space<vmem>>, vector<128x384xbf16>
    %cst_14 = arith.constant dense<0.000000e+00> : vector<8x384xf32>
    %17 = tpu.matmul %15, %16, %cst_14 {dimension_numbers = #tpu.dot_dimension_numbers<[1], [0], [0], [1], [0, 0, 1, 1], [], []>} : vector<8x128xbf16>, vector<128x384xbf16>, vector<8x384xf32> -> vector<8x384xf32>
    %18 = vector.extract_strided_slice %14 {offsets = [0, 0], sizes = [8, 128], strides = [1, 1]} : vector<8x384xf32> to vector<8x128xf32>
    %19 = vector.extract_strided_slice %17 {offsets = [0, 0], sizes = [8, 128], strides = [1, 1]} : vector<8x384xf32> to vector<8x128xf32>
    %20 = arith.addf %18, %19 : vector<8x128xf32>
    %21 = arith.negf %20 : vector<8x128xf32>
    %22 = math.exp %21 : vector<8x128xf32>
    %cst_15 = arith.constant 1.000000e+00 : f32
    %23 = vector.broadcast %cst_15 : f32 to vector<8x128xf32>
    %24 = arith.addf %23, %22 : vector<8x128xf32>
    %25 = arith.divf %23, %24 : vector<8x128xf32>
    %26 = vector.extract_strided_slice %14 {offsets = [0, 128], sizes = [8, 128], strides = [1, 1]} : vector<8x384xf32> to vector<8x128xf32>
    %27 = vector.extract_strided_slice %17 {offsets = [0, 128], sizes = [8, 128], strides = [1, 1]} : vector<8x384xf32> to vector<8x128xf32>
    %28 = arith.addf %26, %27 : vector<8x128xf32>
    %29 = arith.negf %28 : vector<8x128xf32>
    %30 = math.exp %29 : vector<8x128xf32>
    %cst_16 = arith.constant 1.000000e+00 : f32
    %31 = vector.broadcast %cst_16 : f32 to vector<8x128xf32>
    %32 = arith.addf %31, %30 : vector<8x128xf32>
    %33 = arith.divf %31, %32 : vector<8x128xf32>
    %34 = vector.extract_strided_slice %14 {offsets = [0, 256], sizes = [8, 128], strides = [1, 1]} : vector<8x384xf32> to vector<8x128xf32>
    %35 = vector.extract_strided_slice %17 {offsets = [0, 256], sizes = [8, 128], strides = [1, 1]} : vector<8x384xf32> to vector<8x128xf32>
    %c0_17 = arith.constant 0 : index
    %c0_18 = arith.constant 0 : index
    %36 = vector.load %arg6[%c0_17, %c0_18] : memref<1x128xf32, #tpu.memory_space<vmem>>, vector<1x128xf32>
    %37 = vector.broadcast %36 : vector<1x128xf32> to vector<8x128xf32>
    %38 = arith.addf %35, %37 : vector<8x128xf32>
    %39 = arith.mulf %25, %38 : vector<8x128xf32>
    %40 = arith.addf %34, %39 : vector<8x128xf32>
    %41 = math.tanh %40 : vector<8x128xf32>
    %cst_19 = arith.constant 1.000000e+00 : f32
    %42 = vector.broadcast %cst_19 : f32 to vector<8x128xf32>
    %43 = arith.subf %42, %33 : vector<8x128xf32>
    %44 = arith.mulf %43, %41 : vector<8x128xf32>
    %45 = arith.mulf %33, %10 : vector<8x128xf32>
    %46 = arith.addf %44, %45 : vector<8x128xf32>
    %c1_i32 = arith.constant 1 : i32
    %c8_i32_20 = arith.constant 8 : i32
    %47 = arith.muli %c1_i32, %c8_i32_20 : i32
    %48 = tpu.assume_multiple %47, 8 : i32
    %49 = arith.index_cast %48 : i32 to index
    %c0_21 = arith.constant 0 : index
    %50 = vector.load %arg9[%49, %c0_21] : memref<64x384xf32, #tpu.memory_space<vmem>>, vector<8x384xf32>
    %51 = arith.truncf %46 : vector<8x128xf32> to vector<8x128xbf16>
    %c0_22 = arith.constant 0 : index
    %c0_23 = arith.constant 0 : index
    %52 = vector.load %arg4[%c0_22, %c0_23] : memref<128x384xbf16, #tpu.memory_space<vmem>>, vector<128x384xbf16>
    %cst_24 = arith.constant dense<0.000000e+00> : vector<8x384xf32>
    %53 = tpu.matmul %51, %52, %cst_24 {dimension_numbers = #tpu.dot_dimension_numbers<[1], [0], [0], [1], [0, 0, 1, 1], [], []>} : vector<8x128xbf16>, vector<128x384xbf16>, vector<8x384xf32> -> vector<8x384xf32>
    %54 = vector.extract_strided_slice %50 {offsets = [0, 0], sizes = [8, 128], strides = [1, 1]} : vector<8x384xf32> to vector<8x128xf32>
    %55 = vector.extract_strided_slice %53 {offsets = [0, 0], sizes = [8, 128], strides = [1, 1]} : vector<8x384xf32> to vector<8x128xf32>
    %56 = arith.addf %54, %55 : vector<8x128xf32>
    %57 = arith.negf %56 : vector<8x128xf32>
    %58 = math.exp %57 : vector<8x128xf32>
    %cst_25 = arith.constant 1.000000e+00 : f32
    %59 = vector.broadcast %cst_25 : f32 to vector<8x128xf32>
    %60 = arith.addf %59, %58 : vector<8x128xf32>
    %61 = arith.divf %59, %60 : vector<8x128xf32>
    %62 = vector.extract_strided_slice %50 {offsets = [0, 128], sizes = [8, 128], strides = [1, 1]} : vector<8x384xf32> to vector<8x128xf32>
    %63 = vector.extract_strided_slice %53 {offsets = [0, 128], sizes = [8, 128], strides = [1, 1]} : vector<8x384xf32> to vector<8x128xf32>
    %64 = arith.addf %62, %63 : vector<8x128xf32>
    %65 = arith.negf %64 : vector<8x128xf32>
    %66 = math.exp %65 : vector<8x128xf32>
    %cst_26 = arith.constant 1.000000e+00 : f32
    %67 = vector.broadcast %cst_26 : f32 to vector<8x128xf32>
    %68 = arith.addf %67, %66 : vector<8x128xf32>
    %69 = arith.divf %67, %68 : vector<8x128xf32>
    %70 = vector.extract_strided_slice %50 {offsets = [0, 256], sizes = [8, 128], strides = [1, 1]} : vector<8x384xf32> to vector<8x128xf32>
    %71 = vector.extract_strided_slice %53 {offsets = [0, 256], sizes = [8, 128], strides = [1, 1]} : vector<8x384xf32> to vector<8x128xf32>
    %c0_27 = arith.constant 0 : index
    %c0_28 = arith.constant 0 : index
    %72 = vector.load %arg6[%c0_27, %c0_28] : memref<1x128xf32, #tpu.memory_space<vmem>>, vector<1x128xf32>
    %73 = vector.broadcast %72 : vector<1x128xf32> to vector<8x128xf32>
    %74 = arith.addf %71, %73 : vector<8x128xf32>
    %75 = arith.mulf %61, %74 : vector<8x128xf32>
    %76 = arith.addf %70, %75 : vector<8x128xf32>
    %77 = math.tanh %76 : vector<8x128xf32>
    %cst_29 = arith.constant 1.000000e+00 : f32
    %78 = vector.broadcast %cst_29 : f32 to vector<8x128xf32>
    %79 = arith.subf %78, %69 : vector<8x128xf32>
    %80 = arith.mulf %79, %77 : vector<8x128xf32>
    %81 = arith.mulf %69, %46 : vector<8x128xf32>
    %82 = arith.addf %80, %81 : vector<8x128xf32>
    %c2_i32 = arith.constant 2 : i32
    %c8_i32_30 = arith.constant 8 : i32
    %83 = arith.muli %c2_i32, %c8_i32_30 : i32
    %84 = tpu.assume_multiple %83, 8 : i32
    %85 = arith.index_cast %84 : i32 to index
    %c0_31 = arith.constant 0 : index
    %86 = vector.load %arg9[%85, %c0_31] : memref<64x384xf32, #tpu.memory_space<vmem>>, vector<8x384xf32>
    %87 = arith.truncf %82 : vector<8x128xf32> to vector<8x128xbf16>
    %c0_32 = arith.constant 0 : index
    %c0_33 = arith.constant 0 : index
    %88 = vector.load %arg4[%c0_32, %c0_33] : memref<128x384xbf16, #tpu.memory_space<vmem>>, vector<128x384xbf16>
    %cst_34 = arith.constant dense<0.000000e+00> : vector<8x384xf32>
    %89 = tpu.matmul %87, %88, %cst_34 {dimension_numbers = #tpu.dot_dimension_numbers<[1], [0], [0], [1], [0, 0, 1, 1], [], []>} : vector<8x128xbf16>, vector<128x384xbf16>, vector<8x384xf32> -> vector<8x384xf32>
    %90 = vector.extract_strided_slice %86 {offsets = [0, 0], sizes = [8, 128], strides = [1, 1]} : vector<8x384xf32> to vector<8x128xf32>
    %91 = vector.extract_strided_slice %89 {offsets = [0, 0], sizes = [8, 128], strides = [1, 1]} : vector<8x384xf32> to vector<8x128xf32>
    %92 = arith.addf %90, %91 : vector<8x128xf32>
    %93 = arith.negf %92 : vector<8x128xf32>
    %94 = math.exp %93 : vector<8x128xf32>
    %cst_35 = arith.constant 1.000000e+00 : f32
    %95 = vector.broadcast %cst_35 : f32 to vector<8x128xf32>
    %96 = arith.addf %95, %94 : vector<8x128xf32>
    %97 = arith.divf %95, %96 : vector<8x128xf32>
    %98 = vector.extract_strided_slice %86 {offsets = [0, 128], sizes = [8, 128], strides = [1, 1]} : vector<8x384xf32> to vector<8x128xf32>
    %99 = vector.extract_strided_slice %89 {offsets = [0, 128], sizes = [8, 128], strides = [1, 1]} : vector<8x384xf32> to vector<8x128xf32>
    %100 = arith.addf %98, %99 : vector<8x128xf32>
    %101 = arith.negf %100 : vector<8x128xf32>
    %102 = math.exp %101 : vector<8x128xf32>
    %cst_36 = arith.constant 1.000000e+00 : f32
    %103 = vector.broadcast %cst_36 : f32 to vector<8x128xf32>
    %104 = arith.addf %103, %102 : vector<8x128xf32>
    %105 = arith.divf %103, %104 : vector<8x128xf32>
    %106 = vector.extract_strided_slice %86 {offsets = [0, 256], sizes = [8, 128], strides = [1, 1]} : vector<8x384xf32> to vector<8x128xf32>
    %107 = vector.extract_strided_slice %89 {offsets = [0, 256], sizes = [8, 128], strides = [1, 1]} : vector<8x384xf32> to vector<8x128xf32>
    %c0_37 = arith.constant 0 : index
    %c0_38 = arith.constant 0 : index
    %108 = vector.load %arg6[%c0_37, %c0_38] : memref<1x128xf32, #tpu.memory_space<vmem>>, vector<1x128xf32>
    %109 = vector.broadcast %108 : vector<1x128xf32> to vector<8x128xf32>
    %110 = arith.addf %107, %109 : vector<8x128xf32>
    %111 = arith.mulf %97, %110 : vector<8x128xf32>
    %112 = arith.addf %106, %111 : vector<8x128xf32>
    %113 = math.tanh %112 : vector<8x128xf32>
    %cst_39 = arith.constant 1.000000e+00 : f32
    %114 = vector.broadcast %cst_39 : f32 to vector<8x128xf32>
    %115 = arith.subf %114, %105 : vector<8x128xf32>
    %116 = arith.mulf %115, %113 : vector<8x128xf32>
    %117 = arith.mulf %105, %82 : vector<8x128xf32>
    %118 = arith.addf %116, %117 : vector<8x128xf32>
    %c3_i32 = arith.constant 3 : i32
    %c8_i32_40 = arith.constant 8 : i32
    %119 = arith.muli %c3_i32, %c8_i32_40 : i32
    %120 = tpu.assume_multiple %119, 8 : i32
    %121 = arith.index_cast %120 : i32 to index
    %c0_41 = arith.constant 0 : index
    %122 = vector.load %arg9[%121, %c0_41] : memref<64x384xf32, #tpu.memory_space<vmem>>, vector<8x384xf32>
    %123 = arith.truncf %118 : vector<8x128xf32> to vector<8x128xbf16>
    %c0_42 = arith.constant 0 : index
    %c0_43 = arith.constant 0 : index
    %124 = vector.load %arg4[%c0_42, %c0_43] : memref<128x384xbf16, #tpu.memory_space<vmem>>, vector<128x384xbf16>
    %cst_44 = arith.constant dense<0.000000e+00> : vector<8x384xf32>
    %125 = tpu.matmul %123, %124, %cst_44 {dimension_numbers = #tpu.dot_dimension_numbers<[1], [0], [0], [1], [0, 0, 1, 1], [], []>} : vector<8x128xbf16>, vector<128x384xbf16>, vector<8x384xf32> -> vector<8x384xf32>
    %126 = vector.extract_strided_slice %122 {offsets = [0, 0], sizes = [8, 128], strides = [1, 1]} : vector<8x384xf32> to vector<8x128xf32>
    %127 = vector.extract_strided_slice %125 {offsets = [0, 0], sizes = [8, 128], strides = [1, 1]} : vector<8x384xf32> to vector<8x128xf32>
    %128 = arith.addf %126, %127 : vector<8x128xf32>
    %129 = arith.negf %128 : vector<8x128xf32>
    %130 = math.exp %129 : vector<8x128xf32>
    %cst_45 = arith.constant 1.000000e+00 : f32
    %131 = vector.broadcast %cst_45 : f32 to vector<8x128xf32>
    %132 = arith.addf %131, %130 : vector<8x128xf32>
    %133 = arith.divf %131, %132 : vector<8x128xf32>
    %134 = vector.extract_strided_slice %122 {offsets = [0, 128], sizes = [8, 128], strides = [1, 1]} : vector<8x384xf32> to vector<8x128xf32>
    %135 = vector.extract_strided_slice %125 {offsets = [0, 128], sizes = [8, 128], strides = [1, 1]} : vector<8x384xf32> to vector<8x128xf32>
    %136 = arith.addf %134, %135 : vector<8x128xf32>
    %137 = arith.negf %136 : vector<8x128xf32>
    %138 = math.exp %137 : vector<8x128xf32>
    %cst_46 = arith.constant 1.000000e+00 : f32
    %139 = vector.broadcast %cst_46 : f32 to vector<8x128xf32>
    %140 = arith.addf %139, %138 : vector<8x128xf32>
    %141 = arith.divf %139, %140 : vector<8x128xf32>
    %142 = vector.extract_strided_slice %122 {offsets = [0, 256], sizes = [8, 128], strides = [1, 1]} : vector<8x384xf32> to vector<8x128xf32>
    %143 = vector.extract_strided_slice %125 {offsets = [0, 256], sizes = [8, 128], strides = [1, 1]} : vector<8x384xf32> to vector<8x128xf32>
    %c0_47 = arith.constant 0 : index
    %c0_48 = arith.constant 0 : index
    %144 = vector.load %arg6[%c0_47, %c0_48] : memref<1x128xf32, #tpu.memory_space<vmem>>, vector<1x128xf32>
    %145 = vector.broadcast %144 : vector<1x128xf32> to vector<8x128xf32>
    %146 = arith.addf %143, %145 : vector<8x128xf32>
    %147 = arith.mulf %133, %146 : vector<8x128xf32>
    %148 = arith.addf %142, %147 : vector<8x128xf32>
    %149 = math.tanh %148 : vector<8x128xf32>
    %cst_49 = arith.constant 1.000000e+00 : f32
    %150 = vector.broadcast %cst_49 : f32 to vector<8x128xf32>
    %151 = arith.subf %150, %141 : vector<8x128xf32>
    %152 = arith.mulf %151, %149 : vector<8x128xf32>
    %153 = arith.mulf %141, %118 : vector<8x128xf32>
    %154 = arith.addf %152, %153 : vector<8x128xf32>
    %c4_i32 = arith.constant 4 : i32
    %c8_i32_50 = arith.constant 8 : i32
    %155 = arith.muli %c4_i32, %c8_i32_50 : i32
    %156 = tpu.assume_multiple %155, 8 : i32
    %157 = arith.index_cast %156 : i32 to index
    %c0_51 = arith.constant 0 : index
    %158 = vector.load %arg9[%157, %c0_51] : memref<64x384xf32, #tpu.memory_space<vmem>>, vector<8x384xf32>
    %159 = arith.truncf %154 : vector<8x128xf32> to vector<8x128xbf16>
    %c0_52 = arith.constant 0 : index
    %c0_53 = arith.constant 0 : index
    %160 = vector.load %arg4[%c0_52, %c0_53] : memref<128x384xbf16, #tpu.memory_space<vmem>>, vector<128x384xbf16>
    %cst_54 = arith.constant dense<0.000000e+00> : vector<8x384xf32>
    %161 = tpu.matmul %159, %160, %cst_54 {dimension_numbers = #tpu.dot_dimension_numbers<[1], [0], [0], [1], [0, 0, 1, 1], [], []>} : vector<8x128xbf16>, vector<128x384xbf16>, vector<8x384xf32> -> vector<8x384xf32>
    %162 = vector.extract_strided_slice %158 {offsets = [0, 0], sizes = [8, 128], strides = [1, 1]} : vector<8x384xf32> to vector<8x128xf32>
    %163 = vector.extract_strided_slice %161 {offsets = [0, 0], sizes = [8, 128], strides = [1, 1]} : vector<8x384xf32> to vector<8x128xf32>
    %164 = arith.addf %162, %163 : vector<8x128xf32>
    %165 = arith.negf %164 : vector<8x128xf32>
    %166 = math.exp %165 : vector<8x128xf32>
    %cst_55 = arith.constant 1.000000e+00 : f32
    %167 = vector.broadcast %cst_55 : f32 to vector<8x128xf32>
    %168 = arith.addf %167, %166 : vector<8x128xf32>
    %169 = arith.divf %167, %168 : vector<8x128xf32>
    %170 = vector.extract_strided_slice %158 {offsets = [0, 128], sizes = [8, 128], strides = [1, 1]} : vector<8x384xf32> to vector<8x128xf32>
    %171 = vector.extract_strided_slice %161 {offsets = [0, 128], sizes = [8, 128], strides = [1, 1]} : vector<8x384xf32> to vector<8x128xf32>
    %172 = arith.addf %170, %171 : vector<8x128xf32>
    %173 = arith.negf %172 : vector<8x128xf32>
    %174 = math.exp %173 : vector<8x128xf32>
    %cst_56 = arith.constant 1.000000e+00 : f32
    %175 = vector.broadcast %cst_56 : f32 to vector<8x128xf32>
    %176 = arith.addf %175, %174 : vector<8x128xf32>
    %177 = arith.divf %175, %176 : vector<8x128xf32>
    %178 = vector.extract_strided_slice %158 {offsets = [0, 256], sizes = [8, 128], strides = [1, 1]} : vector<8x384xf32> to vector<8x128xf32>
    %179 = vector.extract_strided_slice %161 {offsets = [0, 256], sizes = [8, 128], strides = [1, 1]} : vector<8x384xf32> to vector<8x128xf32>
    %c0_57 = arith.constant 0 : index
    %c0_58 = arith.constant 0 : index
    %180 = vector.load %arg6[%c0_57, %c0_58] : memref<1x128xf32, #tpu.memory_space<vmem>>, vector<1x128xf32>
    %181 = vector.broadcast %180 : vector<1x128xf32> to vector<8x128xf32>
    %182 = arith.addf %179, %181 : vector<8x128xf32>
    %183 = arith.mulf %169, %182 : vector<8x128xf32>
    %184 = arith.addf %178, %183 : vector<8x128xf32>
    %185 = math.tanh %184 : vector<8x128xf32>
    %cst_59 = arith.constant 1.000000e+00 : f32
    %186 = vector.broadcast %cst_59 : f32 to vector<8x128xf32>
    %187 = arith.subf %186, %177 : vector<8x128xf32>
    %188 = arith.mulf %187, %185 : vector<8x128xf32>
    %189 = arith.mulf %177, %154 : vector<8x128xf32>
    %190 = arith.addf %188, %189 : vector<8x128xf32>
    %c5_i32 = arith.constant 5 : i32
    %c8_i32_60 = arith.constant 8 : i32
    %191 = arith.muli %c5_i32, %c8_i32_60 : i32
    %192 = tpu.assume_multiple %191, 8 : i32
    %193 = arith.index_cast %192 : i32 to index
    %c0_61 = arith.constant 0 : index
    %194 = vector.load %arg9[%193, %c0_61] : memref<64x384xf32, #tpu.memory_space<vmem>>, vector<8x384xf32>
    %195 = arith.truncf %190 : vector<8x128xf32> to vector<8x128xbf16>
    %c0_62 = arith.constant 0 : index
    %c0_63 = arith.constant 0 : index
    %196 = vector.load %arg4[%c0_62, %c0_63] : memref<128x384xbf16, #tpu.memory_space<vmem>>, vector<128x384xbf16>
    %cst_64 = arith.constant dense<0.000000e+00> : vector<8x384xf32>
    %197 = tpu.matmul %195, %196, %cst_64 {dimension_numbers = #tpu.dot_dimension_numbers<[1], [0], [0], [1], [0, 0, 1, 1], [], []>} : vector<8x128xbf16>, vector<128x384xbf16>, vector<8x384xf32> -> vector<8x384xf32>
    %198 = vector.extract_strided_slice %194 {offsets = [0, 0], sizes = [8, 128], strides = [1, 1]} : vector<8x384xf32> to vector<8x128xf32>
    %199 = vector.extract_strided_slice %197 {offsets = [0, 0], sizes = [8, 128], strides = [1, 1]} : vector<8x384xf32> to vector<8x128xf32>
    %200 = arith.addf %198, %199 : vector<8x128xf32>
    %201 = arith.negf %200 : vector<8x128xf32>
    %202 = math.exp %201 : vector<8x128xf32>
    %cst_65 = arith.constant 1.000000e+00 : f32
    %203 = vector.broadcast %cst_65 : f32 to vector<8x128xf32>
    %204 = arith.addf %203, %202 : vector<8x128xf32>
    %205 = arith.divf %203, %204 : vector<8x128xf32>
    %206 = vector.extract_strided_slice %194 {offsets = [0, 128], sizes = [8, 128], strides = [1, 1]} : vector<8x384xf32> to vector<8x128xf32>
    %207 = vector.extract_strided_slice %197 {offsets = [0, 128], sizes = [8, 128], strides = [1, 1]} : vector<8x384xf32> to vector<8x128xf32>
    %208 = arith.addf %206, %207 : vector<8x128xf32>
    %209 = arith.negf %208 : vector<8x128xf32>
    %210 = math.exp %209 : vector<8x128xf32>
    %cst_66 = arith.constant 1.000000e+00 : f32
    %211 = vector.broadcast %cst_66 : f32 to vector<8x128xf32>
    %212 = arith.addf %211, %210 : vector<8x128xf32>
    %213 = arith.divf %211, %212 : vector<8x128xf32>
    %214 = vector.extract_strided_slice %194 {offsets = [0, 256], sizes = [8, 128], strides = [1, 1]} : vector<8x384xf32> to vector<8x128xf32>
    %215 = vector.extract_strided_slice %197 {offsets = [0, 256], sizes = [8, 128], strides = [1, 1]} : vector<8x384xf32> to vector<8x128xf32>
    %c0_67 = arith.constant 0 : index
    %c0_68 = arith.constant 0 : index
    %216 = vector.load %arg6[%c0_67, %c0_68] : memref<1x128xf32, #tpu.memory_space<vmem>>, vector<1x128xf32>
    %217 = vector.broadcast %216 : vector<1x128xf32> to vector<8x128xf32>
    %218 = arith.addf %215, %217 : vector<8x128xf32>
    %219 = arith.mulf %205, %218 : vector<8x128xf32>
    %220 = arith.addf %214, %219 : vector<8x128xf32>
    %221 = math.tanh %220 : vector<8x128xf32>
    %cst_69 = arith.constant 1.000000e+00 : f32
    %222 = vector.broadcast %cst_69 : f32 to vector<8x128xf32>
    %223 = arith.subf %222, %213 : vector<8x128xf32>
    %224 = arith.mulf %223, %221 : vector<8x128xf32>
    %225 = arith.mulf %213, %190 : vector<8x128xf32>
    %226 = arith.addf %224, %225 : vector<8x128xf32>
    %c6_i32 = arith.constant 6 : i32
    %c8_i32_70 = arith.constant 8 : i32
    %227 = arith.muli %c6_i32, %c8_i32_70 : i32
    %228 = tpu.assume_multiple %227, 8 : i32
    %229 = arith.index_cast %228 : i32 to index
    %c0_71 = arith.constant 0 : index
    %230 = vector.load %arg9[%229, %c0_71] : memref<64x384xf32, #tpu.memory_space<vmem>>, vector<8x384xf32>
    %231 = arith.truncf %226 : vector<8x128xf32> to vector<8x128xbf16>
    %c0_72 = arith.constant 0 : index
    %c0_73 = arith.constant 0 : index
    %232 = vector.load %arg4[%c0_72, %c0_73] : memref<128x384xbf16, #tpu.memory_space<vmem>>, vector<128x384xbf16>
    %cst_74 = arith.constant dense<0.000000e+00> : vector<8x384xf32>
    %233 = tpu.matmul %231, %232, %cst_74 {dimension_numbers = #tpu.dot_dimension_numbers<[1], [0], [0], [1], [0, 0, 1, 1], [], []>} : vector<8x128xbf16>, vector<128x384xbf16>, vector<8x384xf32> -> vector<8x384xf32>
    %234 = vector.extract_strided_slice %230 {offsets = [0, 0], sizes = [8, 128], strides = [1, 1]} : vector<8x384xf32> to vector<8x128xf32>
    %235 = vector.extract_strided_slice %233 {offsets = [0, 0], sizes = [8, 128], strides = [1, 1]} : vector<8x384xf32> to vector<8x128xf32>
    %236 = arith.addf %234, %235 : vector<8x128xf32>
    %237 = arith.negf %236 : vector<8x128xf32>
    %238 = math.exp %237 : vector<8x128xf32>
    %cst_75 = arith.constant 1.000000e+00 : f32
    %239 = vector.broadcast %cst_75 : f32 to vector<8x128xf32>
    %240 = arith.addf %239, %238 : vector<8x128xf32>
    %241 = arith.divf %239, %240 : vector<8x128xf32>
    %242 = vector.extract_strided_slice %230 {offsets = [0, 128], sizes = [8, 128], strides = [1, 1]} : vector<8x384xf32> to vector<8x128xf32>
    %243 = vector.extract_strided_slice %233 {offsets = [0, 128], sizes = [8, 128], strides = [1, 1]} : vector<8x384xf32> to vector<8x128xf32>
    %244 = arith.addf %242, %243 : vector<8x128xf32>
    %245 = arith.negf %244 : vector<8x128xf32>
    %246 = math.exp %245 : vector<8x128xf32>
    %cst_76 = arith.constant 1.000000e+00 : f32
    %247 = vector.broadcast %cst_76 : f32 to vector<8x128xf32>
    %248 = arith.addf %247, %246 : vector<8x128xf32>
    %249 = arith.divf %247, %248 : vector<8x128xf32>
    %250 = vector.extract_strided_slice %230 {offsets = [0, 256], sizes = [8, 128], strides = [1, 1]} : vector<8x384xf32> to vector<8x128xf32>
    %251 = vector.extract_strided_slice %233 {offsets = [0, 256], sizes = [8, 128], strides = [1, 1]} : vector<8x384xf32> to vector<8x128xf32>
    %c0_77 = arith.constant 0 : index
    %c0_78 = arith.constant 0 : index
    %252 = vector.load %arg6[%c0_77, %c0_78] : memref<1x128xf32, #tpu.memory_space<vmem>>, vector<1x128xf32>
    %253 = vector.broadcast %252 : vector<1x128xf32> to vector<8x128xf32>
    %254 = arith.addf %251, %253 : vector<8x128xf32>
    %255 = arith.mulf %241, %254 : vector<8x128xf32>
    %256 = arith.addf %250, %255 : vector<8x128xf32>
    %257 = math.tanh %256 : vector<8x128xf32>
    %cst_79 = arith.constant 1.000000e+00 : f32
    %258 = vector.broadcast %cst_79 : f32 to vector<8x128xf32>
    %259 = arith.subf %258, %249 : vector<8x128xf32>
    %260 = arith.mulf %259, %257 : vector<8x128xf32>
    %261 = arith.mulf %249, %226 : vector<8x128xf32>
    %262 = arith.addf %260, %261 : vector<8x128xf32>
    %c7_i32 = arith.constant 7 : i32
    %c8_i32_80 = arith.constant 8 : i32
    %263 = arith.muli %c7_i32, %c8_i32_80 : i32
    %264 = tpu.assume_multiple %263, 8 : i32
    %265 = arith.index_cast %264 : i32 to index
    %c0_81 = arith.constant 0 : index
    %266 = vector.load %arg9[%265, %c0_81] : memref<64x384xf32, #tpu.memory_space<vmem>>, vector<8x384xf32>
    %267 = arith.truncf %262 : vector<8x128xf32> to vector<8x128xbf16>
    %c0_82 = arith.constant 0 : index
    %c0_83 = arith.constant 0 : index
    %268 = vector.load %arg4[%c0_82, %c0_83] : memref<128x384xbf16, #tpu.memory_space<vmem>>, vector<128x384xbf16>
    %cst_84 = arith.constant dense<0.000000e+00> : vector<8x384xf32>
    %269 = tpu.matmul %267, %268, %cst_84 {dimension_numbers = #tpu.dot_dimension_numbers<[1], [0], [0], [1], [0, 0, 1, 1], [], []>} : vector<8x128xbf16>, vector<128x384xbf16>, vector<8x384xf32> -> vector<8x384xf32>
    %270 = vector.extract_strided_slice %266 {offsets = [0, 0], sizes = [8, 128], strides = [1, 1]} : vector<8x384xf32> to vector<8x128xf32>
    %271 = vector.extract_strided_slice %269 {offsets = [0, 0], sizes = [8, 128], strides = [1, 1]} : vector<8x384xf32> to vector<8x128xf32>
    %272 = arith.addf %270, %271 : vector<8x128xf32>
    %273 = arith.negf %272 : vector<8x128xf32>
    %274 = math.exp %273 : vector<8x128xf32>
    %cst_85 = arith.constant 1.000000e+00 : f32
    %275 = vector.broadcast %cst_85 : f32 to vector<8x128xf32>
    %276 = arith.addf %275, %274 : vector<8x128xf32>
    %277 = arith.divf %275, %276 : vector<8x128xf32>
    %278 = vector.extract_strided_slice %266 {offsets = [0, 128], sizes = [8, 128], strides = [1, 1]} : vector<8x384xf32> to vector<8x128xf32>
    %279 = vector.extract_strided_slice %269 {offsets = [0, 128], sizes = [8, 128], strides = [1, 1]} : vector<8x384xf32> to vector<8x128xf32>
    %280 = arith.addf %278, %279 : vector<8x128xf32>
    %281 = arith.negf %280 : vector<8x128xf32>
    %282 = math.exp %281 : vector<8x128xf32>
    %cst_86 = arith.constant 1.000000e+00 : f32
    %283 = vector.broadcast %cst_86 : f32 to vector<8x128xf32>
    %284 = arith.addf %283, %282 : vector<8x128xf32>
    %285 = arith.divf %283, %284 : vector<8x128xf32>
    %286 = vector.extract_strided_slice %266 {offsets = [0, 256], sizes = [8, 128], strides = [1, 1]} : vector<8x384xf32> to vector<8x128xf32>
    %287 = vector.extract_strided_slice %269 {offsets = [0, 256], sizes = [8, 128], strides = [1, 1]} : vector<8x384xf32> to vector<8x128xf32>
    %c0_87 = arith.constant 0 : index
    %c0_88 = arith.constant 0 : index
    %288 = vector.load %arg6[%c0_87, %c0_88] : memref<1x128xf32, #tpu.memory_space<vmem>>, vector<1x128xf32>
    %289 = vector.broadcast %288 : vector<1x128xf32> to vector<8x128xf32>
    %290 = arith.addf %287, %289 : vector<8x128xf32>
    %291 = arith.mulf %277, %290 : vector<8x128xf32>
    %292 = arith.addf %286, %291 : vector<8x128xf32>
    %293 = math.tanh %292 : vector<8x128xf32>
    %cst_89 = arith.constant 1.000000e+00 : f32
    %294 = vector.broadcast %cst_89 : f32 to vector<8x128xf32>
    %295 = arith.subf %294, %285 : vector<8x128xf32>
    %296 = arith.mulf %295, %293 : vector<8x128xf32>
    %297 = arith.mulf %285, %262 : vector<8x128xf32>
    %298 = arith.addf %296, %297 : vector<8x128xf32>
    %c8_i32_90 = arith.constant 8 : i32
    %c0_91 = arith.constant 0 : index
    %c0_92 = arith.constant 0 : index
    %299 = vector.load %arg8[%c0_91, %c0_92] : memref<8x128xf32, #tpu.memory_space<vmem>>, vector<8x128xf32>
    tpu.vector_store %arg8[%c0_91, %c0_92], %298 {strides = array<i32>} : memref<8x128xf32, #tpu.memory_space<vmem>>, vector<8x128xf32>,
    %c0_i32_93 = arith.constant 0 : i32
    %300 = arith.cmpi eq, %arg0, %c0_i32_93 : i32
    %301 = arith.extui %300 : i1 to i32
    %c0_i32_94 = arith.constant 0 : i32
    %302 = arith.cmpi ne, %301, %c0_i32_94 : i32
    scf.if %302 {
      %c0_95 = arith.constant 0 : index
      %c0_96 = arith.constant 0 : index
      %303 = vector.load %arg7[%c0_95, %c0_96] : memref<8x128xf32, #tpu.memory_space<vmem>>, vector<8x128xf32>
      tpu.vector_store %arg7[%c0_95, %c0_96], %298 {strides = array<i32>} : memref<8x128xf32, #tpu.memory_space<vmem>>, vector<8x128xf32>,
    } else {
    }
    return
  }
  func.func @transform_0(%arg0: i32) -> (i32, i32) {
    %c0_i32 = arith.constant 0 : i32
    %c0_i32_0 = arith.constant 0 : i32
    return %arg0, %c0_i32 : i32, i32
  }
  func.func @transform_1(%arg0: i32) -> (i32, i32) {
    %c0_i32 = arith.constant 0 : i32
    %c0_i32_0 = arith.constant 0 : i32
    %c0_i32_1 = arith.constant 0 : i32
    return %c0_i32, %c0_i32_0 : i32, i32
  }
  func.func @transform_2(%arg0: i32) -> (i32, i32) {
    %c0_i32 = arith.constant 0 : i32
    %c0_i32_0 = arith.constant 0 : i32
    %c0_i32_1 = arith.constant 0 : i32
    return %c0_i32, %c0_i32_0 : i32, i32
  }
  func.func @transform_3(%arg0: i32) -> (i32, i32) {
    %c0_i32 = arith.constant 0 : i32
    %c0_i32_0 = arith.constant 0 : i32
    %c0_i32_1 = arith.constant 0 : i32
    return %c0_i32, %c0_i32_0 : i32, i32
  }
  func.func @transform_4(%arg0: i32) -> (i32, i32) {
    %c0_i32 = arith.constant 0 : i32
    %c0_i32_0 = arith.constant 0 : i32
    %c0_i32_1 = arith.constant 0 : i32
    return %c0_i32, %c0_i32_0 : i32, i32
  }
  func.func @transform_5(%arg0: i32) -> (i32, i32) {
    %c0_i32 = arith.constant 0 : i32
    %c0_i32_0 = arith.constant 0 : i32
    %c0_i32_1 = arith.constant 0 : i32
    return %c0_i32, %c0_i32_0 : i32, i32
  }
  func.func @transform_6(%arg0: i32) -> (i32, i32) {
    %c0_i32 = arith.constant 0 : i32
    %c0_i32_0 = arith.constant 0 : i32
    %c0_i32_1 = arith.constant 0 : i32
    return %c0_i32, %c0_i32_0 : i32, i32
  }
}

module attributes {stable_mosaic.version = 11 : i64} {
  func.func @_gru_decoder_kernel(%arg0: i32, %arg1: memref<64x128xbf16, #tpu.memory_space<vmem>>, %arg2: memref<8x128xf32, #tpu.memory_space<vmem>>, %arg3: memref<128x384xbf16, #tpu.memory_space<vmem>>, %arg4: memref<128x384xbf16, #tpu.memory_space<vmem>>, %arg5: memref<1x384xf32, #tpu.memory_space<vmem>>, %arg6: memref<1x128xf32, #tpu.memory_space<vmem>>, %arg7: memref<8x8x128xf32, #tpu.memory_space<vmem>>, %arg8: memref<8x128xf32, #tpu.memory_space<vmem>>, %arg9: memref<64x384xf32, #tpu.memory_space<vmem>>) attributes {dimension_semantics = [#tpu.dimension_semantics<arbitrary>], iteration_bounds = array<i64: 1>, scalar_prefetch = 0 : i64, scratch_operands = 2 : i64, tpu.core_type = #tpu.core_type<tc>, window_params = [{transform_indices = @transform_0, window_bounds = array<i64: 64, 128>}, {pipeline_mode = #tpu.pipeline_mode<synchronous>, transform_indices = @transform_1, window_bounds = array<i64: 8, 128>}, {pipeline_mode = #tpu.pipeline_mode<synchronous>, transform_indices = @transform_2, window_bounds = array<i64: 128, 384>}, {pipeline_mode = #tpu.pipeline_mode<synchronous>, transform_indices = @transform_3, window_bounds = array<i64: 128, 384>}, {pipeline_mode = #tpu.pipeline_mode<synchronous>, transform_indices = @transform_4, window_bounds = array<i64: 1, 384>}, {pipeline_mode = #tpu.pipeline_mode<synchronous>, transform_indices = @transform_5, window_bounds = array<i64: 1, 128>}, {transform_indices = @transform_6, window_bounds = array<i64: 8, 8, 128>}]} {
    %c0_i32 = arith.constant 0 : i32
    %0 = arith.cmpi eq, %arg0, %c0_i32 : i32
    %1 = arith.extui %0 : i1 to i32
    %c0_i32_0 = arith.constant 0 : i32
    %2 = arith.cmpi ne, %1, %c0_i32_0 : i32
    scf.if %2 {
      %c0_109 = arith.constant 0 : index
      %c0_110 = arith.constant 0 : index
      %332 = vector.load %arg2[%c0_109, %c0_110] : memref<8x128xf32, #tpu.memory_space<vmem>>, vector<8x128xf32>
      %c0_111 = arith.constant 0 : index
      %c0_112 = arith.constant 0 : index
      %333 = vector.load %arg8[%c0_111, %c0_112] : memref<8x128xf32, #tpu.memory_space<vmem>>, vector<8x128xf32>
      tpu.vector_store %arg8[%c0_111, %c0_112], %332 {strides = array<i32>} : memref<8x128xf32, #tpu.memory_space<vmem>>, vector<8x128xf32>,
    } else {
    }
    %c0 = arith.constant 0 : index
    %c0_1 = arith.constant 0 : index
    %3 = vector.load %arg1[%c0, %c0_1] : memref<64x128xbf16, #tpu.memory_space<vmem>>, vector<64x128xbf16>
    %c0_2 = arith.constant 0 : index
    %c0_3 = arith.constant 0 : index
    %4 = vector.load %arg3[%c0_2, %c0_3] : memref<128x384xbf16, #tpu.memory_space<vmem>>, vector<128x384xbf16>
    %cst = arith.constant dense<0.000000e+00> : vector<64x384xf32>
    %5 = tpu.matmul %3, %4, %cst {dimension_numbers = #tpu.dot_dimension_numbers<[1], [0], [0], [1], [0, 0, 1, 1], [], []>} : vector<64x128xbf16>, vector<128x384xbf16>, vector<64x384xf32> -> vector<64x384xf32>
    %c0_4 = arith.constant 0 : index
    %c0_5 = arith.constant 0 : index
    %6 = vector.load %arg5[%c0_4, %c0_5] : memref<1x384xf32, #tpu.memory_space<vmem>>, vector<1x384xf32>
    %7 = vector.broadcast %6 : vector<1x384xf32> to vector<64x384xf32>
    %8 = arith.addf %5, %7 : vector<64x384xf32>
    %c0_6 = arith.constant 0 : index
    %c0_7 = arith.constant 0 : index
    %9 = vector.load %arg9[%c0_6, %c0_7] : memref<64x384xf32, #tpu.memory_space<vmem>>, vector<64x384xf32>
    tpu.vector_store %arg9[%c0_6, %c0_7], %8 {strides = array<i32>} : memref<64x384xf32, #tpu.memory_space<vmem>>, vector<64x384xf32>,
    %c0_8 = arith.constant 0 : index
    %c0_9 = arith.constant 0 : index
    %10 = vector.load %arg8[%c0_8, %c0_9] : memref<8x128xf32, #tpu.memory_space<vmem>>, vector<8x128xf32>
    %c0_i32_10 = arith.constant 0 : i32
    %c8_i32 = arith.constant 8 : i32
    %11 = arith.muli %c0_i32_10, %c8_i32 : i32
    %12 = tpu.assume_multiple %11, 8 : i32
    %13 = arith.index_cast %12 : i32 to index
    %c0_11 = arith.constant 0 : index
    %14 = vector.load %arg9[%13, %c0_11] : memref<64x384xf32, #tpu.memory_space<vmem>>, vector<8x384xf32>
    %15 = arith.truncf %10 : vector<8x128xf32> to vector<8x128xbf16>
    %c0_12 = arith.constant 0 : index
    %c0_13 = arith.constant 0 : index
    %16 = vector.load %arg4[%c0_12, %c0_13] : memref<128x384xbf16, #tpu.memory_space<vmem>>, vector<128x384xbf16>
    %cst_14 = arith.constant dense<0.000000e+00> : vector<8x384xf32>
    %17 = tpu.matmul %15, %16, %cst_14 {dimension_numbers = #tpu.dot_dimension_numbers<[1], [0], [0], [1], [0, 0, 1, 1], [], []>} : vector<8x128xbf16>, vector<128x384xbf16>, vector<8x384xf32> -> vector<8x384xf32>
    %18 = vector.extract_strided_slice %14 {offsets = [0, 0], sizes = [8, 128], strides = [1, 1]} : vector<8x384xf32> to vector<8x128xf32>
    %19 = vector.extract_strided_slice %17 {offsets = [0, 0], sizes = [8, 128], strides = [1, 1]} : vector<8x384xf32> to vector<8x128xf32>
    %20 = arith.addf %18, %19 : vector<8x128xf32>
    %21 = arith.negf %20 : vector<8x128xf32>
    %22 = math.exp %21 : vector<8x128xf32>
    %cst_15 = arith.constant 1.000000e+00 : f32
    %23 = vector.broadcast %cst_15 : f32 to vector<8x128xf32>
    %24 = arith.addf %23, %22 : vector<8x128xf32>
    %25 = arith.divf %23, %24 : vector<8x128xf32>
    %26 = vector.extract_strided_slice %14 {offsets = [0, 128], sizes = [8, 128], strides = [1, 1]} : vector<8x384xf32> to vector<8x128xf32>
    %27 = vector.extract_strided_slice %17 {offsets = [0, 128], sizes = [8, 128], strides = [1, 1]} : vector<8x384xf32> to vector<8x128xf32>
    %28 = arith.addf %26, %27 : vector<8x128xf32>
    %29 = arith.negf %28 : vector<8x128xf32>
    %30 = math.exp %29 : vector<8x128xf32>
    %cst_16 = arith.constant 1.000000e+00 : f32
    %31 = vector.broadcast %cst_16 : f32 to vector<8x128xf32>
    %32 = arith.addf %31, %30 : vector<8x128xf32>
    %33 = arith.divf %31, %32 : vector<8x128xf32>
    %34 = vector.extract_strided_slice %14 {offsets = [0, 256], sizes = [8, 128], strides = [1, 1]} : vector<8x384xf32> to vector<8x128xf32>
    %35 = vector.extract_strided_slice %17 {offsets = [0, 256], sizes = [8, 128], strides = [1, 1]} : vector<8x384xf32> to vector<8x128xf32>
    %c0_17 = arith.constant 0 : index
    %c0_18 = arith.constant 0 : index
    %36 = vector.load %arg6[%c0_17, %c0_18] : memref<1x128xf32, #tpu.memory_space<vmem>>, vector<1x128xf32>
    %37 = vector.broadcast %36 : vector<1x128xf32> to vector<8x128xf32>
    %38 = arith.addf %35, %37 : vector<8x128xf32>
    %39 = arith.mulf %25, %38 : vector<8x128xf32>
    %40 = arith.addf %34, %39 : vector<8x128xf32>
    %41 = math.tanh %40 : vector<8x128xf32>
    %cst_19 = arith.constant 1.000000e+00 : f32
    %42 = vector.broadcast %cst_19 : f32 to vector<8x128xf32>
    %43 = arith.subf %42, %33 : vector<8x128xf32>
    %44 = arith.mulf %43, %41 : vector<8x128xf32>
    %45 = arith.mulf %33, %10 : vector<8x128xf32>
    %46 = arith.addf %44, %45 : vector<8x128xf32>
    %47 = arith.index_cast %c0_i32_10 : i32 to index
    %c0_20 = arith.constant 0 : index
    %c0_21 = arith.constant 0 : index
    %48 = vector.load %arg7[%47, %c0_20, %c0_21] : memref<8x8x128xf32, #tpu.memory_space<vmem>>, vector<1x8x128xf32>
    %49 = vector.shape_cast %48 : vector<1x8x128xf32> to vector<8x128xf32>
    %50 = vector.shape_cast %46 : vector<8x128xf32> to vector<1x8x128xf32>
    tpu.vector_store %arg7[%47, %c0_20, %c0_21], %50 {strides = array<i32>} : memref<8x8x128xf32, #tpu.memory_space<vmem>>, vector<1x8x128xf32>,
    %c1_i32 = arith.constant 1 : i32
    %c8_i32_22 = arith.constant 8 : i32
    %51 = arith.muli %c1_i32, %c8_i32_22 : i32
    %52 = tpu.assume_multiple %51, 8 : i32
    %53 = arith.index_cast %52 : i32 to index
    %c0_23 = arith.constant 0 : index
    %54 = vector.load %arg9[%53, %c0_23] : memref<64x384xf32, #tpu.memory_space<vmem>>, vector<8x384xf32>
    %55 = arith.truncf %46 : vector<8x128xf32> to vector<8x128xbf16>
    %c0_24 = arith.constant 0 : index
    %c0_25 = arith.constant 0 : index
    %56 = vector.load %arg4[%c0_24, %c0_25] : memref<128x384xbf16, #tpu.memory_space<vmem>>, vector<128x384xbf16>
    %cst_26 = arith.constant dense<0.000000e+00> : vector<8x384xf32>
    %57 = tpu.matmul %55, %56, %cst_26 {dimension_numbers = #tpu.dot_dimension_numbers<[1], [0], [0], [1], [0, 0, 1, 1], [], []>} : vector<8x128xbf16>, vector<128x384xbf16>, vector<8x384xf32> -> vector<8x384xf32>
    %58 = vector.extract_strided_slice %54 {offsets = [0, 0], sizes = [8, 128], strides = [1, 1]} : vector<8x384xf32> to vector<8x128xf32>
    %59 = vector.extract_strided_slice %57 {offsets = [0, 0], sizes = [8, 128], strides = [1, 1]} : vector<8x384xf32> to vector<8x128xf32>
    %60 = arith.addf %58, %59 : vector<8x128xf32>
    %61 = arith.negf %60 : vector<8x128xf32>
    %62 = math.exp %61 : vector<8x128xf32>
    %cst_27 = arith.constant 1.000000e+00 : f32
    %63 = vector.broadcast %cst_27 : f32 to vector<8x128xf32>
    %64 = arith.addf %63, %62 : vector<8x128xf32>
    %65 = arith.divf %63, %64 : vector<8x128xf32>
    %66 = vector.extract_strided_slice %54 {offsets = [0, 128], sizes = [8, 128], strides = [1, 1]} : vector<8x384xf32> to vector<8x128xf32>
    %67 = vector.extract_strided_slice %57 {offsets = [0, 128], sizes = [8, 128], strides = [1, 1]} : vector<8x384xf32> to vector<8x128xf32>
    %68 = arith.addf %66, %67 : vector<8x128xf32>
    %69 = arith.negf %68 : vector<8x128xf32>
    %70 = math.exp %69 : vector<8x128xf32>
    %cst_28 = arith.constant 1.000000e+00 : f32
    %71 = vector.broadcast %cst_28 : f32 to vector<8x128xf32>
    %72 = arith.addf %71, %70 : vector<8x128xf32>
    %73 = arith.divf %71, %72 : vector<8x128xf32>
    %74 = vector.extract_strided_slice %54 {offsets = [0, 256], sizes = [8, 128], strides = [1, 1]} : vector<8x384xf32> to vector<8x128xf32>
    %75 = vector.extract_strided_slice %57 {offsets = [0, 256], sizes = [8, 128], strides = [1, 1]} : vector<8x384xf32> to vector<8x128xf32>
    %c0_29 = arith.constant 0 : index
    %c0_30 = arith.constant 0 : index
    %76 = vector.load %arg6[%c0_29, %c0_30] : memref<1x128xf32, #tpu.memory_space<vmem>>, vector<1x128xf32>
    %77 = vector.broadcast %76 : vector<1x128xf32> to vector<8x128xf32>
    %78 = arith.addf %75, %77 : vector<8x128xf32>
    %79 = arith.mulf %65, %78 : vector<8x128xf32>
    %80 = arith.addf %74, %79 : vector<8x128xf32>
    %81 = math.tanh %80 : vector<8x128xf32>
    %cst_31 = arith.constant 1.000000e+00 : f32
    %82 = vector.broadcast %cst_31 : f32 to vector<8x128xf32>
    %83 = arith.subf %82, %73 : vector<8x128xf32>
    %84 = arith.mulf %83, %81 : vector<8x128xf32>
    %85 = arith.mulf %73, %46 : vector<8x128xf32>
    %86 = arith.addf %84, %85 : vector<8x128xf32>
    %87 = arith.index_cast %c1_i32 : i32 to index
    %c0_32 = arith.constant 0 : index
    %c0_33 = arith.constant 0 : index
    %88 = vector.load %arg7[%87, %c0_32, %c0_33] : memref<8x8x128xf32, #tpu.memory_space<vmem>>, vector<1x8x128xf32>
    %89 = vector.shape_cast %88 : vector<1x8x128xf32> to vector<8x128xf32>
    %90 = vector.shape_cast %86 : vector<8x128xf32> to vector<1x8x128xf32>
    tpu.vector_store %arg7[%87, %c0_32, %c0_33], %90 {strides = array<i32>} : memref<8x8x128xf32, #tpu.memory_space<vmem>>, vector<1x8x128xf32>,
    %c2_i32 = arith.constant 2 : i32
    %c8_i32_34 = arith.constant 8 : i32
    %91 = arith.muli %c2_i32, %c8_i32_34 : i32
    %92 = tpu.assume_multiple %91, 8 : i32
    %93 = arith.index_cast %92 : i32 to index
    %c0_35 = arith.constant 0 : index
    %94 = vector.load %arg9[%93, %c0_35] : memref<64x384xf32, #tpu.memory_space<vmem>>, vector<8x384xf32>
    %95 = arith.truncf %86 : vector<8x128xf32> to vector<8x128xbf16>
    %c0_36 = arith.constant 0 : index
    %c0_37 = arith.constant 0 : index
    %96 = vector.load %arg4[%c0_36, %c0_37] : memref<128x384xbf16, #tpu.memory_space<vmem>>, vector<128x384xbf16>
    %cst_38 = arith.constant dense<0.000000e+00> : vector<8x384xf32>
    %97 = tpu.matmul %95, %96, %cst_38 {dimension_numbers = #tpu.dot_dimension_numbers<[1], [0], [0], [1], [0, 0, 1, 1], [], []>} : vector<8x128xbf16>, vector<128x384xbf16>, vector<8x384xf32> -> vector<8x384xf32>
    %98 = vector.extract_strided_slice %94 {offsets = [0, 0], sizes = [8, 128], strides = [1, 1]} : vector<8x384xf32> to vector<8x128xf32>
    %99 = vector.extract_strided_slice %97 {offsets = [0, 0], sizes = [8, 128], strides = [1, 1]} : vector<8x384xf32> to vector<8x128xf32>
    %100 = arith.addf %98, %99 : vector<8x128xf32>
    %101 = arith.negf %100 : vector<8x128xf32>
    %102 = math.exp %101 : vector<8x128xf32>
    %cst_39 = arith.constant 1.000000e+00 : f32
    %103 = vector.broadcast %cst_39 : f32 to vector<8x128xf32>
    %104 = arith.addf %103, %102 : vector<8x128xf32>
    %105 = arith.divf %103, %104 : vector<8x128xf32>
    %106 = vector.extract_strided_slice %94 {offsets = [0, 128], sizes = [8, 128], strides = [1, 1]} : vector<8x384xf32> to vector<8x128xf32>
    %107 = vector.extract_strided_slice %97 {offsets = [0, 128], sizes = [8, 128], strides = [1, 1]} : vector<8x384xf32> to vector<8x128xf32>
    %108 = arith.addf %106, %107 : vector<8x128xf32>
    %109 = arith.negf %108 : vector<8x128xf32>
    %110 = math.exp %109 : vector<8x128xf32>
    %cst_40 = arith.constant 1.000000e+00 : f32
    %111 = vector.broadcast %cst_40 : f32 to vector<8x128xf32>
    %112 = arith.addf %111, %110 : vector<8x128xf32>
    %113 = arith.divf %111, %112 : vector<8x128xf32>
    %114 = vector.extract_strided_slice %94 {offsets = [0, 256], sizes = [8, 128], strides = [1, 1]} : vector<8x384xf32> to vector<8x128xf32>
    %115 = vector.extract_strided_slice %97 {offsets = [0, 256], sizes = [8, 128], strides = [1, 1]} : vector<8x384xf32> to vector<8x128xf32>
    %c0_41 = arith.constant 0 : index
    %c0_42 = arith.constant 0 : index
    %116 = vector.load %arg6[%c0_41, %c0_42] : memref<1x128xf32, #tpu.memory_space<vmem>>, vector<1x128xf32>
    %117 = vector.broadcast %116 : vector<1x128xf32> to vector<8x128xf32>
    %118 = arith.addf %115, %117 : vector<8x128xf32>
    %119 = arith.mulf %105, %118 : vector<8x128xf32>
    %120 = arith.addf %114, %119 : vector<8x128xf32>
    %121 = math.tanh %120 : vector<8x128xf32>
    %cst_43 = arith.constant 1.000000e+00 : f32
    %122 = vector.broadcast %cst_43 : f32 to vector<8x128xf32>
    %123 = arith.subf %122, %113 : vector<8x128xf32>
    %124 = arith.mulf %123, %121 : vector<8x128xf32>
    %125 = arith.mulf %113, %86 : vector<8x128xf32>
    %126 = arith.addf %124, %125 : vector<8x128xf32>
    %127 = arith.index_cast %c2_i32 : i32 to index
    %c0_44 = arith.constant 0 : index
    %c0_45 = arith.constant 0 : index
    %128 = vector.load %arg7[%127, %c0_44, %c0_45] : memref<8x8x128xf32, #tpu.memory_space<vmem>>, vector<1x8x128xf32>
    %129 = vector.shape_cast %128 : vector<1x8x128xf32> to vector<8x128xf32>
    %130 = vector.shape_cast %126 : vector<8x128xf32> to vector<1x8x128xf32>
    tpu.vector_store %arg7[%127, %c0_44, %c0_45], %130 {strides = array<i32>} : memref<8x8x128xf32, #tpu.memory_space<vmem>>, vector<1x8x128xf32>,
    %c3_i32 = arith.constant 3 : i32
    %c8_i32_46 = arith.constant 8 : i32
    %131 = arith.muli %c3_i32, %c8_i32_46 : i32
    %132 = tpu.assume_multiple %131, 8 : i32
    %133 = arith.index_cast %132 : i32 to index
    %c0_47 = arith.constant 0 : index
    %134 = vector.load %arg9[%133, %c0_47] : memref<64x384xf32, #tpu.memory_space<vmem>>, vector<8x384xf32>
    %135 = arith.truncf %126 : vector<8x128xf32> to vector<8x128xbf16>
    %c0_48 = arith.constant 0 : index
    %c0_49 = arith.constant 0 : index
    %136 = vector.load %arg4[%c0_48, %c0_49] : memref<128x384xbf16, #tpu.memory_space<vmem>>, vector<128x384xbf16>
    %cst_50 = arith.constant dense<0.000000e+00> : vector<8x384xf32>
    %137 = tpu.matmul %135, %136, %cst_50 {dimension_numbers = #tpu.dot_dimension_numbers<[1], [0], [0], [1], [0, 0, 1, 1], [], []>} : vector<8x128xbf16>, vector<128x384xbf16>, vector<8x384xf32> -> vector<8x384xf32>
    %138 = vector.extract_strided_slice %134 {offsets = [0, 0], sizes = [8, 128], strides = [1, 1]} : vector<8x384xf32> to vector<8x128xf32>
    %139 = vector.extract_strided_slice %137 {offsets = [0, 0], sizes = [8, 128], strides = [1, 1]} : vector<8x384xf32> to vector<8x128xf32>
    %140 = arith.addf %138, %139 : vector<8x128xf32>
    %141 = arith.negf %140 : vector<8x128xf32>
    %142 = math.exp %141 : vector<8x128xf32>
    %cst_51 = arith.constant 1.000000e+00 : f32
    %143 = vector.broadcast %cst_51 : f32 to vector<8x128xf32>
    %144 = arith.addf %143, %142 : vector<8x128xf32>
    %145 = arith.divf %143, %144 : vector<8x128xf32>
    %146 = vector.extract_strided_slice %134 {offsets = [0, 128], sizes = [8, 128], strides = [1, 1]} : vector<8x384xf32> to vector<8x128xf32>
    %147 = vector.extract_strided_slice %137 {offsets = [0, 128], sizes = [8, 128], strides = [1, 1]} : vector<8x384xf32> to vector<8x128xf32>
    %148 = arith.addf %146, %147 : vector<8x128xf32>
    %149 = arith.negf %148 : vector<8x128xf32>
    %150 = math.exp %149 : vector<8x128xf32>
    %cst_52 = arith.constant 1.000000e+00 : f32
    %151 = vector.broadcast %cst_52 : f32 to vector<8x128xf32>
    %152 = arith.addf %151, %150 : vector<8x128xf32>
    %153 = arith.divf %151, %152 : vector<8x128xf32>
    %154 = vector.extract_strided_slice %134 {offsets = [0, 256], sizes = [8, 128], strides = [1, 1]} : vector<8x384xf32> to vector<8x128xf32>
    %155 = vector.extract_strided_slice %137 {offsets = [0, 256], sizes = [8, 128], strides = [1, 1]} : vector<8x384xf32> to vector<8x128xf32>
    %c0_53 = arith.constant 0 : index
    %c0_54 = arith.constant 0 : index
    %156 = vector.load %arg6[%c0_53, %c0_54] : memref<1x128xf32, #tpu.memory_space<vmem>>, vector<1x128xf32>
    %157 = vector.broadcast %156 : vector<1x128xf32> to vector<8x128xf32>
    %158 = arith.addf %155, %157 : vector<8x128xf32>
    %159 = arith.mulf %145, %158 : vector<8x128xf32>
    %160 = arith.addf %154, %159 : vector<8x128xf32>
    %161 = math.tanh %160 : vector<8x128xf32>
    %cst_55 = arith.constant 1.000000e+00 : f32
    %162 = vector.broadcast %cst_55 : f32 to vector<8x128xf32>
    %163 = arith.subf %162, %153 : vector<8x128xf32>
    %164 = arith.mulf %163, %161 : vector<8x128xf32>
    %165 = arith.mulf %153, %126 : vector<8x128xf32>
    %166 = arith.addf %164, %165 : vector<8x128xf32>
    %167 = arith.index_cast %c3_i32 : i32 to index
    %c0_56 = arith.constant 0 : index
    %c0_57 = arith.constant 0 : index
    %168 = vector.load %arg7[%167, %c0_56, %c0_57] : memref<8x8x128xf32, #tpu.memory_space<vmem>>, vector<1x8x128xf32>
    %169 = vector.shape_cast %168 : vector<1x8x128xf32> to vector<8x128xf32>
    %170 = vector.shape_cast %166 : vector<8x128xf32> to vector<1x8x128xf32>
    tpu.vector_store %arg7[%167, %c0_56, %c0_57], %170 {strides = array<i32>} : memref<8x8x128xf32, #tpu.memory_space<vmem>>, vector<1x8x128xf32>,
    %c4_i32 = arith.constant 4 : i32
    %c8_i32_58 = arith.constant 8 : i32
    %171 = arith.muli %c4_i32, %c8_i32_58 : i32
    %172 = tpu.assume_multiple %171, 8 : i32
    %173 = arith.index_cast %172 : i32 to index
    %c0_59 = arith.constant 0 : index
    %174 = vector.load %arg9[%173, %c0_59] : memref<64x384xf32, #tpu.memory_space<vmem>>, vector<8x384xf32>
    %175 = arith.truncf %166 : vector<8x128xf32> to vector<8x128xbf16>
    %c0_60 = arith.constant 0 : index
    %c0_61 = arith.constant 0 : index
    %176 = vector.load %arg4[%c0_60, %c0_61] : memref<128x384xbf16, #tpu.memory_space<vmem>>, vector<128x384xbf16>
    %cst_62 = arith.constant dense<0.000000e+00> : vector<8x384xf32>
    %177 = tpu.matmul %175, %176, %cst_62 {dimension_numbers = #tpu.dot_dimension_numbers<[1], [0], [0], [1], [0, 0, 1, 1], [], []>} : vector<8x128xbf16>, vector<128x384xbf16>, vector<8x384xf32> -> vector<8x384xf32>
    %178 = vector.extract_strided_slice %174 {offsets = [0, 0], sizes = [8, 128], strides = [1, 1]} : vector<8x384xf32> to vector<8x128xf32>
    %179 = vector.extract_strided_slice %177 {offsets = [0, 0], sizes = [8, 128], strides = [1, 1]} : vector<8x384xf32> to vector<8x128xf32>
    %180 = arith.addf %178, %179 : vector<8x128xf32>
    %181 = arith.negf %180 : vector<8x128xf32>
    %182 = math.exp %181 : vector<8x128xf32>
    %cst_63 = arith.constant 1.000000e+00 : f32
    %183 = vector.broadcast %cst_63 : f32 to vector<8x128xf32>
    %184 = arith.addf %183, %182 : vector<8x128xf32>
    %185 = arith.divf %183, %184 : vector<8x128xf32>
    %186 = vector.extract_strided_slice %174 {offsets = [0, 128], sizes = [8, 128], strides = [1, 1]} : vector<8x384xf32> to vector<8x128xf32>
    %187 = vector.extract_strided_slice %177 {offsets = [0, 128], sizes = [8, 128], strides = [1, 1]} : vector<8x384xf32> to vector<8x128xf32>
    %188 = arith.addf %186, %187 : vector<8x128xf32>
    %189 = arith.negf %188 : vector<8x128xf32>
    %190 = math.exp %189 : vector<8x128xf32>
    %cst_64 = arith.constant 1.000000e+00 : f32
    %191 = vector.broadcast %cst_64 : f32 to vector<8x128xf32>
    %192 = arith.addf %191, %190 : vector<8x128xf32>
    %193 = arith.divf %191, %192 : vector<8x128xf32>
    %194 = vector.extract_strided_slice %174 {offsets = [0, 256], sizes = [8, 128], strides = [1, 1]} : vector<8x384xf32> to vector<8x128xf32>
    %195 = vector.extract_strided_slice %177 {offsets = [0, 256], sizes = [8, 128], strides = [1, 1]} : vector<8x384xf32> to vector<8x128xf32>
    %c0_65 = arith.constant 0 : index
    %c0_66 = arith.constant 0 : index
    %196 = vector.load %arg6[%c0_65, %c0_66] : memref<1x128xf32, #tpu.memory_space<vmem>>, vector<1x128xf32>
    %197 = vector.broadcast %196 : vector<1x128xf32> to vector<8x128xf32>
    %198 = arith.addf %195, %197 : vector<8x128xf32>
    %199 = arith.mulf %185, %198 : vector<8x128xf32>
    %200 = arith.addf %194, %199 : vector<8x128xf32>
    %201 = math.tanh %200 : vector<8x128xf32>
    %cst_67 = arith.constant 1.000000e+00 : f32
    %202 = vector.broadcast %cst_67 : f32 to vector<8x128xf32>
    %203 = arith.subf %202, %193 : vector<8x128xf32>
    %204 = arith.mulf %203, %201 : vector<8x128xf32>
    %205 = arith.mulf %193, %166 : vector<8x128xf32>
    %206 = arith.addf %204, %205 : vector<8x128xf32>
    %207 = arith.index_cast %c4_i32 : i32 to index
    %c0_68 = arith.constant 0 : index
    %c0_69 = arith.constant 0 : index
    %208 = vector.load %arg7[%207, %c0_68, %c0_69] : memref<8x8x128xf32, #tpu.memory_space<vmem>>, vector<1x8x128xf32>
    %209 = vector.shape_cast %208 : vector<1x8x128xf32> to vector<8x128xf32>
    %210 = vector.shape_cast %206 : vector<8x128xf32> to vector<1x8x128xf32>
    tpu.vector_store %arg7[%207, %c0_68, %c0_69], %210 {strides = array<i32>} : memref<8x8x128xf32, #tpu.memory_space<vmem>>, vector<1x8x128xf32>,
    %c5_i32 = arith.constant 5 : i32
    %c8_i32_70 = arith.constant 8 : i32
    %211 = arith.muli %c5_i32, %c8_i32_70 : i32
    %212 = tpu.assume_multiple %211, 8 : i32
    %213 = arith.index_cast %212 : i32 to index
    %c0_71 = arith.constant 0 : index
    %214 = vector.load %arg9[%213, %c0_71] : memref<64x384xf32, #tpu.memory_space<vmem>>, vector<8x384xf32>
    %215 = arith.truncf %206 : vector<8x128xf32> to vector<8x128xbf16>
    %c0_72 = arith.constant 0 : index
    %c0_73 = arith.constant 0 : index
    %216 = vector.load %arg4[%c0_72, %c0_73] : memref<128x384xbf16, #tpu.memory_space<vmem>>, vector<128x384xbf16>
    %cst_74 = arith.constant dense<0.000000e+00> : vector<8x384xf32>
    %217 = tpu.matmul %215, %216, %cst_74 {dimension_numbers = #tpu.dot_dimension_numbers<[1], [0], [0], [1], [0, 0, 1, 1], [], []>} : vector<8x128xbf16>, vector<128x384xbf16>, vector<8x384xf32> -> vector<8x384xf32>
    %218 = vector.extract_strided_slice %214 {offsets = [0, 0], sizes = [8, 128], strides = [1, 1]} : vector<8x384xf32> to vector<8x128xf32>
    %219 = vector.extract_strided_slice %217 {offsets = [0, 0], sizes = [8, 128], strides = [1, 1]} : vector<8x384xf32> to vector<8x128xf32>
    %220 = arith.addf %218, %219 : vector<8x128xf32>
    %221 = arith.negf %220 : vector<8x128xf32>
    %222 = math.exp %221 : vector<8x128xf32>
    %cst_75 = arith.constant 1.000000e+00 : f32
    %223 = vector.broadcast %cst_75 : f32 to vector<8x128xf32>
    %224 = arith.addf %223, %222 : vector<8x128xf32>
    %225 = arith.divf %223, %224 : vector<8x128xf32>
    %226 = vector.extract_strided_slice %214 {offsets = [0, 128], sizes = [8, 128], strides = [1, 1]} : vector<8x384xf32> to vector<8x128xf32>
    %227 = vector.extract_strided_slice %217 {offsets = [0, 128], sizes = [8, 128], strides = [1, 1]} : vector<8x384xf32> to vector<8x128xf32>
    %228 = arith.addf %226, %227 : vector<8x128xf32>
    %229 = arith.negf %228 : vector<8x128xf32>
    %230 = math.exp %229 : vector<8x128xf32>
    %cst_76 = arith.constant 1.000000e+00 : f32
    %231 = vector.broadcast %cst_76 : f32 to vector<8x128xf32>
    %232 = arith.addf %231, %230 : vector<8x128xf32>
    %233 = arith.divf %231, %232 : vector<8x128xf32>
    %234 = vector.extract_strided_slice %214 {offsets = [0, 256], sizes = [8, 128], strides = [1, 1]} : vector<8x384xf32> to vector<8x128xf32>
    %235 = vector.extract_strided_slice %217 {offsets = [0, 256], sizes = [8, 128], strides = [1, 1]} : vector<8x384xf32> to vector<8x128xf32>
    %c0_77 = arith.constant 0 : index
    %c0_78 = arith.constant 0 : index
    %236 = vector.load %arg6[%c0_77, %c0_78] : memref<1x128xf32, #tpu.memory_space<vmem>>, vector<1x128xf32>
    %237 = vector.broadcast %236 : vector<1x128xf32> to vector<8x128xf32>
    %238 = arith.addf %235, %237 : vector<8x128xf32>
    %239 = arith.mulf %225, %238 : vector<8x128xf32>
    %240 = arith.addf %234, %239 : vector<8x128xf32>
    %241 = math.tanh %240 : vector<8x128xf32>
    %cst_79 = arith.constant 1.000000e+00 : f32
    %242 = vector.broadcast %cst_79 : f32 to vector<8x128xf32>
    %243 = arith.subf %242, %233 : vector<8x128xf32>
    %244 = arith.mulf %243, %241 : vector<8x128xf32>
    %245 = arith.mulf %233, %206 : vector<8x128xf32>
    %246 = arith.addf %244, %245 : vector<8x128xf32>
    %247 = arith.index_cast %c5_i32 : i32 to index
    %c0_80 = arith.constant 0 : index
    %c0_81 = arith.constant 0 : index
    %248 = vector.load %arg7[%247, %c0_80, %c0_81] : memref<8x8x128xf32, #tpu.memory_space<vmem>>, vector<1x8x128xf32>
    %249 = vector.shape_cast %248 : vector<1x8x128xf32> to vector<8x128xf32>
    %250 = vector.shape_cast %246 : vector<8x128xf32> to vector<1x8x128xf32>
    tpu.vector_store %arg7[%247, %c0_80, %c0_81], %250 {strides = array<i32>} : memref<8x8x128xf32, #tpu.memory_space<vmem>>, vector<1x8x128xf32>,
    %c6_i32 = arith.constant 6 : i32
    %c8_i32_82 = arith.constant 8 : i32
    %251 = arith.muli %c6_i32, %c8_i32_82 : i32
    %252 = tpu.assume_multiple %251, 8 : i32
    %253 = arith.index_cast %252 : i32 to index
    %c0_83 = arith.constant 0 : index
    %254 = vector.load %arg9[%253, %c0_83] : memref<64x384xf32, #tpu.memory_space<vmem>>, vector<8x384xf32>
    %255 = arith.truncf %246 : vector<8x128xf32> to vector<8x128xbf16>
    %c0_84 = arith.constant 0 : index
    %c0_85 = arith.constant 0 : index
    %256 = vector.load %arg4[%c0_84, %c0_85] : memref<128x384xbf16, #tpu.memory_space<vmem>>, vector<128x384xbf16>
    %cst_86 = arith.constant dense<0.000000e+00> : vector<8x384xf32>
    %257 = tpu.matmul %255, %256, %cst_86 {dimension_numbers = #tpu.dot_dimension_numbers<[1], [0], [0], [1], [0, 0, 1, 1], [], []>} : vector<8x128xbf16>, vector<128x384xbf16>, vector<8x384xf32> -> vector<8x384xf32>
    %258 = vector.extract_strided_slice %254 {offsets = [0, 0], sizes = [8, 128], strides = [1, 1]} : vector<8x384xf32> to vector<8x128xf32>
    %259 = vector.extract_strided_slice %257 {offsets = [0, 0], sizes = [8, 128], strides = [1, 1]} : vector<8x384xf32> to vector<8x128xf32>
    %260 = arith.addf %258, %259 : vector<8x128xf32>
    %261 = arith.negf %260 : vector<8x128xf32>
    %262 = math.exp %261 : vector<8x128xf32>
    %cst_87 = arith.constant 1.000000e+00 : f32
    %263 = vector.broadcast %cst_87 : f32 to vector<8x128xf32>
    %264 = arith.addf %263, %262 : vector<8x128xf32>
    %265 = arith.divf %263, %264 : vector<8x128xf32>
    %266 = vector.extract_strided_slice %254 {offsets = [0, 128], sizes = [8, 128], strides = [1, 1]} : vector<8x384xf32> to vector<8x128xf32>
    %267 = vector.extract_strided_slice %257 {offsets = [0, 128], sizes = [8, 128], strides = [1, 1]} : vector<8x384xf32> to vector<8x128xf32>
    %268 = arith.addf %266, %267 : vector<8x128xf32>
    %269 = arith.negf %268 : vector<8x128xf32>
    %270 = math.exp %269 : vector<8x128xf32>
    %cst_88 = arith.constant 1.000000e+00 : f32
    %271 = vector.broadcast %cst_88 : f32 to vector<8x128xf32>
    %272 = arith.addf %271, %270 : vector<8x128xf32>
    %273 = arith.divf %271, %272 : vector<8x128xf32>
    %274 = vector.extract_strided_slice %254 {offsets = [0, 256], sizes = [8, 128], strides = [1, 1]} : vector<8x384xf32> to vector<8x128xf32>
    %275 = vector.extract_strided_slice %257 {offsets = [0, 256], sizes = [8, 128], strides = [1, 1]} : vector<8x384xf32> to vector<8x128xf32>
    %c0_89 = arith.constant 0 : index
    %c0_90 = arith.constant 0 : index
    %276 = vector.load %arg6[%c0_89, %c0_90] : memref<1x128xf32, #tpu.memory_space<vmem>>, vector<1x128xf32>
    %277 = vector.broadcast %276 : vector<1x128xf32> to vector<8x128xf32>
    %278 = arith.addf %275, %277 : vector<8x128xf32>
    %279 = arith.mulf %265, %278 : vector<8x128xf32>
    %280 = arith.addf %274, %279 : vector<8x128xf32>
    %281 = math.tanh %280 : vector<8x128xf32>
    %cst_91 = arith.constant 1.000000e+00 : f32
    %282 = vector.broadcast %cst_91 : f32 to vector<8x128xf32>
    %283 = arith.subf %282, %273 : vector<8x128xf32>
    %284 = arith.mulf %283, %281 : vector<8x128xf32>
    %285 = arith.mulf %273, %246 : vector<8x128xf32>
    %286 = arith.addf %284, %285 : vector<8x128xf32>
    %287 = arith.index_cast %c6_i32 : i32 to index
    %c0_92 = arith.constant 0 : index
    %c0_93 = arith.constant 0 : index
    %288 = vector.load %arg7[%287, %c0_92, %c0_93] : memref<8x8x128xf32, #tpu.memory_space<vmem>>, vector<1x8x128xf32>
    %289 = vector.shape_cast %288 : vector<1x8x128xf32> to vector<8x128xf32>
    %290 = vector.shape_cast %286 : vector<8x128xf32> to vector<1x8x128xf32>
    tpu.vector_store %arg7[%287, %c0_92, %c0_93], %290 {strides = array<i32>} : memref<8x8x128xf32, #tpu.memory_space<vmem>>, vector<1x8x128xf32>,
    %c7_i32 = arith.constant 7 : i32
    %c8_i32_94 = arith.constant 8 : i32
    %291 = arith.muli %c7_i32, %c8_i32_94 : i32
    %292 = tpu.assume_multiple %291, 8 : i32
    %293 = arith.index_cast %292 : i32 to index
    %c0_95 = arith.constant 0 : index
    %294 = vector.load %arg9[%293, %c0_95] : memref<64x384xf32, #tpu.memory_space<vmem>>, vector<8x384xf32>
    %295 = arith.truncf %286 : vector<8x128xf32> to vector<8x128xbf16>
    %c0_96 = arith.constant 0 : index
    %c0_97 = arith.constant 0 : index
    %296 = vector.load %arg4[%c0_96, %c0_97] : memref<128x384xbf16, #tpu.memory_space<vmem>>, vector<128x384xbf16>
    %cst_98 = arith.constant dense<0.000000e+00> : vector<8x384xf32>
    %297 = tpu.matmul %295, %296, %cst_98 {dimension_numbers = #tpu.dot_dimension_numbers<[1], [0], [0], [1], [0, 0, 1, 1], [], []>} : vector<8x128xbf16>, vector<128x384xbf16>, vector<8x384xf32> -> vector<8x384xf32>
    %298 = vector.extract_strided_slice %294 {offsets = [0, 0], sizes = [8, 128], strides = [1, 1]} : vector<8x384xf32> to vector<8x128xf32>
    %299 = vector.extract_strided_slice %297 {offsets = [0, 0], sizes = [8, 128], strides = [1, 1]} : vector<8x384xf32> to vector<8x128xf32>
    %300 = arith.addf %298, %299 : vector<8x128xf32>
    %301 = arith.negf %300 : vector<8x128xf32>
    %302 = math.exp %301 : vector<8x128xf32>
    %cst_99 = arith.constant 1.000000e+00 : f32
    %303 = vector.broadcast %cst_99 : f32 to vector<8x128xf32>
    %304 = arith.addf %303, %302 : vector<8x128xf32>
    %305 = arith.divf %303, %304 : vector<8x128xf32>
    %306 = vector.extract_strided_slice %294 {offsets = [0, 128], sizes = [8, 128], strides = [1, 1]} : vector<8x384xf32> to vector<8x128xf32>
    %307 = vector.extract_strided_slice %297 {offsets = [0, 128], sizes = [8, 128], strides = [1, 1]} : vector<8x384xf32> to vector<8x128xf32>
    %308 = arith.addf %306, %307 : vector<8x128xf32>
    %309 = arith.negf %308 : vector<8x128xf32>
    %310 = math.exp %309 : vector<8x128xf32>
    %cst_100 = arith.constant 1.000000e+00 : f32
    %311 = vector.broadcast %cst_100 : f32 to vector<8x128xf32>
    %312 = arith.addf %311, %310 : vector<8x128xf32>
    %313 = arith.divf %311, %312 : vector<8x128xf32>
    %314 = vector.extract_strided_slice %294 {offsets = [0, 256], sizes = [8, 128], strides = [1, 1]} : vector<8x384xf32> to vector<8x128xf32>
    %315 = vector.extract_strided_slice %297 {offsets = [0, 256], sizes = [8, 128], strides = [1, 1]} : vector<8x384xf32> to vector<8x128xf32>
    %c0_101 = arith.constant 0 : index
    %c0_102 = arith.constant 0 : index
    %316 = vector.load %arg6[%c0_101, %c0_102] : memref<1x128xf32, #tpu.memory_space<vmem>>, vector<1x128xf32>
    %317 = vector.broadcast %316 : vector<1x128xf32> to vector<8x128xf32>
    %318 = arith.addf %315, %317 : vector<8x128xf32>
    %319 = arith.mulf %305, %318 : vector<8x128xf32>
    %320 = arith.addf %314, %319 : vector<8x128xf32>
    %321 = math.tanh %320 : vector<8x128xf32>
    %cst_103 = arith.constant 1.000000e+00 : f32
    %322 = vector.broadcast %cst_103 : f32 to vector<8x128xf32>
    %323 = arith.subf %322, %313 : vector<8x128xf32>
    %324 = arith.mulf %323, %321 : vector<8x128xf32>
    %325 = arith.mulf %313, %286 : vector<8x128xf32>
    %326 = arith.addf %324, %325 : vector<8x128xf32>
    %327 = arith.index_cast %c7_i32 : i32 to index
    %c0_104 = arith.constant 0 : index
    %c0_105 = arith.constant 0 : index
    %328 = vector.load %arg7[%327, %c0_104, %c0_105] : memref<8x8x128xf32, #tpu.memory_space<vmem>>, vector<1x8x128xf32>
    %329 = vector.shape_cast %328 : vector<1x8x128xf32> to vector<8x128xf32>
    %330 = vector.shape_cast %326 : vector<8x128xf32> to vector<1x8x128xf32>
    tpu.vector_store %arg7[%327, %c0_104, %c0_105], %330 {strides = array<i32>} : memref<8x8x128xf32, #tpu.memory_space<vmem>>, vector<1x8x128xf32>,
    %c8_i32_106 = arith.constant 8 : i32
    %c0_107 = arith.constant 0 : index
    %c0_108 = arith.constant 0 : index
    %331 = vector.load %arg8[%c0_107, %c0_108] : memref<8x128xf32, #tpu.memory_space<vmem>>, vector<8x128xf32>
    tpu.vector_store %arg8[%c0_107, %c0_108], %326 {strides = array<i32>} : memref<8x128xf32, #tpu.memory_space<vmem>>, vector<8x128xf32>,
    return
  }
  func.func @transform_0(%arg0: i32) -> (i32, i32) {
    %c0_i32 = arith.constant 0 : i32
    %c0_i32_0 = arith.constant 0 : i32
    return %arg0, %c0_i32 : i32, i32
  }
  func.func @transform_1(%arg0: i32) -> (i32, i32) {
    %c0_i32 = arith.constant 0 : i32
    %c0_i32_0 = arith.constant 0 : i32
    %c0_i32_1 = arith.constant 0 : i32
    return %c0_i32, %c0_i32_0 : i32, i32
  }
  func.func @transform_2(%arg0: i32) -> (i32, i32) {
    %c0_i32 = arith.constant 0 : i32
    %c0_i32_0 = arith.constant 0 : i32
    %c0_i32_1 = arith.constant 0 : i32
    return %c0_i32, %c0_i32_0 : i32, i32
  }
  func.func @transform_3(%arg0: i32) -> (i32, i32) {
    %c0_i32 = arith.constant 0 : i32
    %c0_i32_0 = arith.constant 0 : i32
    %c0_i32_1 = arith.constant 0 : i32
    return %c0_i32, %c0_i32_0 : i32, i32
  }
  func.func @transform_4(%arg0: i32) -> (i32, i32) {
    %c0_i32 = arith.constant 0 : i32
    %c0_i32_0 = arith.constant 0 : i32
    %c0_i32_1 = arith.constant 0 : i32
    return %c0_i32, %c0_i32_0 : i32, i32
  }
  func.func @transform_5(%arg0: i32) -> (i32, i32) {
    %c0_i32 = arith.constant 0 : i32
    %c0_i32_0 = arith.constant 0 : i32
    %c0_i32_1 = arith.constant 0 : i32
    return %c0_i32, %c0_i32_0 : i32, i32
  }
  func.func @transform_6(%arg0: i32) -> (i32, i32, i32) {
    %c0_i32 = arith.constant 0 : i32
    %c0_i32_0 = arith.constant 0 : i32
    %c0_i32_1 = arith.constant 0 : i32
    return %arg0, %c0_i32, %c0_i32_0 : i32, i32, i32
  }
}

module attributes {stable_mosaic.version = 11 : i64} {
  func.func @_mm_bias_kernel(%arg0: i32, %arg1: i32, %arg2: i32, %arg3: memref<64x128xf32, #tpu.memory_space<vmem>>, %arg4: memref<128x128xbf16, #tpu.memory_space<vmem>>, %arg5: memref<1x128xf32, #tpu.memory_space<vmem>>, %arg6: memref<64x128xf32, #tpu.memory_space<vmem>>, %arg7: memref<64x128xf32, #tpu.memory_space<vmem>>) attributes {dimension_semantics = [#tpu.dimension_semantics<parallel>, #tpu.dimension_semantics<parallel>, #tpu.dimension_semantics<arbitrary>], iteration_bounds = array<i64: 1, 1, 1>, scalar_prefetch = 0 : i64, scratch_operands = 1 : i64, tpu.core_type = #tpu.core_type<tc>, window_params = [{transform_indices = @transform_0, window_bounds = array<i64: 64, 128>}, {transform_indices = @transform_1, window_bounds = array<i64: 128, 128>}, {transform_indices = @transform_2, window_bounds = array<i64: 1, 128>}, {transform_indices = @transform_3, window_bounds = array<i64: 64, 128>}]} {
    %c0_i32 = arith.constant 0 : i32
    %0 = arith.cmpi eq, %arg2, %c0_i32 : i32
    %1 = arith.extui %0 : i1 to i32
    %c0_i32_0 = arith.constant 0 : i32
    %2 = arith.cmpi ne, %1, %c0_i32_0 : i32
    scf.if %2 {
      %cst_10 = arith.constant 0.000000e+00 : f32
      %13 = vector.broadcast %cst_10 : f32 to vector<64x128xf32>
      %c0_11 = arith.constant 0 : index
      %c0_12 = arith.constant 0 : index
      %14 = vector.load %arg7[%c0_11, %c0_12] : memref<64x128xf32, #tpu.memory_space<vmem>>, vector<64x128xf32>
      tpu.vector_store %arg7[%c0_11, %c0_12], %13 {strides = array<i32>} : memref<64x128xf32, #tpu.memory_space<vmem>>, vector<64x128xf32>,
    } else {
    }
    %c0 = arith.constant 0 : index
    %c0_1 = arith.constant 0 : index
    %3 = vector.load %arg7[%c0, %c0_1] : memref<64x128xf32, #tpu.memory_space<vmem>>, vector<64x128xf32>
    %c0_2 = arith.constant 0 : index
    %c0_3 = arith.constant 0 : index
    %4 = vector.load %arg3[%c0_2, %c0_3] : memref<64x128xf32, #tpu.memory_space<vmem>>, vector<64x128xf32>
    %5 = arith.truncf %4 : vector<64x128xf32> to vector<64x128xbf16>
    %c0_4 = arith.constant 0 : index
    %c0_5 = arith.constant 0 : index
    %6 = vector.load %arg4[%c0_4, %c0_5] : memref<128x128xbf16, #tpu.memory_space<vmem>>, vector<128x128xbf16>
    %cst = arith.constant dense<0.000000e+00> : vector<64x128xf32>
    %7 = tpu.matmul %5, %6, %cst {dimension_numbers = #tpu.dot_dimension_numbers<[1], [0], [0], [1], [0, 0, 1, 1], [], []>} : vector<64x128xbf16>, vector<128x128xbf16>, vector<64x128xf32> -> vector<64x128xf32>
    %8 = arith.addf %3, %7 : vector<64x128xf32>
    %c0_6 = arith.constant 0 : index
    %c0_7 = arith.constant 0 : index
    %9 = vector.load %arg7[%c0_6, %c0_7] : memref<64x128xf32, #tpu.memory_space<vmem>>, vector<64x128xf32>
    tpu.vector_store %arg7[%c0_6, %c0_7], %8 {strides = array<i32>} : memref<64x128xf32, #tpu.memory_space<vmem>>, vector<64x128xf32>,
    %c0_i32_8 = arith.constant 0 : i32
    %10 = arith.cmpi eq, %arg2, %c0_i32_8 : i32
    %11 = arith.extui %10 : i1 to i32
    %c0_i32_9 = arith.constant 0 : i32
    %12 = arith.cmpi ne, %11, %c0_i32_9 : i32
    scf.if %12 {
      %c0_10 = arith.constant 0 : index
      %c0_11 = arith.constant 0 : index
      %13 = vector.load %arg7[%c0_10, %c0_11] : memref<64x128xf32, #tpu.memory_space<vmem>>, vector<64x128xf32>
      %c0_12 = arith.constant 0 : index
      %c0_13 = arith.constant 0 : index
      %14 = vector.load %arg5[%c0_12, %c0_13] : memref<1x128xf32, #tpu.memory_space<vmem>>, vector<1x128xf32>
      %15 = vector.broadcast %14 : vector<1x128xf32> to vector<64x128xf32>
      %16 = arith.addf %13, %15 : vector<64x128xf32>
      %c0_14 = arith.constant 0 : index
      %c0_15 = arith.constant 0 : index
      %17 = vector.load %arg6[%c0_14, %c0_15] : memref<64x128xf32, #tpu.memory_space<vmem>>, vector<64x128xf32>
      tpu.vector_store %arg6[%c0_14, %c0_15], %16 {strides = array<i32>} : memref<64x128xf32, #tpu.memory_space<vmem>>, vector<64x128xf32>,
    } else {
    }
    return
  }
  func.func @transform_0(%arg0: i32, %arg1: i32, %arg2: i32) -> (i32, i32) {
    %c0_i32 = arith.constant 0 : i32
    return %arg0, %arg2 : i32, i32
  }
  func.func @transform_1(%arg0: i32, %arg1: i32, %arg2: i32) -> (i32, i32) {
    %c0_i32 = arith.constant 0 : i32
    return %arg2, %arg1 : i32, i32
  }
  func.func @transform_2(%arg0: i32, %arg1: i32, %arg2: i32) -> (i32, i32) {
    %c0_i32 = arith.constant 0 : i32
    %c0_i32_0 = arith.constant 0 : i32
    return %c0_i32, %arg1 : i32, i32
  }
  func.func @transform_3(%arg0: i32, %arg1: i32, %arg2: i32) -> (i32, i32) {
    %c0_i32 = arith.constant 0 : i32
    return %arg0, %arg1 : i32, i32
  }
}

</mosaic_0001>

<bundles_post_ra>
// kernel: seq2seq_gru_forward.5
= control target key start
LH: loop header
LB: loop body
LE: loop exit
PB: predicated region body
PF: predicated region fallthrough
CT: control target
= control target key end

     0   :  { %s394_s1 = inlined_call_operand.vmem [shape: bf16[128,128], index: 1, kind: input, shape index: {}]   ;;  %s395_s0 = inlined_call_operand.vmem [shape: f32[64,128], index: 0, kind: input, shape index: {}]   ;;  %s396_s2 = inlined_call_operand.vmem [shape: f32[1,128], index: 2, kind: input, shape index: {}]   ;;  %s397_s3 = inlined_call_operand.vmem [shape: f32[64,128], index: 3, kind: output, shape index: {}]  }
   0x1   :  { %v291_v0 = vld [vmem:[%s394_s1] sm:$0xff]   ;;  %v292_v1 = vld [vmem:[%s394_s1 + $0x8] sm:$0xff]   ;;  %v293_v2 = vld [vmem:[%s394_s1 + $0x10] sm:$0xff]  }
   0x2   :  { %251 = vmatprep.subr.bf16.mxu0 %v291_v0  ;;  %275 = vmatprep.subr.bf16.mxu1 %v291_v0  ;;  %v294_v3 = vld [vmem:[%s394_s1 + $0x18] sm:$0xff]   ;;  %v35_v4 = vld [vmem:[%s395_s0] sm:$0xff]  ;;  %v36_v5 = vld [vmem:[%s395_s0 + $0x8] sm:$0xff] }
   0x3   :  { %252 = vmatpush3.bf16.msra.mxu0 %v291_v0  ;;  %283 = vmatpush3.bf16.msra.mxu1 %v291_v0  ;;  %v39_v6 = vld [vmem:[%s395_s0 + $0x20] sm:$0xff]  ;;  %v43_v7 = vpack.c.bf16 %v36_v5, %v35_v4  ;;  %v40_v8 = vld [vmem:[%s395_s0 + $0x28] sm:$0xff]  ;;  %v297_v12 = vld [vmem:[%s394_s1 + $0x30] sm:$0xff]  }
   0x4   :  { %253 = vmatprep.subr.bf16.mxu0 %v292_v1  ;;  %276 = vmatprep.subr.bf16.mxu1 %v292_v1  ;;  %v45_v9 = vpack.c.bf16 %v40_v8, %v39_v6  ;;  %v295_v10 = vld [vmem:[%s394_s1 + $0x20] sm:$0xff]   ;;  %v296_v11 = vld [vmem:[%s394_s1 + $0x28] sm:$0xff]   ;;  %v298_v13 = vld [vmem:[%s394_s1 + $0x38] sm:$0xff]  }
   0x5   :  { %267 = vmatprep.mubr.bf16.mxu0 %v43_v7  ;;  %v37_v14 = vld [vmem:[%s395_s0 + $0x10] sm:$0xff]  ;;  %v38_v15 = vld [vmem:[%s395_s0 + $0x18] sm:$0xff]  ;;  %v238_v20 = vld [vmem:[%s396_s2] ss:$0 sm:$0xff] }
   0x6   :  { %271 = vmatprep.mubr.bf16.mxu1 %v45_v9  ;;  %v41_v16 = vld [vmem:[%s395_s0 + $0x30] sm:$0xff]  ;;  %v42_v17 = vld [vmem:[%s395_s0 + $0x38] sm:$0xff]  ;;  %v44_v18 = vpack.c.bf16 %v38_v15, %v37_v14 }
   0x7   :  { %254 = vmatpush3.bf16.msra.mxu0 %v292_v1  ;;  %284 = vmatpush3.bf16.msra.mxu1 %v292_v1  ;;  %v46_v19 = vpack.c.bf16 %v42_v17, %v41_v16 }
   0x8   :  { %255 = vmatprep.subr.bf16.mxu0 %v293_v2  ;;  %277 = vmatprep.subr.bf16.mxu1 %v293_v2 }
   0xb   :  { %256 = vmatpush3.bf16.msra.mxu0 %v293_v2  ;;  %285 = vmatpush3.bf16.msra.mxu1 %v293_v2 }
   0xc   :  { %257 = vmatprep.subr.bf16.mxu0 %v294_v3  ;;  %278 = vmatprep.subr.bf16.mxu1 %v294_v3 }
   0xf   :  { %258 = vmatpush3.bf16.msra.mxu0 %v294_v3  ;;  %286 = vmatpush3.bf16.msra.mxu1 %v294_v3 }
  0x10   :  { %259 = vmatprep.subr.bf16.mxu0 %v295_v10  ;;  %279 = vmatprep.subr.bf16.mxu1 %v295_v10 }
  0x13   :  { %260 = vmatpush3.bf16.msra.mxu0 %v295_v10  ;;  %287 = vmatpush3.bf16.msra.mxu1 %v295_v10 }
  0x14   :  { %261 = vmatprep.subr.bf16.mxu0 %v296_v11  ;;  %280 = vmatprep.subr.bf16.mxu1 %v296_v11 }
  0x17   :  { %262 = vmatpush3.bf16.msra.mxu0 %v296_v11  ;;  %288 = vmatpush3.bf16.msra.mxu1 %v296_v11 }
  0x18   :  { %263 = vmatprep.subr.bf16.mxu0 %v297_v12  ;;  %281 = vmatprep.subr.bf16.mxu1 %v297_v12 }
  0x1b   :  { %264 = vmatpush3.bf16.msra.mxu0 %v297_v12  ;;  %289 = vmatpush3.bf16.msra.mxu1 %v297_v12 }
  0x1c   :  { %265 = vmatprep.subr.bf16.mxu0 %v298_v13  ;;  %282 = vmatprep.subr.bf16.mxu1 %v298_v13 }
  0x1f   :  { %266 = vmatpush3.bf16.msra.mxu0 %v298_v13  ;;  %290 = vmatpush3.bf16.msra.mxu1 %v298_v13 }
  0x22   :  { %268 = vmatmul.mubr.bf16.vlgmr.msra.gmra.mrb[0].mxu0 %v44_v18  ;;  %272 = vmatmul.mubr.bf16.vlgmr.msra.gmra.mrb[0].mxu1 %v46_v19 }
  0xf5   :  { %v269_v21 = vpop.f32.mrb[0].mxu0  ;;  %v273_v22 = vpop.f32.mrb[0].mxu1 }
  0xf6   :  { %v212_v23 = vadd.f32 %v269_v21, %v238_v20  ;;  %v216_v24 = vadd.f32 %v273_v22, %v238_v20  ;;  %v145_v25 = vpop.f32.mrb[1].mxu0  ;;  %v161_v26 = vpop.f32.mrb[1].mxu1 }
  0xf7   :  { %v210_v27 = vadd.f32 %v238_v20, %v145_v25  ;;  %v214_v28 = vadd.f32 %v238_v20, %v161_v26  ;;  %v270_v29 = vpop.f32.mrb[2].mxu0  ;;  %v274_v30 = vpop.f32.mrb[2].mxu1 }
  0xf8   :  { %220 = vst [vmem:[%s397_s3 + $0x10] sm:$0xff] %v212_v23  ;;  %224 = vst [vmem:[%s397_s3 + $0x30] sm:$0xff] %v216_v24  ;;  %v213_v31 = vadd.f32 %v270_v29, %v238_v20  ;;  %v217_v32 = vadd.f32 %v274_v30, %v238_v20  ;;  %v148_v33 = vpop.f32.mrb[3].mxu0  ;;  %v164_v34 = vpop.f32.mrb[3].mxu1 }
  0xf9   :  { %218 = vst [vmem:[%s397_s3] sm:$0xff] %v210_v27  ;;  %222 = vst [vmem:[%s397_s3 + $0x20] sm:$0xff] %v214_v28  ;;  %v211_v35 = vadd.f32 %v238_v20, %v148_v33  ;;  %v215_v36 = vadd.f32 %v238_v20, %v164_v34 }
  0xfa   :  { %221 = vst [vmem:[%s397_s3 + $0x18] sm:$0xff] %v213_v31  ;;  %225 = vst [vmem:[%s397_s3 + $0x38] sm:$0xff] %v217_v32 }
  0xfb   :  { %219 = vst [vmem:[%s397_s3 + $0x8] sm:$0xff] %v211_v35  ;;  %223 = vst [vmem:[%s397_s3 + $0x28] sm:$0xff] %v215_v36 }

// kernel: seq2seq_gru_forward.3
= control target key start
LH: loop header
LB: loop body
LE: loop exit
PB: predicated region body
PF: predicated region fallthrough
CT: control target
= control target key end

     0   :  { %v2676_v1 = vmov 0   ;;  %v2678_v34 = vmov 0.0   ;;  %vm1975_vm0 = vmmov 0   ;;  %v72_v56 = vlaneseq  ;;  %s2669_s2 = inlined_call_operand.vmem [shape: bf16[128,384], index: 2, kind: input, shape index: {}]   ;;  %s2670_s0 = inlined_call_operand.vmem [shape: bf16[64,128], index: 0, kind: input, shape index: {}]   ;;  %s2671_s3 = inlined_call_operand.vmem [shape: bf16[128,384], index: 3, kind: input, shape index: {}]   ;;  %s2672_s1 = inlined_call_operand.vmem [shape: f32[8,128], index: 1, kind: input, shape index: {}]   ;;  %s2673_s4 = inlined_call_operand.vmem [shape: f32[1,384], index: 4, kind: input, shape index: {}]   ;;  %s2674_s5 = inlined_call_operand.vmem [shape: f32[1,128], index: 5, kind: input, shape index: {}]   ;;  %s2675_s6 = inlined_call_operand.vmem [shape: f32[8,128], index: 6, kind: output, shape index: {}]  }
   0x1   :  { %v1805_v0 = vld [vmem:[%s2669_s2 + $0x4] ss:$12 sps:$4 sm:$0xff]   ;;  %271 = vmatprep.mubr.bf16.mxu0 %v2676_v1  ;;  %v1807_v2 = vld [vmem:[%s2669_s2] ss:$12 sps:$4 sm:$0xff]   ;;  %v1808_v3 = vld [vmem:[%s2669_s2 + $0x1c] ss:$12 sps:$4 sm:$0xff]  }
   0x2   :  { %239 = vmatprep.subr.bf16.mxu0 %v1805_v0  ;;  %v1810_v4 = vld [vmem:[%s2669_s2 + $0x18] ss:$12 sps:$4 sm:$0xff]   ;;  %v1811_v5 = vld [vmem:[%s2669_s2 + $0x34] ss:$12 sps:$4 sm:$0xff]   ;;  %v1813_v6 = vld [vmem:[%s2669_s2 + $0x30] ss:$12 sps:$4 sm:$0xff]  }
   0x3   :  { %240 = vmatpush1.bf16.msra.mxu0 %v1807_v2  ;;  %v1814_v7 = vld [vmem:[%s2669_s2 + $0x4c] ss:$12 sps:$4 sm:$0xff]   ;;  %v1825_v8 = vld [vmem:[%s2669_s2 + $0x8] ss:$12 sps:$4 sm:$0xff]   ;;  %v1817_v10 = vld [vmem:[%s2669_s2 + $0x64] ss:$12 sps:$4 sm:$0xff]  }
   0x4   :  { %241 = vmatprep.subr.bf16.mxu0 %v1808_v3  ;;  %v1816_v9 = vld [vmem:[%s2669_s2 + $0x48] ss:$12 sps:$4 sm:$0xff]   ;;  %1618 = vmatprep.subr.bf16.mxu1 %v1825_v8  ;;  %v1829_v11 = vld [vmem:[%s2669_s2 + $0x20] ss:$12 sps:$4 sm:$0xff]   ;;  %v1832_v13 = vld [vmem:[%s2669_s2 + $0x38] ss:$12 sps:$4 sm:$0xff]  }
   0x5   :  { %1619 = vmatpush3.bf16.msra.mxu1 %v1825_v8  ;;  %v1831_v12 = vld [vmem:[%s2670_s0] sm:$0xff]   ;;  %v1820_v15 = vld [vmem:[%s2669_s2 + $0x7c] ss:$12 sps:$4 sm:$0xff]   ;;  %v1827_v21 = vld [vmem:[%s2669_s2 + $0xac] ss:$12 sps:$4 sm:$0xff]   ;;  %v73_v57 = vshrl.u32 %v72_v56, 7 }
   0x6   :  { %1620 = vmatprep.subr.bf16.mxu1 %v1829_v11  ;;  %v1819_v14 = vld [vmem:[%s2669_s2 + $0x60] ss:$12 sps:$4 sm:$0xff]   ;;  %1634 = vmatprep.mubr.bf16.mxu1 %v1831_v12  ;;  %v1836_v16 = vld [vmem:[%s2669_s2 + $0x50] ss:$12 sps:$4 sm:$0xff]   ;;  %v1822_v17 = vld [vmem:[%s2669_s2 + $0x78] ss:$12 sps:$4 sm:$0xff]  }
   0x7   :  { %242 = vmatpush1.bf16.msra.mxu0 %v1810_v4  ;;  %v1823_v18 = vld [vmem:[%s2669_s2 + $0x94] ss:$12 sps:$4 sm:$0xff]   ;;  %v1826_v20 = vld [vmem:[%s2669_s2 + $0x90] ss:$12 sps:$4 sm:$0xff]   ;;  %v1850_v25 = vld [vmem:[%s2669_s2 + $0x98] ss:$12 sps:$4 sm:$0xff]  }
   0x8   :  { %243 = vmatprep.subr.bf16.mxu0 %v1811_v5  ;;  %v1841_v19 = vld [vmem:[%s2669_s2 + $0x68] ss:$12 sps:$4 sm:$0xff]   ;;  %v1845_v22 = vld [vmem:[%s2669_s2 + $0x80] ss:$12 sps:$4 sm:$0xff]   ;;  %v2084_v24 = vld [vmem:[%s2671_s3 + $0x4] ss:$12 sps:$4 sm:$0xff]  }
   0x9   :  { %1621 = vmatpush3.bf16.msra.mxu1 %v1829_v11  ;;  %v1830_v23 = vld [vmem:[%s2669_s2 + $0xa8] ss:$12 sps:$4 sm:$0xff]   ;;  %v2092_v26 = vld [vmem:[%s2671_s3] ss:$12 sps:$4 sm:$0xff]   ;;  %v1854_v28 = vld [vmem:[%s2669_s2 + $0xb0] ss:$12 sps:$4 sm:$0xff]  }
   0xa   :  { %1622 = vmatprep.subr.bf16.mxu1 %v1832_v13  ;;  %v2098_v27 = vld [vmem:[%s2671_s3 + $0x1c] ss:$12 sps:$4 sm:$0xff]   ;;  %v2107_v29 = vld [vmem:[%s2671_s3 + $0x18] ss:$12 sps:$4 sm:$0xff]   ;;  %v2114_v30 = vld [vmem:[%s2671_s3 + $0x34] ss:$12 sps:$4 sm:$0xff]  }
   0xb   :  { %244 = vmatpush1.bf16.msra.mxu0 %v1813_v6  ;;  %v1840_v31 = vld [vmem:[%s2670_s0 + $0x8] sm:$0xff]   ;;  %v2123_v32 = vld [vmem:[%s2671_s3 + $0x30] ss:$12 sps:$4 sm:$0xff]   ;;  %v2176_v42 = vld [vmem:[%s2671_s3 + $0x38] ss:$12 sps:$4 sm:$0xff]   ;;  %v74_v58 = vsub.s32 0, %v73_v57 }
   0xc   :  { %245 = vmatprep.subr.bf16.mxu0 %v1814_v7  ;;  %v2129_v33 = vld [vmem:[%s2671_s3 + $0x4c] ss:$12 sps:$4 sm:$0xff]   ;;  %v2135_v35 = vld [vmem:[%s2671_s3 + $0x8] ss:$12 sps:$4 sm:$0xff]   ;;  %v2151_v38 = vld [vmem:[%s2671_s3 + $0x64] ss:$12 sps:$4 sm:$0xff]  }
   0xd   :  { %1623 = vmatpush3.bf16.msra.mxu1 %v1832_v13  ;;  %v2141_v36 = vld [vmem:[%s2671_s3 + $0x48] ss:$12 sps:$4 sm:$0xff]   ;;  %v2157_v39 = vld [vmem:[%s2671_s3 + $0x20] ss:$12 sps:$4 sm:$0xff]   ;;  %v1858_v43 = vld [vmem:[%s2670_s0 + $0x18] sm:$0xff]   ;;  %v78_v60 = vsub.s32 1, %v73_v57 }
   0xe   :  { %1624 = vmatprep.subr.bf16.mxu1 %v1836_v16  ;;  %v1849_v37 = vld [vmem:[%s2670_s0 + $0x10] sm:$0xff]   ;;  %v2164_v40 = vld [vmem:[%s2671_s3 + $0x60] ss:$12 sps:$4 sm:$0xff]   ;;  %v2170_v41 = vld [vmem:[%s2671_s3 + $0x7c] ss:$12 sps:$4 sm:$0xff]   ;;  %v82_v5 = vsub.s32 2, %v73_v57 }
   0xf   :  { %246 = vmatpush1.bf16.msra.mxu0 %v1816_v9  ;;  %v2186_v44 = vld [vmem:[%s2671_s3 + $0x78] ss:$12 sps:$4 sm:$0xff]   ;;  %v2193_v45 = vld [vmem:[%s2671_s3 + $0x94] ss:$12 sps:$4 sm:$0xff]   ;;  %v2199_v46 = vld [vmem:[%s2671_s3 + $0x50] ss:$12 sps:$4 sm:$0xff]  }
  0x10   :  { %247 = vmatprep.subr.bf16.mxu0 %v1817_v10  ;;  %v2208_v47 = vld [vmem:[%s2671_s3 + $0x90] ss:$12 sps:$4 sm:$0xff]   ;;  %v2214_v48 = vld [vmem:[%s2671_s3 + $0xac] ss:$12 sps:$4 sm:$0xff]   ;;  %v2220_v49 = vld [vmem:[%s2671_s3 + $0x68] ss:$12 sps:$4 sm:$0xff]  }
  0x11   :  { %1625 = vmatpush3.bf16.msra.mxu1 %v1836_v16  ;;  %v2227_v50 = vld [vmem:[%s2671_s3 + $0xa8] ss:$12 sps:$4 sm:$0xff]   ;;  %v2233_v51 = vld [vmem:[%s2672_s1] sm:$0xff]  ;;  %v2261_v55 = vld [vmem:[%s2671_s3 + $0xb0] ss:$12 sps:$4 sm:$0xff]  }
  0x12   :  { %1626 = vmatprep.subr.bf16.mxu1 %v1841_v19  ;;  %v2240_v52 = vld [vmem:[%s2671_s3 + $0x80] ss:$12 sps:$4 sm:$0xff]   ;;  %v408_v53 = vpack.c.bf16 %v2233_v51, %v2233_v51  ;;  %v2251_v54 = vld [vmem:[%s2671_s3 + $0x98] ss:$12 sps:$4 sm:$0xff]  }
  0x13   :  { %248 = vmatpush1.bf16.msra.mxu0 %v1819_v14  ;;  %v70_v59 = vld [vmem:[%s2673_s4] sm:$0x7] }
  0x14   :  { %249 = vmatprep.subr.bf16.mxu0 %v1820_v15  ;;  %v75_v62 = vrot.slane %v70_v59, %v74_v58  ;;  %v79_v0 = vrot.slane %v70_v59, %v78_v60  ;;  %v2305_v7 = vrot.slane %v70_v59, %v82_v5 }
  0x15   :  { %1627 = vmatpush3.bf16.msra.mxu1 %v1841_v19 }
  0x16   :  { %1628 = vmatprep.subr.bf16.mxu1 %v1845_v22 }
  0x17   :  { %250 = vmatpush1.bf16.msra.mxu0 %v1822_v17 }
  0x18   :  { %251 = vmatprep.subr.bf16.mxu0 %v1823_v18 }
  0x19   :  { %1629 = vmatpush3.bf16.msra.mxu1 %v1845_v22 }
  0x1a   :  { %1630 = vmatprep.subr.bf16.mxu1 %v1850_v25 }
  0x1b   :  { %252 = vmatpush1.bf16.msra.mxu0 %v1826_v20 }
  0x1c   :  { %253 = vmatprep.subr.bf16.mxu0 %v1827_v21 }
  0x1d   :  { %1631 = vmatpush3.bf16.msra.mxu1 %v1850_v25 }
  0x1e   :  { %1632 = vmatprep.subr.bf16.mxu1 %v1854_v28 }
  0x1f   :  { %254 = vmatpush1.bf16.msra.mxu0 %v1830_v23 }
  0x20   :  { %569 = vmatprep.subr.bf16.mxu0 %v2084_v24 }
  0x21   :  { %1633 = vmatpush3.bf16.msra.mxu1 %v1854_v28 }
  0x22   :  { %272 = vmatmul.mubr.bf16.vlgmr.msra.gmra.mrb[0].mxu0 %v1831_v12  ;;  %1642 = vmatprep.subr.bf16.mxu1 %v2678_v34 }
  0x23   :  { %570 = vmatpush1.bf16.msra.mxu0 %v2092_v26  ;;  %281 = vmatprep.mubr.bf16.mxu0 %v2676_v1 }
  0x24   :  { %571 = vmatprep.subr.bf16.mxu0 %v2098_v27  ;;  %1635 = vmatmul.mubr.bf16.vlgmr.msra.gmra.mrb[0].mxu1 %v1840_v31 }
  0x25   :  { %1643 = vmatpush3.bf16.msra.mxu1 %v2135_v35  ;;  %1638 = vmatprep.mubr.bf16.mxu1 %v1849_v37 }
  0x26   :  { %1644 = vmatprep.subr.bf16.mxu1 %v2678_v34 }
  0x27   :  { %572 = vmatpush1.bf16.msra.mxu0 %v2107_v29 }
  0x28   :  { %573 = vmatprep.subr.bf16.mxu0 %v2114_v30 }
  0x29   :  { %1645 = vmatpush3.bf16.msra.mxu1 %v2157_v39 }
  0x2a   :  { %282 = vmatmul.mubr.bf16.gmra.mrb[4].mxu0 %v1840_v31  ;;  %1646 = vmatprep.subr.bf16.mxu1 %v2678_v34 }
  0x2b   :  { %574 = vmatpush1.bf16.msra.mxu0 %v2123_v32  ;;  %291 = vmatprep.mubr.bf16.mxu0 %v2676_v1 }
  0x2c   :  { %575 = vmatprep.subr.bf16.mxu0 %v2129_v33  ;;  %1639 = vmatmul.mubr.bf16.gmra.mrb[4].mxu1 %v1858_v43 }
  0x2d   :  { %1647 = vmatpush3.bf16.msra.mxu1 %v2176_v42  ;;  %1658 = vmatprep.mubr.msk.bf16.mxu1 %vm1975_vm0, %v2678_v34 }
  0x2e   :  { %1648 = vmatprep.subr.bf16.mxu1 %v2678_v34 }
  0x2f   :  { %576 = vmatpush1.bf16.msra.mxu0 %v2141_v36 }
  0x30   :  { %577 = vmatprep.subr.bf16.mxu0 %v2151_v38 }
  0x31   :  { %1649 = vmatpush3.bf16.msra.mxu1 %v2199_v46 }
  0x32   :  { %292 = vmatmul.mubr.bf16.gmra.mrb[8].mxu0 %v1849_v37  ;;  %1650 = vmatprep.subr.bf16.mxu1 %v2678_v34 }
  0x33   :  { %578 = vmatpush1.bf16.msra.mxu0 %v2164_v40  ;;  %301 = vmatprep.mubr.bf16.mxu0 %v2676_v1 }
  0x34   :  { %579 = vmatprep.subr.bf16.mxu0 %v2170_v41 }
  0x35   :  { %1651 = vmatpush3.bf16.msra.mxu1 %v2220_v49 }
  0x36   :  { %1652 = vmatprep.subr.bf16.mxu1 %v2678_v34 }
  0x37   :  { %580 = vmatpush1.bf16.msra.mxu0 %v2186_v44 }
  0x38   :  { %581 = vmatprep.subr.bf16.mxu0 %v2193_v45 }
  0x39   :  { %1653 = vmatpush3.bf16.msra.mxu1 %v2240_v52 }
  0x3a   :  { %302 = vmatmul.mubr.bf16.gmra.mrb[12].mxu0 %v1858_v43  ;;  %1654 = vmatprep.subr.bf16.mxu1 %v2678_v34 }
  0x3b   :  { %582 = vmatpush1.bf16.msra.mxu0 %v2208_v47  ;;  %601 = vmatprep.mubr.bf16.mxu0 %v2676_v1 }
  0x3c   :  { %583 = vmatprep.subr.bf16.mxu0 %v2214_v48 }
  0x3d   :  { %1655 = vmatpush3.bf16.msra.mxu1 %v2251_v54 }
  0x3e   :  { %1656 = vmatprep.subr.bf16.mxu1 %v2678_v34 }
  0x3f   :  { %584 = vmatpush1.bf16.msra.mxu0 %v2227_v50 }
  0x40   :  { %686 = vmatprep.subr.bf16.mxu0 %v2084_v24 }
  0x41   :  { %1657 = vmatpush3.bf16.msra.mxu1 %v2261_v55 }
  0x42   :  { %602 = vmatmul.mubr.bf16.vlgmr.msra.gmra.mrb[16].mxu0 %v408_v53  ;;  %1662 = vmatprep.subr.bf16.mxu1 %v2678_v34 }
  0x43   :  { %687 = vmatpush1.bf16.msra.mxu0 %v2092_v26  ;;  %718 = vmatprep.mubr.bf16.mxu0 %v2676_v1 }
  0x44   :  { %688 = vmatprep.subr.bf16.mxu0 %v2098_v27  ;;  %1659 = vmatmul.mubr.bf16.vlgmr.msra.gmra.mrb[8].mxu1 %v408_v53 }
  0x45   :  { %1663 = vmatpush3.bf16.msra.mxu1 %v2135_v35  ;;  %1678 = vmatprep.mubr.msk.bf16.mxu1 %vm1975_vm0, %v2678_v34 }
  0x46   :  { %1664 = vmatprep.subr.bf16.mxu1 %v2678_v34 }
  0x47   :  { %689 = vmatpush1.bf16.msra.mxu0 %v2107_v29 }
  0x48   :  { %690 = vmatprep.subr.bf16.mxu0 %v2114_v30 }
  0x49   :  { %1665 = vmatpush3.bf16.msra.mxu1 %v2157_v39 }
  0x4a   :  { %1666 = vmatprep.subr.bf16.mxu1 %v2678_v34 }
  0x4b   :  { %691 = vmatpush1.bf16.msra.mxu0 %v2123_v32 }
  0x4c   :  { %692 = vmatprep.subr.bf16.mxu0 %v2129_v33 }
  0x4d   :  { %1667 = vmatpush3.bf16.msra.mxu1 %v2176_v42 }
  0x4e   :  { %1668 = vmatprep.subr.bf16.mxu1 %v2678_v34 }
  0x4f   :  { %693 = vmatpush1.bf16.msra.mxu0 %v2141_v36 }
  0x50   :  { %694 = vmatprep.subr.bf16.mxu0 %v2151_v38 }
  0x51   :  { %1669 = vmatpush3.bf16.msra.mxu1 %v2199_v46 }
  0x52   :  { %1670 = vmatprep.subr.bf16.mxu1 %v2678_v34 }
  0x53   :  { %695 = vmatpush1.bf16.msra.mxu0 %v2164_v40 }
  0x54   :  { %696 = vmatprep.subr.bf16.mxu0 %v2170_v41 }
  0x55   :  { %1671 = vmatpush3.bf16.msra.mxu1 %v2220_v49 }
  0x56   :  { %1672 = vmatprep.subr.bf16.mxu1 %v2678_v34 }
  0x57   :  { %697 = vmatpush1.bf16.msra.mxu0 %v2186_v44 }
  0x58   :  { %698 = vmatprep.subr.bf16.mxu0 %v2193_v45 }
  0x59   :  { %1673 = vmatpush3.bf16.msra.mxu1 %v2240_v52 }
  0x5a   :  { %1674 = vmatprep.subr.bf16.mxu1 %v2678_v34 }
  0x5b   :  { %699 = vmatpush1.bf16.msra.mxu0 %v2208_v47 }
  0x5c   :  { %700 = vmatprep.subr.bf16.mxu0 %v2214_v48 }
  0x5d   :  { %1675 = vmatpush3.bf16.msra.mxu1 %v2251_v54 }
  0x5e   :  { %1676 = vmatprep.subr.bf16.mxu1 %v2678_v34 }
  0x5f   :  { %701 = vmatpush1.bf16.msra.mxu0 %v2227_v50 }
  0x60   :  { %796 = vmatprep.subr.bf16.mxu0 %v2084_v24 }
  0x61   :  { %1677 = vmatpush3.bf16.msra.mxu1 %v2261_v55 }
  0x62   :  { %1682 = vmatprep.subr.bf16.mxu1 %v2678_v34 }
  0xf5   :  { %v273_v61 = vpop.f32.mrb[0].mxu0 }
  0xf6   :  { %v275_v63 = vpop.f32.mrb[1].mxu0 }
  0xf7   :  { %v277_v2 = vpop.f32.mrb[2].mxu0  ;;  %v1636_v13 = vpop.f32.mrb[0].mxu1 }
  0xf8   :  { %v2301_v3 = vadd.f32 %v277_v2, %v75_v62  ;;  %v279_v4 = vpop.f32.mrb[3].mxu0  ;;  %v2314_v16 = vadd.f32 %v1636_v13, %v2305_v7  ;;  %v346_v17 = vpop.f32.mrb[1].mxu1 }
  0xf9   :  { %v2303_v6 = vadd.f32 %v279_v4, %v79_v0  ;;  %v1637_v19 = vpop.f32.mrb[2].mxu1 }
  0xfa   :  { %v2319_v20 = vadd.f32 %v1637_v19, %v2305_v7  ;;  %v349_v21 = vpop.f32.mrb[3].mxu1 }
  0xfb   :  { %v2322_v22 = vadd.f32 %v349_v21, %v2305_v7 }
  0xfd   :  { %v283_v8 = vpop.f32.mrb[4].mxu0 }
  0xfe   :  { %v2307_v9 = vadd.f32 %v283_v8, %v75_v62  ;;  %v285_v10 = vpop.f32.mrb[5].mxu0 }
  0xff   :  { %v2309_v11 = vadd.f32 %v285_v10, %v79_v0  ;;  %v287_v12 = vpop.f32.mrb[6].mxu0  ;;  %v1640_v43 = vpop.f32.mrb[4].mxu1 }
 0x100   :  { %v2311_v14 = vadd.f32 %v287_v12, %v75_v62  ;;  %v289_v15 = vpop.f32.mrb[7].mxu0  ;;  %v2331_v57 = vadd.f32 %v1640_v43, %v2305_v7  ;;  %v362_v58 = vpop.f32.mrb[5].mxu1  ;;  %v276_v43 = vadd.f32 %v275_v63, %v79_v0 }
 0x101   :  { %v2316_v18 = vadd.f32 %v289_v15, %v79_v0  ;;  %v2336_v60 = vadd.f32 %v362_v58, %v2305_v7  ;;  %v1641_v2 = vpop.f32.mrb[6].mxu1 }
 0x102   :  { %2680 = vst [vmem:[#allocation4_spill] sm:$0xff] %v2331_v57  ;;  %v2339_v4 = vadd.f32 %v1641_v2, %v2305_v7  ;;  %v365_v5 = vpop.f32.mrb[7].mxu1 }
 0x103   :  { %v2342_v8 = vadd.f32 %v365_v5, %v2305_v7 }
 0x104   :  { %2681 = vst [vmem:[#allocation5_spill] sm:$0xff] %v2339_v4 }
 0x105   :  { %v293_v23 = vpop.f32.mrb[8].mxu0 }
 0x106   :  { %v2324_v25 = vadd.f32 %v293_v23, %v75_v62  ;;  %v295_v28 = vpop.f32.mrb[9].mxu0 }
 0x107   :  { %v2326_v31 = vadd.f32 %v295_v28, %v79_v0  ;;  %v297_v37 = vpop.f32.mrb[10].mxu0 }
 0x108   :  { %v2328_v53 = vadd.f32 %v297_v37, %v75_v62  ;;  %v299_v56 = vpop.f32.mrb[11].mxu0  ;;  %v274_v37 = vadd.f32 %v273_v61, %v75_v62  ;;  %v2355_v61 = vld [vmem:[%s2674_s5] ss:$0 sm:$0xff] }
 0x109   :  { %v2333_v59 = vadd.f32 %v299_v56, %v79_v0 }
 0x10d   :  { %v303_v10 = vpop.f32.mrb[12].mxu0 }
 0x10e   :  { %v2344_v12 = vadd.f32 %v303_v10, %v75_v62  ;;  %v305_v13 = vpop.f32.mrb[13].mxu0 }
 0x10f   :  { %v2346_v15 = vadd.f32 %v305_v13, %v79_v0  ;;  %v307_v19 = vpop.f32.mrb[14].mxu0 }
 0x110   :  { %2682 = vst [vmem:[#allocation6_spill] sm:$0xff] %v2344_v12  ;;  %v2348_v21 = vadd.f32 %v307_v19, %v75_v62  ;;  %v309_v23 = vpop.f32.mrb[15].mxu0 }
 0x111   :  { %2683 = vst [vmem:[#allocation7_spill] sm:$0xff] %v2346_v15  ;;  %v2350_v28 = vadd.f32 %v309_v23, %v79_v0 }
 0x112   :  { %2684 = vst [vmem:[#allocation8_spill] sm:$0xff] %v2348_v21 }
 0x115   :  { %v603_v56 = vpop.f32.mrb[16].mxu0 }
 0x116   :  { %v650_v58 = vadd.f32 %v603_v56, %v274_v37  ;;  %v605_v2 = vpop.f32.mrb[17].mxu0 }
 0x117   :  { %v657_v1 = vadd.f32 %v605_v2, %v276_v43  ;;  %v607_v5 = vpop.f32.mrb[18].mxu0  ;;  %v644_v57 = vpop.f32.mrb[8].mxu1 }
 0x118   :  { %v1517_v34 = vmul.f32 -1.442695, %v650_v58  ;;  %v608_v4 = vpop.f32.mrb[19].mxu0  ;;  %v1660_v13 = vpop.f32.mrb[9].mxu1  ;;  %v671_v63 = vadd.f32 %v2355_v61, %v644_v57 }
 0x119   :  { %v1518_v10 = vmul.f32 -1.442695, %v657_v1  ;;  %v647_v15 = vpop.f32.mrb[10].mxu1  ;;  %v347_v1 = vadd.f32 %v346_v17, %v2305_v7  ;;  %v2685_v7 = vmov 0.0   ;;  %v2686_v17 = vmov 0  }
 0x11a   :  { %1873 = vpow2.f32 %v1517_v34  ;;  %v1661_v19 = vpop.f32.mrb[11].mxu1 }
 0x11b   :  { %1875 = vpow2.f32 %v1518_v10 }
 0x124   :  { %v1874_v21 = vpop.eup %1873 }
 0x125   :  { %v654_v12 = vadd.f32 1.0, %v1874_v21  ;;  %v1876_v23 = vpop.eup %1875 }
 0x126   :  { %v661_v62 = vadd.f32 1.0, %v1876_v23 }
 0x127   :  { %1877 = vrcp.f32 %v654_v12 }
 0x128   :  { %1879 = vrcp.f32 %v661_v62 }
 0x131   :  { %v1878_v0 = vpop.eup %1877 }
 0x132   :  { %v672_v34 = vmul.f32 %v1878_v0, %v671_v63  ;;  %v1880_v15 = vpop.eup %1879 }
 0x133   :  { %v675_v37 = vsub.f32 1.0, %v1880_v15  ;;  %v677_v43 = vmul.f32 %v1880_v15, %v2233_v51 }
 0x134   :  { %v673_v4 = vadd.f32 %v672_v34, %v347_v1 }
 0x136   :  { %1881 = vtanh.f32 %v673_v4 }
 0x140   :  { %v1882_v21 = vpop.eup %1881 }
 0x141   :  { %v676_v12 = vmul.f32 %v1882_v21, %v675_v37 }
 0x143   :  { %v2360_v56 = vadd.f32 %v677_v43, %v676_v12 }
 0x145   :  { %v685_v58 = vpack.c.bf16 %v2360_v56, %v2360_v56 }
 0x147   :  { %719 = vmatmul.mubr.bf16.vlgmr.msra.gmra.mrb[20].mxu0 %v685_v58  ;;  %1679 = vmatmul.mubr.bf16.vlgmr.msra.gmra.mrb[12].mxu1 %v685_v58 }
 0x148   :  { %797 = vmatpush1.bf16.msra.mxu0 %v2092_v26  ;;  %1683 = vmatpush3.bf16.msra.mxu1 %v2135_v35 }
 0x149   :  { %798 = vmatprep.subr.bf16.mxu0 %v2098_v27  ;;  %1684 = vmatprep.subr.bf16.mxu1 %v2685_v7 }
 0x14a   :  { %828 = vmatprep.mubr.bf16.mxu0 %v2686_v17  ;;  %1698 = vmatprep.mubr.msk.bf16.mxu1 %vm1975_vm0, %v2685_v7 }
 0x14c   :  { %799 = vmatpush1.bf16.msra.mxu0 %v2107_v29  ;;  %1685 = vmatpush3.bf16.msra.mxu1 %v2157_v39 }
 0x14d   :  { %800 = vmatprep.subr.bf16.mxu0 %v2114_v30  ;;  %1686 = vmatprep.subr.bf16.mxu1 %v2685_v7 }
 0x150   :  { %801 = vmatpush1.bf16.msra.mxu0 %v2123_v32  ;;  %1687 = vmatpush3.bf16.msra.mxu1 %v2176_v42 }
 0x151   :  { %802 = vmatprep.subr.bf16.mxu0 %v2129_v33  ;;  %1688 = vmatprep.subr.bf16.mxu1 %v2685_v7 }
 0x154   :  { %803 = vmatpush1.bf16.msra.mxu0 %v2141_v36  ;;  %1689 = vmatpush3.bf16.msra.mxu1 %v2199_v46 }
 0x155   :  { %804 = vmatprep.subr.bf16.mxu0 %v2151_v38  ;;  %1690 = vmatprep.subr.bf16.mxu1 %v2685_v7 }
 0x158   :  { %805 = vmatpush1.bf16.msra.mxu0 %v2164_v40  ;;  %1691 = vmatpush3.bf16.msra.mxu1 %v2220_v49 }
 0x159   :  { %806 = vmatprep.subr.bf16.mxu0 %v2170_v41  ;;  %1692 = vmatprep.subr.bf16.mxu1 %v2685_v7 }
 0x15c   :  { %807 = vmatpush1.bf16.msra.mxu0 %v2186_v44  ;;  %1693 = vmatpush3.bf16.msra.mxu1 %v2240_v52 }
 0x15d   :  { %808 = vmatprep.subr.bf16.mxu0 %v2193_v45  ;;  %1694 = vmatprep.subr.bf16.mxu1 %v2685_v7 }
 0x160   :  { %809 = vmatpush1.bf16.msra.mxu0 %v2208_v47  ;;  %1695 = vmatpush3.bf16.msra.mxu1 %v2251_v54 }
 0x161   :  { %810 = vmatprep.subr.bf16.mxu0 %v2214_v48  ;;  %1696 = vmatprep.subr.bf16.mxu1 %v2685_v7 }
 0x164   :  { %811 = vmatpush1.bf16.msra.mxu0 %v2227_v50  ;;  %1697 = vmatpush3.bf16.msra.mxu1 %v2261_v55 }
 0x165   :  { %906 = vmatprep.subr.bf16.mxu0 %v2084_v24  ;;  %1702 = vmatprep.subr.bf16.mxu1 %v2685_v7 }
 0x21a   :  { %v720_v51 = vpop.f32.mrb[20].mxu0  ;;  %v761_v57 = vpop.f32.mrb[12].mxu1 }
 0x21b   :  { %v767_v2 = vadd.f32 %v720_v51, %v2301_v3  ;;  %v722_v5 = vpop.f32.mrb[21].mxu0  ;;  %v1680_v10 = vpop.f32.mrb[13].mxu1  ;;  %v781_v21 = vadd.f32 %v2355_v61, %v761_v57 }
 0x21c   :  { %v774_v13 = vadd.f32 %v722_v5, %v2303_v6  ;;  %v724_v19 = vpop.f32.mrb[22].mxu0  ;;  %v764_v23 = vpop.f32.mrb[14].mxu1 }
 0x21d   :  { %v1520_v62 = vmul.f32 -1.442695, %v767_v2  ;;  %v725_v63 = vpop.f32.mrb[23].mxu0  ;;  %v1681_v0 = vpop.f32.mrb[15].mxu1 }
 0x21e   :  { %v1521_v1 = vmul.f32 -1.442695, %v774_v13 }
 0x21f   :  { %1883 = vpow2.f32 %v1520_v62 }
 0x220   :  { %1885 = vpow2.f32 %v1521_v1 }
 0x229   :  { %v1884_v34 = vpop.eup %1883 }
 0x22a   :  { %v771_v4 = vadd.f32 1.0, %v1884_v34  ;;  %v1886_v15 = vpop.eup %1885 }
 0x22b   :  { %v778_v37 = vadd.f32 1.0, %v1886_v15 }
 0x22c   :  { %1887 = vrcp.f32 %v771_v4 }
 0x22d   :  { %1889 = vrcp.f32 %v778_v37 }
 0x236   :  { %v1888_v3 = vpop.eup %1887 }
 0x237   :  { %v782_v12 = vmul.f32 %v1888_v3, %v781_v21  ;;  %v1890_v43 = vpop.eup %1889 }
 0x238   :  { %v785_v58 = vsub.f32 1.0, %v1890_v43  ;;  %v787_v5 = vmul.f32 %v1890_v43, %v2360_v56 }
 0x239   :  { %v783_v6 = vadd.f32 %v782_v12, %v2322_v22 }
 0x23b   :  { %1891 = vtanh.f32 %v783_v6 }
 0x245   :  { %v1892_v51 = vpop.eup %1891 }
 0x246   :  { %v786_v2 = vmul.f32 %v1892_v51, %v785_v58 }
 0x248   :  { %v2404_v10 = vadd.f32 %v787_v5, %v786_v2 }
 0x24a   :  { %v795_v13 = vpack.c.bf16 %v2404_v10, %v2404_v10 }
 0x24c   :  { %829 = vmatmul.mubr.bf16.vlgmr.msra.gmra.mrb[24].mxu0 %v795_v13  ;;  %1699 = vmatmul.mubr.bf16.vlgmr.msra.gmra.mrb[16].mxu1 %v795_v13 }
 0x24d   :  { %907 = vmatpush1.bf16.msra.mxu0 %v2092_v26  ;;  %1703 = vmatpush3.bf16.msra.mxu1 %v2135_v35 }
 0x24e   :  { %908 = vmatprep.subr.bf16.mxu0 %v2098_v27  ;;  %1704 = vmatprep.subr.bf16.mxu1 %v2685_v7 }
 0x24f   :  { %938 = vmatprep.mubr.bf16.mxu0 %v2686_v17  ;;  %1718 = vmatprep.mubr.msk.bf16.mxu1 %vm1975_vm0, %v2685_v7 }
 0x251   :  { %909 = vmatpush1.bf16.msra.mxu0 %v2107_v29  ;;  %1705 = vmatpush3.bf16.msra.mxu1 %v2157_v39 }
 0x252   :  { %910 = vmatprep.subr.bf16.mxu0 %v2114_v30  ;;  %1706 = vmatprep.subr.bf16.mxu1 %v2685_v7 }
 0x255   :  { %911 = vmatpush1.bf16.msra.mxu0 %v2123_v32  ;;  %1707 = vmatpush3.bf16.msra.mxu1 %v2176_v42 }
 0x256   :  { %912 = vmatprep.subr.bf16.mxu0 %v2129_v33  ;;  %1708 = vmatprep.subr.bf16.mxu1 %v2685_v7 }
 0x259   :  { %913 = vmatpush1.bf16.msra.mxu0 %v2141_v36  ;;  %1709 = vmatpush3.bf16.msra.mxu1 %v2199_v46 }
 0x25a   :  { %914 = vmatprep.subr.bf16.mxu0 %v2151_v38  ;;  %1710 = vmatprep.subr.bf16.mxu1 %v2685_v7 }
 0x25d   :  { %915 = vmatpush1.bf16.msra.mxu0 %v2164_v40  ;;  %1711 = vmatpush3.bf16.msra.mxu1 %v2220_v49 }
 0x25e   :  { %916 = vmatprep.subr.bf16.mxu0 %v2170_v41  ;;  %1712 = vmatprep.subr.bf16.mxu1 %v2685_v7 }
 0x261   :  { %917 = vmatpush1.bf16.msra.mxu0 %v2186_v44  ;;  %1713 = vmatpush3.bf16.msra.mxu1 %v2240_v52 }
 0x262   :  { %918 = vmatprep.subr.bf16.mxu0 %v2193_v45  ;;  %1714 = vmatprep.subr.bf16.mxu1 %v2685_v7 }
 0x265   :  { %919 = vmatpush1.bf16.msra.mxu0 %v2208_v47  ;;  %1715 = vmatpush3.bf16.msra.mxu1 %v2251_v54 }
 0x266   :  { %920 = vmatprep.subr.bf16.mxu0 %v2214_v48  ;;  %1716 = vmatprep.subr.bf16.mxu1 %v2685_v7 }
 0x269   :  { %921 = vmatpush1.bf16.msra.mxu0 %v2227_v50  ;;  %1717 = vmatpush3.bf16.msra.mxu1 %v2261_v55 }
 0x26a   :  { %1016 = vmatprep.subr.bf16.mxu0 %v2084_v24  ;;  %1722 = vmatprep.subr.bf16.mxu1 %v2685_v7 }
 0x31f   :  { %v830_v22 = vpop.f32.mrb[24].mxu0  ;;  %v871_v56 = vpop.f32.mrb[16].mxu1 }
 0x320   :  { %v877_v57 = vadd.f32 %v830_v22, %v2307_v9  ;;  %v832_v19 = vpop.f32.mrb[25].mxu0  ;;  %v1700_v23 = vpop.f32.mrb[17].mxu1  ;;  %v891_v6 = vadd.f32 %v2355_v61, %v871_v56 }
 0x321   :  { %v884_v62 = vadd.f32 %v832_v19, %v2309_v11  ;;  %v834_v63 = vpop.f32.mrb[26].mxu0  ;;  %v874_v0 = vpop.f32.mrb[18].mxu1 }
 0x322   :  { %v1522_v1 = vmul.f32 -1.442695, %v877_v57  ;;  %v835_v34 = vpop.f32.mrb[27].mxu0  ;;  %v1701_v4 = vpop.f32.mrb[19].mxu1 }
 0x323   :  { %v1523_v15 = vmul.f32 -1.442695, %v884_v62 }
 0x324   :  { %1893 = vpow2.f32 %v1522_v1 }
 0x325   :  { %1895 = vpow2.f32 %v1523_v15 }
 0x32e   :  { %v1894_v37 = vpop.eup %1893 }
 0x32f   :  { %v881_v21 = vadd.f32 1.0, %v1894_v37  ;;  %v1896_v3 = vpop.eup %1895 }
 0x330   :  { %v888_v12 = vadd.f32 1.0, %v1896_v3 }
 0x331   :  { %1897 = vrcp.f32 %v881_v21 }
 0x332   :  { %1899 = vrcp.f32 %v888_v12 }
 0x33b   :  { %v1898_v9 = vpop.eup %1897 }
 0x33c   :  { %v892_v43 = vmul.f32 %v1898_v9, %v891_v6  ;;  %v1900_v58 = vpop.eup %1899 }
 0x33d   :  { %v895_v51 = vsub.f32 1.0, %v1900_v58  ;;  %v897_v13 = vmul.f32 %v1900_v58, %v2404_v10 }
 0x33e   :  { %v893_v11 = vadd.f32 %v892_v43, %v2314_v16 }
 0x340   :  { %1901 = vtanh.f32 %v893_v11 }
 0x34a   :  { %v1902_v2 = vpop.eup %1901 }
 0x34b   :  { %v896_v5 = vmul.f32 %v1902_v2, %v895_v51 }
 0x34d   :  { %v2448_v22 = vadd.f32 %v897_v13, %v896_v5 }
 0x34f   :  { %v905_v57 = vpack.c.bf16 %v2448_v22, %v2448_v22 }
 0x351   :  { %939 = vmatmul.mubr.bf16.vlgmr.msra.gmra.mrb[28].mxu0 %v905_v57  ;;  %1719 = vmatmul.mubr.bf16.vlgmr.msra.gmra.mrb[20].mxu1 %v905_v57 }
 0x352   :  { %1017 = vmatpush1.bf16.msra.mxu0 %v2092_v26  ;;  %1723 = vmatpush3.bf16.msra.mxu1 %v2135_v35 }
 0x353   :  { %1018 = vmatprep.subr.bf16.mxu0 %v2098_v27  ;;  %1724 = vmatprep.subr.bf16.mxu1 %v2685_v7 }
 0x354   :  { %1048 = vmatprep.mubr.bf16.mxu0 %v2686_v17  ;;  %1738 = vmatprep.mubr.msk.bf16.mxu1 %vm1975_vm0, %v2685_v7 }
 0x356   :  { %1019 = vmatpush1.bf16.msra.mxu0 %v2107_v29  ;;  %1725 = vmatpush3.bf16.msra.mxu1 %v2157_v39 }
 0x357   :  { %1020 = vmatprep.subr.bf16.mxu0 %v2114_v30  ;;  %1726 = vmatprep.subr.bf16.mxu1 %v2685_v7 }
 0x35a   :  { %1021 = vmatpush1.bf16.msra.mxu0 %v2123_v32  ;;  %1727 = vmatpush3.bf16.msra.mxu1 %v2176_v42 }
 0x35b   :  { %1022 = vmatprep.subr.bf16.mxu0 %v2129_v33  ;;  %1728 = vmatprep.subr.bf16.mxu1 %v2685_v7 }
 0x35e   :  { %1023 = vmatpush1.bf16.msra.mxu0 %v2141_v36  ;;  %1729 = vmatpush3.bf16.msra.mxu1 %v2199_v46 }
 0x35f   :  { %1024 = vmatprep.subr.bf16.mxu0 %v2151_v38  ;;  %1730 = vmatprep.subr.bf16.mxu1 %v2685_v7 }
 0x362   :  { %1025 = vmatpush1.bf16.msra.mxu0 %v2164_v40  ;;  %1731 = vmatpush3.bf16.msra.mxu1 %v2220_v49 }
 0x363   :  { %1026 = vmatprep.subr.bf16.mxu0 %v2170_v41  ;;  %1732 = vmatprep.subr.bf16.mxu1 %v2685_v7 }
 0x366   :  { %1027 = vmatpush1.bf16.msra.mxu0 %v2186_v44  ;;  %1733 = vmatpush3.bf16.msra.mxu1 %v2240_v52 }
 0x367   :  { %1028 = vmatprep.subr.bf16.mxu0 %v2193_v45  ;;  %1734 = vmatprep.subr.bf16.mxu1 %v2685_v7 }
 0x36a   :  { %1029 = vmatpush1.bf16.msra.mxu0 %v2208_v47  ;;  %1735 = vmatpush3.bf16.msra.mxu1 %v2251_v54 }
 0x36b   :  { %1030 = vmatprep.subr.bf16.mxu0 %v2214_v48  ;;  %1736 = vmatprep.subr.bf16.mxu1 %v2685_v7 }
 0x36e   :  { %1031 = vmatpush1.bf16.msra.mxu0 %v2227_v50  ;;  %1737 = vmatpush3.bf16.msra.mxu1 %v2261_v55 }
 0x36f   :  { %1126 = vmatprep.subr.bf16.mxu0 %v2084_v24  ;;  %1742 = vmatprep.subr.bf16.mxu1 %v2685_v7 }
 0x424   :  { %v940_v16 = vpop.f32.mrb[28].mxu0  ;;  %v981_v10 = vpop.f32.mrb[20].mxu1 }
 0x425   :  { %v987_v56 = vadd.f32 %v940_v16, %v2311_v14  ;;  %v942_v19 = vpop.f32.mrb[29].mxu0  ;;  %v1720_v23 = vpop.f32.mrb[21].mxu1  ;;  %v1001_v6 = vadd.f32 %v2355_v61, %v981_v10 }
 0x426   :  { %v994_v62 = vadd.f32 %v942_v19, %v2316_v18  ;;  %v944_v63 = vpop.f32.mrb[30].mxu0  ;;  %v984_v0 = vpop.f32.mrb[22].mxu1 }
 0x427   :  { %v1524_v1 = vmul.f32 -1.442695, %v987_v56  ;;  %v945_v34 = vpop.f32.mrb[31].mxu0  ;;  %v1721_v4 = vpop.f32.mrb[23].mxu1 }
 0x428   :  { %v1525_v15 = vmul.f32 -1.442695, %v994_v62 }
 0x429   :  { %1903 = vpow2.f32 %v1524_v1 }
 0x42a   :  { %1905 = vpow2.f32 %v1525_v15 }
 0x433   :  { %v1904_v37 = vpop.eup %1903 }
 0x434   :  { %v991_v21 = vadd.f32 1.0, %v1904_v37  ;;  %v1906_v3 = vpop.eup %1905 }
 0x435   :  { %v998_v12 = vadd.f32 1.0, %v1906_v3 }
 0x436   :  { %1907 = vrcp.f32 %v991_v21 }
 0x437   :  { %1909 = vrcp.f32 %v998_v12 }
 0x440   :  { %v1908_v14 = vpop.eup %1907 }
 0x441   :  { %v1002_v9 = vmul.f32 %v1908_v14, %v1001_v6  ;;  %v1910_v43 = vpop.eup %1909 }
 0x442   :  { %v1005_v11 = vsub.f32 1.0, %v1910_v43  ;;  %v1007_v2 = vmul.f32 %v1910_v43, %v2448_v22 }
 0x443   :  { %v1003_v18 = vadd.f32 %v1002_v9, %v2319_v20 }
 0x445   :  { %1911 = vtanh.f32 %v1003_v18 }
 0x44f   :  { %v1912_v58 = vpop.eup %1911 }
 0x450   :  { %v1006_v51 = vmul.f32 %v1912_v58, %v1005_v11 }
 0x452   :  { %v2492_v5 = vadd.f32 %v1007_v2, %v1006_v51 }
 0x454   :  { %v1015_v13 = vpack.c.bf16 %v2492_v5, %v2492_v5 }
 0x456   :  { %1049 = vmatmul.mubr.bf16.vlgmr.msra.gmra.mrb[32].mxu0 %v1015_v13  ;;  %1739 = vmatmul.mubr.bf16.vlgmr.msra.gmra.mrb[24].mxu1 %v1015_v13 }
 0x457   :  { %1127 = vmatpush1.bf16.msra.mxu0 %v2092_v26  ;;  %1743 = vmatpush3.bf16.msra.mxu1 %v2135_v35 }
 0x458   :  { %1128 = vmatprep.subr.bf16.mxu0 %v2098_v27  ;;  %1744 = vmatprep.subr.bf16.mxu1 %v2685_v7 }
 0x459   :  { %1158 = vmatprep.mubr.bf16.mxu0 %v2686_v17  ;;  %1758 = vmatprep.mubr.msk.bf16.mxu1 %vm1975_vm0, %v2685_v7 }
 0x45b   :  { %1129 = vmatpush1.bf16.msra.mxu0 %v2107_v29  ;;  %1745 = vmatpush3.bf16.msra.mxu1 %v2157_v39 }
 0x45c   :  { %1130 = vmatprep.subr.bf16.mxu0 %v2114_v30  ;;  %1746 = vmatprep.subr.bf16.mxu1 %v2685_v7 }
 0x45f   :  { %1131 = vmatpush1.bf16.msra.mxu0 %v2123_v32  ;;  %1747 = vmatpush3.bf16.msra.mxu1 %v2176_v42 }
 0x460   :  { %1132 = vmatprep.subr.bf16.mxu0 %v2129_v33  ;;  %1748 = vmatprep.subr.bf16.mxu1 %v2685_v7 }
 0x463   :  { %1133 = vmatpush1.bf16.msra.mxu0 %v2141_v36  ;;  %1749 = vmatpush3.bf16.msra.mxu1 %v2199_v46 }
 0x464   :  { %1134 = vmatprep.subr.bf16.mxu0 %v2151_v38  ;;  %1750 = vmatprep.subr.bf16.mxu1 %v2685_v7 }
 0x467   :  { %1135 = vmatpush1.bf16.msra.mxu0 %v2164_v40  ;;  %1751 = vmatpush3.bf16.msra.mxu1 %v2220_v49 }
 0x468   :  { %1136 = vmatprep.subr.bf16.mxu0 %v2170_v41  ;;  %1752 = vmatprep.subr.bf16.mxu1 %v2685_v7 }
 0x46b   :  { %1137 = vmatpush1.bf16.msra.mxu0 %v2186_v44  ;;  %1753 = vmatpush3.bf16.msra.mxu1 %v2240_v52 }
 0x46c   :  { %1138 = vmatprep.subr.bf16.mxu0 %v2193_v45  ;;  %1754 = vmatprep.subr.bf16.mxu1 %v2685_v7 }
 0x46f   :  { %1139 = vmatpush1.bf16.msra.mxu0 %v2208_v47  ;;  %1755 = vmatpush3.bf16.msra.mxu1 %v2251_v54 }
 0x470   :  { %1140 = vmatprep.subr.bf16.mxu0 %v2214_v48  ;;  %1756 = vmatprep.subr.bf16.mxu1 %v2685_v7 }
 0x473   :  { %1141 = vmatpush1.bf16.msra.mxu0 %v2227_v50  ;;  %1757 = vmatpush3.bf16.msra.mxu1 %v2261_v55 }
 0x474   :  { %1236 = vmatprep.subr.bf16.mxu0 %v2084_v24  ;;  %1762 = vmatprep.subr.bf16.mxu1 %v2685_v7 }
 0x529   :  { %v1050_v20 = vpop.f32.mrb[32].mxu0  ;;  %v1091_v22 = vpop.f32.mrb[24].mxu1 }
 0x52a   :  { %v1097_v57 = vadd.f32 %v1050_v20, %v2324_v25  ;;  %v1052_v16 = vpop.f32.mrb[33].mxu0  ;;  %v1740_v10 = vpop.f32.mrb[25].mxu1  ;;  %v1111_v37 = vadd.f32 %v2355_v61, %v1091_v22  ;;  %v1954_v20 = vld [vmem:[%s2671_s3] ss:$12 sps:$4 sm:$0xff]   ;;  %v1956_v22 = vld [vmem:[%s2671_s3 + $0x1c] ss:$12 sps:$4 sm:$0xff]  }
 0x52b   :  { %v1104_v56 = vadd.f32 %v1052_v16, %v2326_v31  ;;  %v1054_v19 = vpop.f32.mrb[34].mxu0  ;;  %v1094_v23 = vpop.f32.mrb[26].mxu1  ;;  %v1958_v16 = vld [vmem:[%s2671_s3 + $0x20] ss:$12 sps:$4 sm:$0xff]  }
 0x52c   :  { %v1526_v62 = vmul.f32 -1.442695, %v1097_v57  ;;  %v1055_v63 = vpop.f32.mrb[35].mxu0  ;;  %v1741_v0 = vpop.f32.mrb[27].mxu1  ;;  %v1957_v57 = vld [vmem:[%s2671_s3 + $0x18] ss:$12 sps:$4 sm:$0xff]  }
 0x52d   :  { %v1527_v1 = vmul.f32 -1.442695, %v1104_v56  ;;  %v1959_v10 = vld [vmem:[%s2671_s3 + $0x34] ss:$12 sps:$4 sm:$0xff]   ;;  %v1961_v56 = vld [vmem:[%s2671_s3 + $0x38] ss:$12 sps:$4 sm:$0xff]  }
 0x52e   :  { %1913 = vpow2.f32 %v1526_v62  ;;  %v1962_v19 = vld [vmem:[%s2671_s3 + $0x4c] ss:$12 sps:$4 sm:$0xff]   ;;  %v1963_v23 = vld [vmem:[%s2671_s3 + $0x48] ss:$12 sps:$4 sm:$0xff]   ;;  %v1964_v62 = vld [vmem:[%s2671_s3 + $0x50] ss:$12 sps:$4 sm:$0xff]  }
 0x52f   :  { %1915 = vpow2.f32 %v1527_v1  ;;  %v1965_v63 = vld [vmem:[%s2671_s3 + $0x64] ss:$12 sps:$4 sm:$0xff]   ;;  %v1966_v0 = vld [vmem:[%s2671_s3 + $0x60] ss:$12 sps:$4 sm:$0xff]   ;;  %v1967_v1 = vld [vmem:[%s2671_s3 + $0x7c] ss:$12 sps:$4 sm:$0xff]  }
 0x538   :  { %v1914_v34 = vpop.eup %1913 }
 0x539   :  { %v1101_v24 = vadd.f32 1.0, %v1914_v34  ;;  %v1916_v4 = vpop.eup %1915  ;;  %v1968_v34 = vld [vmem:[%s2671_s3 + $0x78] ss:$12 sps:$4 sm:$0xff]  }
 0x53a   :  { %v1108_v15 = vadd.f32 1.0, %v1916_v4  ;;  %v1971_v4 = vld [vmem:[%s2671_s3 + $0xac] ss:$12 sps:$4 sm:$0xff]  }
 0x53b   :  { %1917 = vrcp.f32 %v1101_v24  ;;  %v1969_v24 = vld [vmem:[%s2671_s3 + $0x94] ss:$12 sps:$4 sm:$0xff]  }
 0x53c   :  { %1919 = vrcp.f32 %v1108_v15 }
 0x545   :  { %v1918_v25 = vpop.eup %1917 }
 0x546   :  { %v1112_v21 = vmul.f32 %v1918_v25, %v1111_v37  ;;  %v1920_v3 = vpop.eup %1919  ;;  %v2687_v25 = vld [vmem:[#allocation6_spill] sm:$0xff] }
 0x547   :  { %v1115_v12 = vsub.f32 1.0, %v1920_v3  ;;  %v1117_v9 = vmul.f32 %v1920_v3, %v2492_v5  ;;  %v2688_v3 = vld [vmem:[#allocation7_spill] sm:$0xff] }
 0x548   :  { %v1113_v31 = vadd.f32 %v1112_v21, %v2336_v60 }
 0x54a   :  { %1921 = vtanh.f32 %v1113_v31 }
 0x554   :  { %v1922_v6 = vpop.eup %1921 }
 0x555   :  { %v1116_v14 = vmul.f32 %v1922_v6, %v1115_v12 }
 0x557   :  { %v2536_v18 = vadd.f32 %v1117_v9, %v1116_v14 }
 0x559   :  { %v1125_v43 = vpack.c.bf16 %v2536_v18, %v2536_v18 }
 0x55b   :  { %1159 = vmatmul.mubr.bf16.vlgmr.msra.gmra.mrb[36].mxu0 %v1125_v43  ;;  %1759 = vmatmul.mubr.bf16.vlgmr.msra.gmra.mrb[28].mxu1 %v1125_v43 }
 0x55c   :  { %1237 = vmatpush1.bf16.msra.mxu0 %v2092_v26  ;;  %1763 = vmatpush3.bf16.msra.mxu1 %v2135_v35  ;;  %v1953_v26 = vld [vmem:[%s2671_s3 + $0x4] ss:$12 sps:$4 sm:$0xff]  }
 0x55d   :  { %1238 = vmatprep.subr.bf16.mxu0 %v2098_v27  ;;  %1764 = vmatprep.subr.bf16.mxu1 %v2685_v7 }
 0x55e   :  { %1268 = vmatprep.mubr.bf16.mxu0 %v2686_v17  ;;  %1778 = vmatprep.mubr.msk.bf16.mxu1 %vm1975_vm0, %v2685_v7 }
 0x560   :  { %1239 = vmatpush1.bf16.msra.mxu0 %v2107_v29  ;;  %1765 = vmatpush3.bf16.msra.mxu1 %v2157_v39 }
 0x561   :  { %1240 = vmatprep.subr.bf16.mxu0 %v2114_v30  ;;  %1766 = vmatprep.subr.bf16.mxu1 %v2685_v7 }
 0x564   :  { %1241 = vmatpush1.bf16.msra.mxu0 %v2123_v32  ;;  %1767 = vmatpush3.bf16.msra.mxu1 %v2176_v42 }
 0x565   :  { %1242 = vmatprep.subr.bf16.mxu0 %v2129_v33  ;;  %1768 = vmatprep.subr.bf16.mxu1 %v2685_v7 }
 0x568   :  { %1243 = vmatpush1.bf16.msra.mxu0 %v2141_v36  ;;  %1769 = vmatpush3.bf16.msra.mxu1 %v2199_v46 }
 0x569   :  { %1244 = vmatprep.subr.bf16.mxu0 %v2151_v38  ;;  %1770 = vmatprep.subr.bf16.mxu1 %v2685_v7 }
 0x56c   :  { %1245 = vmatpush1.bf16.msra.mxu0 %v2164_v40  ;;  %1771 = vmatpush3.bf16.msra.mxu1 %v2220_v49 }
 0x56d   :  { %1246 = vmatprep.subr.bf16.mxu0 %v2170_v41  ;;  %1772 = vmatprep.subr.bf16.mxu1 %v2685_v7 }
 0x570   :  { %1247 = vmatpush1.bf16.msra.mxu0 %v2186_v44  ;;  %1773 = vmatpush3.bf16.msra.mxu1 %v2240_v52 }
 0x571   :  { %1248 = vmatprep.subr.bf16.mxu0 %v2193_v45  ;;  %1774 = vmatprep.subr.bf16.mxu1 %v2685_v7 }
 0x574   :  { %1249 = vmatpush1.bf16.msra.mxu0 %v2208_v47  ;;  %1775 = vmatpush3.bf16.msra.mxu1 %v2251_v54 }
 0x575   :  { %1250 = vmatprep.subr.bf16.mxu0 %v2214_v48  ;;  %1776 = vmatprep.subr.bf16.mxu1 %v2685_v7 }
 0x578   :  { %1251 = vmatpush1.bf16.msra.mxu0 %v2227_v50  ;;  %1777 = vmatpush3.bf16.msra.mxu1 %v2261_v55 }
 0x579   :  { %1346 = vmatprep.subr.bf16.mxu0 %v1953_v26  ;;  %1782 = vmatprep.subr.bf16.mxu1 %v2685_v7 }
 0x62e   :  { %v1160_v27 = vpop.f32.mrb[36].mxu0  ;;  %v1201_v29 = vpop.f32.mrb[28].mxu1 }
 0x62f   :  { %v1207_v30 = vadd.f32 %v1160_v27, %v2328_v53  ;;  %v1162_v32 = vpop.f32.mrb[37].mxu0  ;;  %v1760_v33 = vpop.f32.mrb[29].mxu1  ;;  %v1221_v48 = vadd.f32 %v2355_v61, %v1201_v29 }
 0x630   :  { %v1214_v35 = vadd.f32 %v1162_v32, %v2333_v59  ;;  %v1164_v36 = vpop.f32.mrb[38].mxu0  ;;  %v1204_v38 = vpop.f32.mrb[30].mxu1 }
 0x631   :  { %v1528_v39 = vmul.f32 -1.442695, %v1207_v30  ;;  %v1165_v40 = vpop.f32.mrb[39].mxu0  ;;  %v1761_v41 = vpop.f32.mrb[31].mxu1 }
 0x632   :  { %v1529_v42 = vmul.f32 -1.442695, %v1214_v35  ;;  %v2689_v35 = vld [vmem:[#allocation4_spill] sm:$0xff] }
 0x633   :  { %1923 = vpow2.f32 %v1528_v39 }
 0x634   :  { %1925 = vpow2.f32 %v1529_v42 }
 0x63d   :  { %v1924_v44 = vpop.eup %1923 }
 0x63e   :  { %v1211_v45 = vadd.f32 1.0, %v1924_v44  ;;  %v1926_v46 = vpop.eup %1925 }
 0x63f   :  { %v1218_v47 = vadd.f32 1.0, %v1926_v46 }
 0x640   :  { %1927 = vrcp.f32 %v1211_v45 }
 0x641   :  { %1929 = vrcp.f32 %v1218_v47 }
 0x64a   :  { %v1928_v50 = vpop.eup %1927 }
 0x64b   :  { %v1222_v53 = vmul.f32 %v1928_v50, %v1221_v48  ;;  %v1930_v60 = vpop.eup %1929  ;;  %v2690_v48 = vld [vmem:[#allocation8_spill] sm:$0xff] }
 0x64c   :  { %v1225_v11 = vsub.f32 1.0, %v1930_v60  ;;  %v1227_v2 = vmul.f32 %v1930_v60, %v2536_v18 }
 0x64d   :  { %v1223_v59 = vadd.f32 %v1222_v53, %v2342_v8  ;;  %v1955_v8 = vld [vmem:[%s2671_s3 + $0x8] ss:$12 sps:$4 sm:$0xff]  }
 0x64f   :  { %1931 = vtanh.f32 %v1223_v59 }
 0x659   :  { %v1932_v58 = vpop.eup %1931 }
 0x65a   :  { %v1226_v51 = vmul.f32 %v1932_v58, %v1225_v11 }
 0x65c   :  { %v2582_v5 = vadd.f32 %v1227_v2, %v1226_v51 }
 0x65e   :  { %v1235_v13 = vpack.c.bf16 %v2582_v5, %v2582_v5 }
 0x660   :  { %1269 = vmatmul.mubr.bf16.vlgmr.msra.gmra.mrb[40].mxu0 %v1235_v13  ;;  %1779 = vmatmul.mubr.bf16.vlgmr.msra.gmra.mrb[32].mxu1 %v1235_v13 }
 0x661   :  { %1347 = vmatpush1.bf16.msra.mxu0 %v1954_v20  ;;  %1783 = vmatpush3.bf16.msra.mxu1 %v1955_v8 }
 0x662   :  { %1348 = vmatprep.subr.bf16.mxu0 %v1956_v22  ;;  %1784 = vmatprep.subr.bf16.mxu1 %v2685_v7 }
 0x663   :  { %1378 = vmatprep.mubr.bf16.mxu0 %v2686_v17  ;;  %1798 = vmatprep.mubr.msk.bf16.mxu1 %vm1975_vm0, %v2685_v7  ;;  %v1960_v17 = vld [vmem:[%s2671_s3 + $0x30] ss:$12 sps:$4 sm:$0xff]  }
 0x665   :  { %1349 = vmatpush1.bf16.msra.mxu0 %v1957_v57  ;;  %1785 = vmatpush3.bf16.msra.mxu1 %v1958_v16 }
 0x666   :  { %1350 = vmatprep.subr.bf16.mxu0 %v1959_v10  ;;  %1786 = vmatprep.subr.bf16.mxu1 %v2685_v7 }
 0x669   :  { %1351 = vmatpush1.bf16.msra.mxu0 %v1960_v17  ;;  %1787 = vmatpush3.bf16.msra.mxu1 %v1961_v56  ;;  %v2691_v56 = vld [vmem:[#allocation5_spill] sm:$0xff] }
 0x66a   :  { %1352 = vmatprep.subr.bf16.mxu0 %v1962_v19  ;;  %1788 = vmatprep.subr.bf16.mxu1 %v2685_v7 }
 0x66d   :  { %1353 = vmatpush1.bf16.msra.mxu0 %v1963_v23  ;;  %1789 = vmatpush3.bf16.msra.mxu1 %v1964_v62 }
 0x66e   :  { %1354 = vmatprep.subr.bf16.mxu0 %v1965_v63  ;;  %1790 = vmatprep.subr.bf16.mxu1 %v2685_v7 }
 0x671   :  { %1355 = vmatpush1.bf16.msra.mxu0 %v1966_v0  ;;  %1791 = vmatpush3.bf16.msra.mxu1 %v2220_v49  ;;  %v1970_v49 = vld [vmem:[%s2671_s3 + $0x90] ss:$12 sps:$4 sm:$0xff]  }
 0x672   :  { %1356 = vmatprep.subr.bf16.mxu0 %v1967_v1  ;;  %1792 = vmatprep.subr.bf16.mxu1 %v2685_v7 }
 0x675   :  { %1357 = vmatpush1.bf16.msra.mxu0 %v1968_v34  ;;  %1793 = vmatpush3.bf16.msra.mxu1 %v2240_v52  ;;  %v1972_v52 = vld [vmem:[%s2671_s3 + $0xa8] ss:$12 sps:$4 sm:$0xff]  }
 0x676   :  { %1358 = vmatprep.subr.bf16.mxu0 %v1969_v24  ;;  %1794 = vmatprep.subr.bf16.mxu1 %v2685_v7 }
 0x679   :  { %1359 = vmatpush1.bf16.msra.mxu0 %v1970_v49  ;;  %1795 = vmatpush3.bf16.msra.mxu1 %v2251_v54 }
 0x67a   :  { %1360 = vmatprep.subr.bf16.mxu0 %v1971_v4  ;;  %1796 = vmatprep.subr.bf16.mxu1 %v2685_v7 }
 0x67d   :  { %1361 = vmatpush1.bf16.msra.mxu0 %v1972_v52  ;;  %1797 = vmatpush3.bf16.msra.mxu1 %v2261_v55 }
 0x733   :  { %v1270_v15 = vpop.f32.mrb[40].mxu0  ;;  %v1311_v37 = vpop.f32.mrb[32].mxu1 }
 0x734   :  { %v1317_v21 = vadd.f32 %v1270_v15, %v2687_v25  ;;  %v1272_v31 = vpop.f32.mrb[41].mxu0  ;;  %v1780_v54 = vpop.f32.mrb[33].mxu1  ;;  %v1331_v30 = vadd.f32 %v2355_v61, %v1311_v37 }
 0x735   :  { %v1324_v12 = vadd.f32 %v1272_v31, %v2688_v3  ;;  %v1274_v6 = vpop.f32.mrb[42].mxu0  ;;  %v1314_v14 = vpop.f32.mrb[34].mxu1 }
 0x736   :  { %v1530_v9 = vmul.f32 -1.442695, %v1317_v21  ;;  %v1275_v18 = vpop.f32.mrb[43].mxu0  ;;  %v1781_v7 = vpop.f32.mrb[35].mxu1 }
 0x737   :  { %v1531_v43 = vmul.f32 -1.442695, %v1324_v12 }
 0x738   :  { %1933 = vpow2.f32 %v1530_v9 }
 0x739   :  { %1935 = vpow2.f32 %v1531_v43 }
 0x742   :  { %v1934_v26 = vpop.eup %1933 }
 0x743   :  { %v1321_v27 = vadd.f32 1.0, %v1934_v26  ;;  %v1936_v55 = vpop.eup %1935 }
 0x744   :  { %v1328_v29 = vadd.f32 1.0, %v1936_v55 }
 0x745   :  { %1937 = vrcp.f32 %v1321_v27 }
 0x746   :  { %1939 = vrcp.f32 %v1328_v29 }
 0x74f   :  { %v1938_v32 = vpop.eup %1937 }
 0x750   :  { %v1332_v33 = vmul.f32 %v1938_v32, %v1331_v30  ;;  %v1940_v38 = vpop.eup %1939 }
 0x751   :  { %v1335_v39 = vsub.f32 1.0, %v1940_v38  ;;  %v1337_v42 = vmul.f32 %v1940_v38, %v2582_v5 }
 0x752   :  { %v1333_v36 = vadd.f32 %v1332_v33, %v2689_v35 }
 0x754   :  { %1941 = vtanh.f32 %v1333_v36 }
 0x75e   :  { %v1942_v40 = vpop.eup %1941 }
 0x75f   :  { %v1336_v41 = vmul.f32 %v1942_v40, %v1335_v39 }
 0x761   :  { %v1338_v44 = vadd.f32 %v1337_v42, %v1336_v41 }
 0x763   :  { %v1345_v45 = vpack.c.bf16 %v1338_v44, %v1338_v44 }
 0x765   :  { %1379 = vmatmul.mubr.bf16.vlgmr.msra.gmra.mrb[44].mxu0 %v1345_v45  ;;  %1799 = vmatmul.mubr.bf16.vlgmr.msra.gmra.mrb[36].mxu1 %v1345_v45 }
 0x838   :  { %v1380_v46 = vpop.f32.mrb[44].mxu0  ;;  %v1421_v47 = vpop.f32.mrb[36].mxu1 }
 0x839   :  { %v1427_v50 = vadd.f32 %v1380_v46, %v2690_v48  ;;  %v1382_v53 = vpop.f32.mrb[45].mxu0  ;;  %v1800_v59 = vpop.f32.mrb[37].mxu1  ;;  %v1441_v16 = vadd.f32 %v2355_v61, %v1421_v47 }
 0x83a   :  { %v1434_v60 = vadd.f32 %v1382_v53, %v2350_v28  ;;  %v1384_v11 = vpop.f32.mrb[46].mxu0  ;;  %v1424_v58 = vpop.f32.mrb[38].mxu1 }
 0x83b   :  { %v1532_v51 = vmul.f32 -1.442695, %v1427_v50  ;;  %v1385_v2 = vpop.f32.mrb[47].mxu0  ;;  %v1801_v13 = vpop.f32.mrb[39].mxu1 }
 0x83c   :  { %v1533_v20 = vmul.f32 -1.442695, %v1434_v60 }
 0x83d   :  { %1943 = vpow2.f32 %v1532_v51 }
 0x83e   :  { %1945 = vpow2.f32 %v1533_v20 }
 0x847   :  { %v1944_v5 = vpop.eup %1943 }
 0x848   :  { %v1431_v8 = vadd.f32 1.0, %v1944_v5  ;;  %v1946_v22 = vpop.eup %1945 }
 0x849   :  { %v1438_v57 = vadd.f32 1.0, %v1946_v22 }
 0x84a   :  { %1947 = vrcp.f32 %v1431_v8 }
 0x84b   :  { %1949 = vrcp.f32 %v1438_v57 }
 0x854   :  { %v1948_v10 = vpop.eup %1947 }
 0x855   :  { %v1442_v17 = vmul.f32 %v1948_v10, %v1441_v16  ;;  %v1950_v19 = vpop.eup %1949 }
 0x856   :  { %v1445_v23 = vsub.f32 1.0, %v1950_v19  ;;  %v1447_v0 = vmul.f32 %v1950_v19, %v1338_v44 }
 0x857   :  { %v1443_v28 = vadd.f32 %v1442_v17, %v2691_v56 }
 0x859   :  { %1951 = vtanh.f32 %v1443_v28 }
 0x863   :  { %v1952_v62 = vpop.eup %1951 }
 0x864   :  { %v1446_v63 = vmul.f32 %v1952_v62, %v1445_v23 }
 0x866   :  { %v1448_v1 = vadd.f32 %v1447_v0, %v1446_v63 }
 0x868   :  { %1453 = vst [vmem:[%s2675_s6] sm:$0xff] %v1448_v1 }

// kernel: seq2seq_gru_forward.4
= control target key start
LH: loop header
LB: loop body
LE: loop exit
PB: predicated region body
PF: predicated region fallthrough
CT: control target
= control target key end

     0   :  { %v3395_v1 = vmov 0   ;;  %v3396_v36 = vmov 0.0   ;;  %vm3397_vm0 = vmmov 0   ;;  %s4251_s2 = inlined_call_operand.vmem [shape: bf16[128,384], index: 2, kind: input, shape index: {}]   ;;  %s4252_s0 = inlined_call_operand.vmem [shape: bf16[64,128], index: 0, kind: input, shape index: {}]   ;;  %s4253_s3 = inlined_call_operand.vmem [shape: bf16[128,384], index: 3, kind: input, shape index: {}]   ;;  %s4254_s1 = inlined_call_operand.vmem [shape: f32[8,128], index: 1, kind: input, shape index: {}]   ;;  %s4255_s4 = inlined_call_operand.vmem [shape: f32[1,384], index: 4, kind: input, shape index: {}]   ;;  %s4256_s5 = inlined_call_operand.vmem [shape: f32[1,128], index: 5, kind: input, shape index: {}]   ;;  %s4257_s6 = inlined_call_operand.vmem [shape: f32[8,8,128], index: 6, kind: output, shape index: {}]  }
   0x1   :  { %v3167_v0 = vld [vmem:[%s4251_s2 + $0x4] ss:$12 sps:$4 sm:$0xff]   ;;  %271 = vmatprep.mubr.bf16.mxu0 %v3395_v1  ;;  %v3169_v2 = vld [vmem:[%s4251_s2] ss:$12 sps:$4 sm:$0xff]   ;;  %v3170_v3 = vld [vmem:[%s4251_s2 + $0x1c] ss:$12 sps:$4 sm:$0xff]  }
   0x2   :  { %239 = vmatprep.subr.bf16.mxu0 %v3167_v0  ;;  %v3172_v4 = vld [vmem:[%s4251_s2 + $0x18] ss:$12 sps:$4 sm:$0xff]   ;;  %v3173_v5 = vld [vmem:[%s4251_s2 + $0x34] ss:$12 sps:$4 sm:$0xff]   ;;  %v3175_v6 = vld [vmem:[%s4251_s2 + $0x30] ss:$12 sps:$4 sm:$0xff]   ;;  %v72_v0 = vlaneseq }
   0x3   :  { %240 = vmatpush1.bf16.msra.mxu0 %v3169_v2  ;;  %v3176_v7 = vld [vmem:[%s4251_s2 + $0x4c] ss:$12 sps:$4 sm:$0xff]   ;;  %v3187_v8 = vld [vmem:[%s4251_s2 + $0x8] ss:$12 sps:$4 sm:$0xff]   ;;  %v3179_v10 = vld [vmem:[%s4251_s2 + $0x64] ss:$12 sps:$4 sm:$0xff]  }
   0x4   :  { %241 = vmatprep.subr.bf16.mxu0 %v3170_v3  ;;  %v3178_v9 = vld [vmem:[%s4251_s2 + $0x48] ss:$12 sps:$4 sm:$0xff]   ;;  %2980 = vmatprep.subr.bf16.mxu1 %v3187_v8  ;;  %v3191_v11 = vld [vmem:[%s4251_s2 + $0x20] ss:$12 sps:$4 sm:$0xff]   ;;  %v3194_v13 = vld [vmem:[%s4251_s2 + $0x38] ss:$12 sps:$4 sm:$0xff]  }
   0x5   :  { %2981 = vmatpush3.bf16.msra.mxu1 %v3187_v8  ;;  %v3193_v12 = vld [vmem:[%s4252_s0] sm:$0xff]   ;;  %v3182_v15 = vld [vmem:[%s4251_s2 + $0x7c] ss:$12 sps:$4 sm:$0xff]   ;;  %v3189_v21 = vld [vmem:[%s4251_s2 + $0xac] ss:$12 sps:$4 sm:$0xff]   ;;  %v73_v2 = vshrl.u32 %v72_v0, 7 }
   0x6   :  { %2982 = vmatprep.subr.bf16.mxu1 %v3191_v11  ;;  %v3181_v14 = vld [vmem:[%s4251_s2 + $0x60] ss:$12 sps:$4 sm:$0xff]   ;;  %2996 = vmatprep.mubr.bf16.mxu1 %v3193_v12  ;;  %v3198_v16 = vld [vmem:[%s4251_s2 + $0x50] ss:$12 sps:$4 sm:$0xff]   ;;  %v3184_v17 = vld [vmem:[%s4251_s2 + $0x78] ss:$12 sps:$4 sm:$0xff]  }
   0x7   :  { %242 = vmatpush1.bf16.msra.mxu0 %v3172_v4  ;;  %v3185_v18 = vld [vmem:[%s4251_s2 + $0x94] ss:$12 sps:$4 sm:$0xff]   ;;  %v3188_v20 = vld [vmem:[%s4251_s2 + $0x90] ss:$12 sps:$4 sm:$0xff]   ;;  %v3212_v25 = vld [vmem:[%s4251_s2 + $0x98] ss:$12 sps:$4 sm:$0xff]  }
   0x8   :  { %243 = vmatprep.subr.bf16.mxu0 %v3173_v5  ;;  %v3203_v19 = vld [vmem:[%s4251_s2 + $0x68] ss:$12 sps:$4 sm:$0xff]   ;;  %v3207_v22 = vld [vmem:[%s4251_s2 + $0x80] ss:$12 sps:$4 sm:$0xff]   ;;  %v3506_v24 = vld [vmem:[%s4253_s3 + $0x4] ss:$12 sps:$4 sm:$0xff]  }
   0x9   :  { %2983 = vmatpush3.bf16.msra.mxu1 %v3191_v11  ;;  %v3192_v23 = vld [vmem:[%s4251_s2 + $0xa8] ss:$12 sps:$4 sm:$0xff]   ;;  %v3514_v26 = vld [vmem:[%s4253_s3] ss:$12 sps:$4 sm:$0xff]   ;;  %v3216_v28 = vld [vmem:[%s4251_s2 + $0xb0] ss:$12 sps:$4 sm:$0xff]  }
   0xa   :  { %2984 = vmatprep.subr.bf16.mxu1 %v3194_v13  ;;  %v3520_v27 = vld [vmem:[%s4253_s3 + $0x1c] ss:$12 sps:$4 sm:$0xff]   ;;  %v3529_v29 = vld [vmem:[%s4253_s3 + $0x18] ss:$12 sps:$4 sm:$0xff]   ;;  %v3536_v30 = vld [vmem:[%s4253_s3 + $0x34] ss:$12 sps:$4 sm:$0xff]  }
   0xb   :  { %244 = vmatpush1.bf16.msra.mxu0 %v3175_v6  ;;  %v3202_v31 = vld [vmem:[%s4252_s0 + $0x8] sm:$0xff]   ;;  %v3545_v32 = vld [vmem:[%s4253_s3 + $0x30] ss:$12 sps:$4 sm:$0xff]   ;;  %v3229_v42 = vld [vmem:[%s4253_s3 + $0x38] ss:$12 sps:$4 sm:$0xff]   ;;  %v74_v3 = vsub.s32 0, %v73_v2 }
   0xc   :  { %245 = vmatprep.subr.bf16.mxu0 %v3176_v7  ;;  %v3551_v33 = vld [vmem:[%s4253_s3 + $0x4c] ss:$12 sps:$4 sm:$0xff]   ;;  %v3556_v34 = vld [vmem:[%s4253_s3 + $0x48] ss:$12 sps:$4 sm:$0xff]   ;;  %v3568_v38 = vld [vmem:[%s4253_s3 + $0x64] ss:$12 sps:$4 sm:$0xff]  }
   0xd   :  { %2985 = vmatpush3.bf16.msra.mxu1 %v3194_v13  ;;  %v3211_v35 = vld [vmem:[%s4252_s0 + $0x10] sm:$0xff]   ;;  %v3228_v39 = vld [vmem:[%s4253_s3 + $0x20] ss:$12 sps:$4 sm:$0xff]   ;;  %v3584_v41 = vld [vmem:[%s4253_s3 + $0x7c] ss:$12 sps:$4 sm:$0xff]   ;;  %v78_v5 = vsub.s32 1, %v73_v2 }
   0xe   :  { %2986 = vmatprep.subr.bf16.mxu1 %v3198_v16  ;;  %v3224_v37 = vld [vmem:[%s4253_s3 + $0x8] ss:$12 sps:$4 sm:$0xff]   ;;  %v3579_v40 = vld [vmem:[%s4253_s3 + $0x60] ss:$12 sps:$4 sm:$0xff]   ;;  %v3220_v43 = vld [vmem:[%s4252_s0 + $0x18] sm:$0xff]   ;;  %v82_v13 = vsub.s32 2, %v73_v2 }
   0xf   :  { %246 = vmatpush1.bf16.msra.mxu0 %v3178_v9  ;;  %v3598_v44 = vld [vmem:[%s4253_s3 + $0x78] ss:$12 sps:$4 sm:$0xff]   ;;  %v3603_v45 = vld [vmem:[%s4253_s3 + $0x94] ss:$12 sps:$4 sm:$0xff]   ;;  %v3230_v46 = vld [vmem:[%s4253_s3 + $0x50] ss:$12 sps:$4 sm:$0xff]  }
  0x10   :  { %247 = vmatprep.subr.bf16.mxu0 %v3179_v10  ;;  %v3615_v47 = vld [vmem:[%s4253_s3 + $0x90] ss:$12 sps:$4 sm:$0xff]   ;;  %v3622_v48 = vld [vmem:[%s4253_s3 + $0xac] ss:$12 sps:$4 sm:$0xff]   ;;  %v3231_v49 = vld [vmem:[%s4253_s3 + $0x68] ss:$12 sps:$4 sm:$0xff]  }
  0x11   :  { %2987 = vmatpush3.bf16.msra.mxu1 %v3198_v16  ;;  %v3633_v50 = vld [vmem:[%s4253_s3 + $0xa8] ss:$12 sps:$4 sm:$0xff]   ;;  %v3638_v51 = vld [vmem:[%s4254_s1] sm:$0xff]  ;;  %v3234_v55 = vld [vmem:[%s4253_s3 + $0xb0] ss:$12 sps:$4 sm:$0xff]  }
  0x12   :  { %2988 = vmatprep.subr.bf16.mxu1 %v3203_v19  ;;  %v3232_v52 = vld [vmem:[%s4253_s3 + $0x80] ss:$12 sps:$4 sm:$0xff]   ;;  %v408_v53 = vpack.c.bf16 %v3638_v51, %v3638_v51  ;;  %v3233_v54 = vld [vmem:[%s4253_s3 + $0x98] ss:$12 sps:$4 sm:$0xff]   ;;  %v3235_v56 = vld [vmem:[%s4253_s3 + $0x8] ss:$12 sps:$4 sm:$0xff]  }
  0x13   :  { %248 = vmatpush1.bf16.msra.mxu0 %v3181_v14  ;;  %v3236_v57 = vld [vmem:[%s4253_s3 + $0x20] ss:$12 sps:$4 sm:$0xff]   ;;  %v3237_v58 = vld [vmem:[%s4253_s3 + $0x38] ss:$12 sps:$4 sm:$0xff]   ;;  %v3238_v59 = vld [vmem:[%s4253_s3 + $0x50] ss:$12 sps:$4 sm:$0xff]  }
  0x14   :  { %249 = vmatprep.subr.bf16.mxu0 %v3182_v15  ;;  %v3239_v60 = vld [vmem:[%s4253_s3 + $0x68] ss:$12 sps:$4 sm:$0xff]   ;;  %v3240_v61 = vld [vmem:[%s4253_s3 + $0x80] ss:$12 sps:$4 sm:$0xff]   ;;  %v3241_v62 = vld [vmem:[%s4253_s3 + $0x98] ss:$12 sps:$4 sm:$0xff]  }
  0x15   :  { %2989 = vmatpush3.bf16.msra.mxu1 %v3203_v19  ;;  %v3242_v63 = vld [vmem:[%s4253_s3 + $0xb0] ss:$12 sps:$4 sm:$0xff]   ;;  %v70_v4 = vld [vmem:[%s4255_s4] sm:$0x7] }
  0x16   :  { %2990 = vmatprep.subr.bf16.mxu1 %v3207_v22  ;;  %v75_v7 = vrot.slane %v70_v4, %v74_v3  ;;  %v79_v9 = vrot.slane %v70_v4, %v78_v5  ;;  %v3719_v15 = vrot.slane %v70_v4, %v82_v13 }
  0x17   :  { %250 = vmatpush1.bf16.msra.mxu0 %v3184_v17 }
  0x18   :  { %251 = vmatprep.subr.bf16.mxu0 %v3185_v18 }
  0x19   :  { %2991 = vmatpush3.bf16.msra.mxu1 %v3207_v22 }
  0x1a   :  { %2992 = vmatprep.subr.bf16.mxu1 %v3212_v25 }
  0x1b   :  { %252 = vmatpush1.bf16.msra.mxu0 %v3188_v20 }
  0x1c   :  { %253 = vmatprep.subr.bf16.mxu0 %v3189_v21 }
  0x1d   :  { %2993 = vmatpush3.bf16.msra.mxu1 %v3212_v25 }
  0x1e   :  { %2994 = vmatprep.subr.bf16.mxu1 %v3216_v28 }
  0x1f   :  { %254 = vmatpush1.bf16.msra.mxu0 %v3192_v23 }
  0x20   :  { %569 = vmatprep.subr.bf16.mxu0 %v3506_v24 }
  0x21   :  { %2995 = vmatpush3.bf16.msra.mxu1 %v3216_v28 }
  0x22   :  { %272 = vmatmul.mubr.bf16.vlgmr.msra.gmra.mrb[0].mxu0 %v3193_v12  ;;  %3004 = vmatprep.subr.bf16.mxu1 %v3396_v36 }
  0x23   :  { %570 = vmatpush1.bf16.msra.mxu0 %v3514_v26  ;;  %281 = vmatprep.mubr.bf16.mxu0 %v3395_v1 }
  0x24   :  { %571 = vmatprep.subr.bf16.mxu0 %v3520_v27  ;;  %2997 = vmatmul.mubr.bf16.vlgmr.msra.gmra.mrb[0].mxu1 %v3202_v31 }
  0x25   :  { %3005 = vmatpush3.bf16.msra.mxu1 %v3224_v37  ;;  %3000 = vmatprep.mubr.bf16.mxu1 %v3211_v35 }
  0x26   :  { %3006 = vmatprep.subr.bf16.mxu1 %v3396_v36 }
  0x27   :  { %572 = vmatpush1.bf16.msra.mxu0 %v3529_v29 }
  0x28   :  { %573 = vmatprep.subr.bf16.mxu0 %v3536_v30 }
  0x29   :  { %3007 = vmatpush3.bf16.msra.mxu1 %v3228_v39 }
  0x2a   :  { %282 = vmatmul.mubr.bf16.gmra.mrb[4].mxu0 %v3202_v31  ;;  %3008 = vmatprep.subr.bf16.mxu1 %v3396_v36 }
  0x2b   :  { %574 = vmatpush1.bf16.msra.mxu0 %v3545_v32  ;;  %291 = vmatprep.mubr.bf16.mxu0 %v3395_v1 }
  0x2c   :  { %575 = vmatprep.subr.bf16.mxu0 %v3551_v33  ;;  %3001 = vmatmul.mubr.bf16.gmra.mrb[4].mxu1 %v3220_v43 }
  0x2d   :  { %3009 = vmatpush3.bf16.msra.mxu1 %v3229_v42  ;;  %3020 = vmatprep.mubr.msk.bf16.mxu1 %vm3397_vm0, %v3396_v36 }
  0x2e   :  { %3010 = vmatprep.subr.bf16.mxu1 %v3396_v36 }
  0x2f   :  { %576 = vmatpush1.bf16.msra.mxu0 %v3556_v34 }
  0x30   :  { %577 = vmatprep.subr.bf16.mxu0 %v3568_v38 }
  0x31   :  { %3011 = vmatpush3.bf16.msra.mxu1 %v3230_v46 }
  0x32   :  { %292 = vmatmul.mubr.bf16.gmra.mrb[8].mxu0 %v3211_v35  ;;  %3012 = vmatprep.subr.bf16.mxu1 %v3396_v36 }
  0x33   :  { %578 = vmatpush1.bf16.msra.mxu0 %v3579_v40  ;;  %301 = vmatprep.mubr.bf16.mxu0 %v3395_v1 }
  0x34   :  { %579 = vmatprep.subr.bf16.mxu0 %v3584_v41 }
  0x35   :  { %3013 = vmatpush3.bf16.msra.mxu1 %v3231_v49 }
  0x36   :  { %3014 = vmatprep.subr.bf16.mxu1 %v3396_v36 }
  0x37   :  { %580 = vmatpush1.bf16.msra.mxu0 %v3598_v44 }
  0x38   :  { %581 = vmatprep.subr.bf16.mxu0 %v3603_v45 }
  0x39   :  { %3015 = vmatpush3.bf16.msra.mxu1 %v3232_v52 }
  0x3a   :  { %302 = vmatmul.mubr.bf16.gmra.mrb[12].mxu0 %v3220_v43  ;;  %3016 = vmatprep.subr.bf16.mxu1 %v3396_v36 }
  0x3b   :  { %582 = vmatpush1.bf16.msra.mxu0 %v3615_v47  ;;  %601 = vmatprep.mubr.bf16.mxu0 %v3395_v1 }
  0x3c   :  { %583 = vmatprep.subr.bf16.mxu0 %v3622_v48 }
  0x3d   :  { %3017 = vmatpush3.bf16.msra.mxu1 %v3233_v54 }
  0x3e   :  { %3018 = vmatprep.subr.bf16.mxu1 %v3396_v36 }
  0x3f   :  { %584 = vmatpush1.bf16.msra.mxu0 %v3633_v50 }
  0x40   :  { %847 = vmatprep.subr.bf16.mxu0 %v3506_v24 }
  0x41   :  { %3019 = vmatpush3.bf16.msra.mxu1 %v3234_v55 }
  0x42   :  { %602 = vmatmul.mubr.bf16.vlgmr.msra.gmra.mrb[16].mxu0 %v408_v53  ;;  %3024 = vmatprep.subr.bf16.mxu1 %v3396_v36 }
  0x43   :  { %848 = vmatpush1.bf16.msra.mxu0 %v3514_v26  ;;  %879 = vmatprep.mubr.bf16.mxu0 %v3395_v1 }
  0x44   :  { %849 = vmatprep.subr.bf16.mxu0 %v3520_v27  ;;  %3021 = vmatmul.mubr.bf16.vlgmr.msra.gmra.mrb[8].mxu1 %v408_v53 }
  0x45   :  { %3040 = vmatprep.mubr.msk.bf16.mxu1 %vm3397_vm0, %v3396_v36  ;;  %3025 = vmatpush3.bf16.msra.mxu1 %v3235_v56 }
  0x46   :  { %3026 = vmatprep.subr.bf16.mxu1 %v3396_v36 }
  0x47   :  { %850 = vmatpush1.bf16.msra.mxu0 %v3529_v29 }
  0x48   :  { %851 = vmatprep.subr.bf16.mxu0 %v3536_v30 }
  0x49   :  { %3027 = vmatpush3.bf16.msra.mxu1 %v3236_v57 }
  0x4a   :  { %3028 = vmatprep.subr.bf16.mxu1 %v3396_v36 }
  0x4b   :  { %852 = vmatpush1.bf16.msra.mxu0 %v3545_v32 }
  0x4c   :  { %853 = vmatprep.subr.bf16.mxu0 %v3551_v33 }
  0x4d   :  { %3029 = vmatpush3.bf16.msra.mxu1 %v3237_v58 }
  0x4e   :  { %3030 = vmatprep.subr.bf16.mxu1 %v3396_v36 }
  0x4f   :  { %854 = vmatpush1.bf16.msra.mxu0 %v3556_v34 }
  0x50   :  { %855 = vmatprep.subr.bf16.mxu0 %v3568_v38 }
  0x51   :  { %3031 = vmatpush3.bf16.msra.mxu1 %v3238_v59 }
  0x52   :  { %3032 = vmatprep.subr.bf16.mxu1 %v3396_v36 }
  0x53   :  { %856 = vmatpush1.bf16.msra.mxu0 %v3579_v40 }
  0x54   :  { %857 = vmatprep.subr.bf16.mxu0 %v3584_v41 }
  0x55   :  { %3033 = vmatpush3.bf16.msra.mxu1 %v3239_v60 }
  0x56   :  { %3034 = vmatprep.subr.bf16.mxu1 %v3396_v36 }
  0x57   :  { %858 = vmatpush1.bf16.msra.mxu0 %v3598_v44 }
  0x58   :  { %859 = vmatprep.subr.bf16.mxu0 %v3603_v45 }
  0x59   :  { %3035 = vmatpush3.bf16.msra.mxu1 %v3240_v61 }
  0x5a   :  { %3036 = vmatprep.subr.bf16.mxu1 %v3396_v36 }
  0x5b   :  { %860 = vmatpush1.bf16.msra.mxu0 %v3615_v47 }
  0x5c   :  { %861 = vmatprep.subr.bf16.mxu0 %v3622_v48 }
  0x5d   :  { %3037 = vmatpush3.bf16.msra.mxu1 %v3241_v62 }
  0x5e   :  { %3038 = vmatprep.subr.bf16.mxu1 %v3396_v36 }
  0x5f   :  { %862 = vmatpush1.bf16.msra.mxu0 %v3633_v50 }
  0x60   :  { %1126 = vmatprep.subr.bf16.mxu0 %v3506_v24 }
  0x61   :  { %3039 = vmatpush3.bf16.msra.mxu1 %v3242_v63 }
  0x62   :  { %3044 = vmatprep.subr.bf16.mxu1 %v3396_v36 }
  0xf5   :  { %v273_v6 = vpop.f32.mrb[0].mxu0 }
  0xf6   :  { %v275_v8 = vpop.f32.mrb[1].mxu0 }
  0xf7   :  { %v277_v10 = vpop.f32.mrb[2].mxu0  ;;  %v2998_v21 = vpop.f32.mrb[0].mxu1 }
  0xf8   :  { %v3715_v11 = vadd.f32 %v277_v10, %v75_v7  ;;  %v279_v12 = vpop.f32.mrb[3].mxu0  ;;  %v3728_v25 = vadd.f32 %v2998_v21, %v3719_v15  ;;  %v346_v28 = vpop.f32.mrb[1].mxu1 }
  0xf9   :  { %v3717_v14 = vadd.f32 %v279_v12, %v79_v9  ;;  %v2999_v35 = vpop.f32.mrb[2].mxu1 }
  0xfa   :  { %v3733_v37 = vadd.f32 %v2999_v35, %v3719_v15  ;;  %v349_v39 = vpop.f32.mrb[3].mxu1 }
  0xfb   :  { %v3736_v42 = vadd.f32 %v349_v39, %v3719_v15 }
  0xfd   :  { %v283_v16 = vpop.f32.mrb[4].mxu0 }
  0xfe   :  { %v3721_v17 = vadd.f32 %v283_v16, %v75_v7  ;;  %v285_v18 = vpop.f32.mrb[5].mxu0 }
  0xff   :  { %v3723_v19 = vadd.f32 %v285_v18, %v79_v9  ;;  %v287_v20 = vpop.f32.mrb[6].mxu0  ;;  %v3002_v54 = vpop.f32.mrb[4].mxu1  ;;  %v274_v18 = vadd.f32 %v273_v6, %v75_v7  ;;  %v3769_v6 = vld [vmem:[%s4256_s5] ss:$0 sm:$0xff] }
 0x100   :  { %v3725_v22 = vadd.f32 %v287_v20, %v75_v7  ;;  %v289_v23 = vpop.f32.mrb[7].mxu0  ;;  %v3745_v57 = vadd.f32 %v3002_v54, %v3719_v15  ;;  %v362_v58 = vpop.f32.mrb[5].mxu1  ;;  %v276_v20 = vadd.f32 %v275_v8, %v79_v9 }
 0x101   :  { %v3730_v31 = vadd.f32 %v289_v23, %v79_v9  ;;  %v3750_v60 = vadd.f32 %v362_v58, %v3719_v15  ;;  %v3003_v61 = vpop.f32.mrb[6].mxu1 }
 0x102   :  { %v3753_v62 = vadd.f32 %v3003_v61, %v3719_v15  ;;  %v365_v63 = vpop.f32.mrb[7].mxu1 }
 0x103   :  { %v3756_v0 = vadd.f32 %v365_v63, %v3719_v15 }
 0x105   :  { %v293_v43 = vpop.f32.mrb[8].mxu0 }
 0x106   :  { %v3738_v46 = vadd.f32 %v293_v43, %v75_v7  ;;  %v295_v49 = vpop.f32.mrb[9].mxu0 }
 0x107   :  { %v3740_v52 = vadd.f32 %v295_v49, %v79_v9  ;;  %v297_v53 = vpop.f32.mrb[10].mxu0 }
 0x108   :  { %v3742_v55 = vadd.f32 %v297_v53, %v75_v7  ;;  %v299_v56 = vpop.f32.mrb[11].mxu0 }
 0x109   :  { %v3747_v59 = vadd.f32 %v299_v56, %v79_v9 }
 0x10d   :  { %v303_v2 = vpop.f32.mrb[12].mxu0 }
 0x10e   :  { %v3758_v3 = vadd.f32 %v303_v2, %v75_v7  ;;  %v305_v4 = vpop.f32.mrb[13].mxu0 }
 0x10f   :  { %v3760_v5 = vadd.f32 %v305_v4, %v79_v9  ;;  %v307_v10 = vpop.f32.mrb[14].mxu0 }
 0x110   :  { %v3762_v12 = vadd.f32 %v307_v10, %v75_v7  ;;  %v309_v13 = vpop.f32.mrb[15].mxu0 }
 0x111   :  { %v3764_v16 = vadd.f32 %v309_v13, %v79_v9  ;;  %v347_v13 = vadd.f32 %v346_v28, %v3719_v15  ;;  %v3244_v28 = vld [vmem:[%s4253_s3 + $0x20] ss:$12 sps:$4 sm:$0xff]  }
 0x115   :  { %v603_v21 = vpop.f32.mrb[16].mxu0 }
 0x116   :  { %v650_v23 = vadd.f32 %v603_v21, %v274_v18  ;;  %v605_v35 = vpop.f32.mrb[17].mxu0 }
 0x117   :  { %v657_v39 = vadd.f32 %v605_v35, %v276_v20  ;;  %v607_v43 = vpop.f32.mrb[18].mxu0  ;;  %v644_v56 = vpop.f32.mrb[8].mxu1 }
 0x118   :  { %v2697_v49 = vmul.f32 -1.442695, %v650_v23  ;;  %v608_v53 = vpop.f32.mrb[19].mxu0  ;;  %v3022_v58 = vpop.f32.mrb[9].mxu1  ;;  %v671_v8 = vadd.f32 %v3769_v6, %v644_v56  ;;  %v3248_v56 = vld [vmem:[%s4253_s3 + $0x80] ss:$12 sps:$4 sm:$0xff]  }
 0x119   :  { %v2698_v54 = vmul.f32 -1.442695, %v657_v39  ;;  %v647_v61 = vpop.f32.mrb[10].mxu1  ;;  %v3245_v53 = vld [vmem:[%s4253_s3 + $0x38] ss:$12 sps:$4 sm:$0xff]  }
 0x11a   :  { %3315 = vpow2.f32 %v2697_v49  ;;  %v3023_v63 = vpop.f32.mrb[11].mxu1  ;;  %v3249_v58 = vld [vmem:[%s4253_s3 + $0x98] ss:$12 sps:$4 sm:$0xff]   ;;  %v3250_v61 = vld [vmem:[%s4253_s3 + $0xb0] ss:$12 sps:$4 sm:$0xff]  }
 0x11b   :  { %3317 = vpow2.f32 %v2698_v54  ;;  %v3247_v54 = vld [vmem:[%s4253_s3 + $0x68] ss:$12 sps:$4 sm:$0xff]  }
 0x124   :  { %v3316_v2 = vpop.eup %3315 }
 0x125   :  { %v654_v4 = vadd.f32 1.0, %v3316_v2  ;;  %v3318_v10 = vpop.eup %3317 }
 0x126   :  { %v661_v7 = vadd.f32 1.0, %v3318_v10 }
 0x127   :  { %3319 = vrcp.f32 %v654_v4 }
 0x128   :  { %3321 = vrcp.f32 %v661_v7 }
 0x131   :  { %v3320_v9 = vpop.eup %3319 }
 0x132   :  { %v672_v18 = vmul.f32 %v3320_v9, %v671_v8  ;;  %v3322_v21 = vpop.eup %3321 }
 0x133   :  { %v675_v23 = vsub.f32 1.0, %v3322_v21  ;;  %v677_v43 = vmul.f32 %v3322_v21, %v3638_v51  ;;  %v3243_v51 = vld [vmem:[%s4253_s3 + $0x8] ss:$12 sps:$4 sm:$0xff]  }
 0x134   :  { %v673_v20 = vadd.f32 %v672_v18, %v347_v13 }
 0x136   :  { %3323 = vtanh.f32 %v673_v20 }
 0x140   :  { %v3324_v35 = vpop.eup %3323 }
 0x141   :  { %v676_v39 = vmul.f32 %v3324_v35, %v675_v23 }
 0x143   :  { %v3774_v49 = vadd.f32 %v677_v43, %v676_v39 }
 0x145   :  { %679 = vst [vmem:[%s4257_s6] sm:$0xff] %v3774_v49  ;;  %v686_v15 = vpack.c.bf16 %v3774_v49, %v3774_v49 }
 0x147   :  { %880 = vmatmul.mubr.bf16.vlgmr.msra.gmra.mrb[20].mxu0 %v686_v15  ;;  %3041 = vmatmul.mubr.bf16.vlgmr.msra.gmra.mrb[12].mxu1 %v686_v15 }
 0x148   :  { %1127 = vmatpush1.bf16.msra.mxu0 %v3514_v26  ;;  %1158 = vmatprep.mubr.bf16.mxu0 %v3395_v1 }
 0x149   :  { %1128 = vmatprep.subr.bf16.mxu0 %v3520_v27  ;;  %3060 = vmatprep.mubr.msk.bf16.mxu1 %vm3397_vm0, %v3396_v36 }
 0x14a   :  { %3045 = vmatpush3.bf16.msra.mxu1 %v3243_v51 }
 0x14b   :  { %3046 = vmatprep.subr.bf16.mxu1 %v3396_v36 }
 0x14c   :  { %1129 = vmatpush1.bf16.msra.mxu0 %v3529_v29 }
 0x14d   :  { %1130 = vmatprep.subr.bf16.mxu0 %v3536_v30 }
 0x14e   :  { %3047 = vmatpush3.bf16.msra.mxu1 %v3244_v28 }
 0x14f   :  { %3048 = vmatprep.subr.bf16.mxu1 %v3396_v36 }
 0x150   :  { %1131 = vmatpush1.bf16.msra.mxu0 %v3545_v32 }
 0x151   :  { %1132 = vmatprep.subr.bf16.mxu0 %v3551_v33 }
 0x152   :  { %3049 = vmatpush3.bf16.msra.mxu1 %v3245_v53 }
 0x153   :  { %3050 = vmatprep.subr.bf16.mxu1 %v3396_v36 }
 0x154   :  { %1133 = vmatpush1.bf16.msra.mxu0 %v3556_v34 }
 0x155   :  { %1134 = vmatprep.subr.bf16.mxu0 %v3568_v38 }
 0x158   :  { %1135 = vmatpush1.bf16.msra.mxu0 %v3579_v40 }
 0x159   :  { %1136 = vmatprep.subr.bf16.mxu0 %v3584_v41 }
 0x15c   :  { %1137 = vmatpush1.bf16.msra.mxu0 %v3598_v44 }
 0x15d   :  { %1138 = vmatprep.subr.bf16.mxu0 %v3603_v45 }
 0x160   :  { %1139 = vmatpush1.bf16.msra.mxu0 %v3615_v47 }
 0x161   :  { %1140 = vmatprep.subr.bf16.mxu0 %v3622_v48 }
 0x164   :  { %1141 = vmatpush1.bf16.msra.mxu0 %v3633_v50 }
 0x165   :  { %1405 = vmatprep.subr.bf16.mxu0 %v3506_v24  ;;  %v3246_v24 = vld [vmem:[%s4253_s3 + $0x50] ss:$12 sps:$4 sm:$0xff]  }
 0x166   :  { %3051 = vmatpush3.bf16.msra.mxu1 %v3246_v24 }
 0x167   :  { %3052 = vmatprep.subr.bf16.mxu1 %v3396_v36 }
 0x16a   :  { %3053 = vmatpush3.bf16.msra.mxu1 %v3247_v54 }
 0x16b   :  { %3054 = vmatprep.subr.bf16.mxu1 %v3396_v36 }
 0x16e   :  { %3055 = vmatpush3.bf16.msra.mxu1 %v3248_v56 }
 0x16f   :  { %3056 = vmatprep.subr.bf16.mxu1 %v3396_v36 }
 0x172   :  { %3057 = vmatpush3.bf16.msra.mxu1 %v3249_v58 }
 0x173   :  { %3058 = vmatprep.subr.bf16.mxu1 %v3396_v36 }
 0x176   :  { %3059 = vmatpush3.bf16.msra.mxu1 %v3250_v61 }
 0x177   :  { %3064 = vmatprep.subr.bf16.mxu1 %v3396_v36 }
 0x21a   :  { %v881_v63 = vpop.f32.mrb[20].mxu0  ;;  %v922_v2 = vpop.f32.mrb[12].mxu1 }
 0x21b   :  { %v928_v4 = vadd.f32 %v881_v63, %v3715_v11  ;;  %v883_v10 = vpop.f32.mrb[21].mxu0  ;;  %v3042_v7 = vpop.f32.mrb[13].mxu1  ;;  %v949_v51 = vadd.f32 %v3769_v6, %v922_v2 }
 0x21c   :  { %v935_v8 = vadd.f32 %v883_v10, %v3717_v14  ;;  %v885_v9 = vpop.f32.mrb[22].mxu0  ;;  %v925_v13 = vpop.f32.mrb[14].mxu1 }
 0x21d   :  { %v2724_v18 = vmul.f32 -1.442695, %v928_v4  ;;  %v886_v20 = vpop.f32.mrb[23].mxu0  ;;  %v3043_v21 = vpop.f32.mrb[15].mxu1 }
 0x21e   :  { %v2725_v23 = vmul.f32 -1.442695, %v935_v8 }
 0x21f   :  { %3325 = vpow2.f32 %v2724_v18 }
 0x220   :  { %3327 = vpow2.f32 %v2725_v23 }
 0x229   :  { %v3326_v35 = vpop.eup %3325 }
 0x22a   :  { %v932_v39 = vadd.f32 1.0, %v3326_v35  ;;  %v3328_v43 = vpop.eup %3327 }
 0x22b   :  { %v939_v15 = vadd.f32 1.0, %v3328_v43 }
 0x22c   :  { %3329 = vrcp.f32 %v932_v39 }
 0x22d   :  { %3331 = vrcp.f32 %v939_v15 }
 0x236   :  { %v3330_v11 = vpop.eup %3329 }
 0x237   :  { %v950_v28 = vmul.f32 %v3330_v11, %v949_v51  ;;  %v3332_v53 = vpop.eup %3331  ;;  %v3920_v11 = vld [vmem:[%s4253_s3] ss:$12 sps:$4 sm:$0xff]  }
 0x238   :  { %v953_v24 = vsub.f32 1.0, %v3332_v53  ;;  %v955_v58 = vmul.f32 %v3332_v53, %v3774_v49  ;;  %v3936_v53 = vld [vmem:[%s4253_s3 + $0x18] ss:$12 sps:$4 sm:$0xff]  }
 0x239   :  { %v951_v14 = vadd.f32 %v950_v28, %v3736_v42  ;;  %v3262_v28 = vld [vmem:[%s4253_s3 + $0x8] ss:$12 sps:$4 sm:$0xff]  }
 0x23b   :  { %3333 = vtanh.f32 %v951_v14  ;;  %v3930_v14 = vld [vmem:[%s4253_s3 + $0x1c] ss:$12 sps:$4 sm:$0xff]  }
 0x245   :  { %v3334_v54 = vpop.eup %3333 }
 0x246   :  { %v954_v56 = vmul.f32 %v3334_v54, %v953_v24  ;;  %v3266_v24 = vld [vmem:[%s4253_s3 + $0x20] ss:$12 sps:$4 sm:$0xff]  }
 0x247   :  { %v3946_v54 = vld [vmem:[%s4253_s3 + $0x34] ss:$12 sps:$4 sm:$0xff]  }
 0x248   :  { %v3838_v61 = vadd.f32 %v955_v58, %v954_v56  ;;  %v3952_v56 = vld [vmem:[%s4253_s3 + $0x30] ss:$12 sps:$4 sm:$0xff]   ;;  %v3270_v58 = vld [vmem:[%s4253_s3 + $0x38] ss:$12 sps:$4 sm:$0xff]  }
 0x24a   :  { %2727 = vst [vmem:[%s4257_s6 + $0x8] sm:$0xff] %v3838_v61  ;;  %v965_v63 = vpack.c.bf16 %v3838_v61, %v3838_v61 }
 0x24c   :  { %1159 = vmatmul.mubr.bf16.vlgmr.msra.gmra.mrb[24].mxu0 %v965_v63  ;;  %3061 = vmatmul.mubr.bf16.vlgmr.msra.gmra.mrb[16].mxu1 %v965_v63  ;;  %v3968_v63 = vld [vmem:[%s4253_s3 + $0x48] ss:$12 sps:$4 sm:$0xff]  }
 0x24d   :  { %1406 = vmatpush1.bf16.msra.mxu0 %v3514_v26  ;;  %1437 = vmatprep.mubr.bf16.mxu0 %v3395_v1  ;;  %v3251_v26 = vld [vmem:[%s4253_s3 + $0x8] ss:$12 sps:$4 sm:$0xff]  }
 0x24e   :  { %1407 = vmatprep.subr.bf16.mxu0 %v3520_v27  ;;  %3080 = vmatprep.mubr.msk.bf16.mxu1 %vm3397_vm0, %v3396_v36  ;;  %v3252_v27 = vld [vmem:[%s4253_s3 + $0x20] ss:$12 sps:$4 sm:$0xff]  }
 0x24f   :  { %3065 = vmatpush3.bf16.msra.mxu1 %v3251_v26  ;;  %v3274_v26 = vld [vmem:[%s4253_s3 + $0x50] ss:$12 sps:$4 sm:$0xff]  }
 0x250   :  { %3066 = vmatprep.subr.bf16.mxu1 %v3396_v36 }
 0x251   :  { %1408 = vmatpush1.bf16.msra.mxu0 %v3529_v29  ;;  %v3253_v29 = vld [vmem:[%s4253_s3 + $0x38] ss:$12 sps:$4 sm:$0xff]  }
 0x252   :  { %1409 = vmatprep.subr.bf16.mxu0 %v3536_v30  ;;  %v3254_v30 = vld [vmem:[%s4253_s3 + $0x50] ss:$12 sps:$4 sm:$0xff]  }
 0x253   :  { %3067 = vmatpush3.bf16.msra.mxu1 %v3252_v27  ;;  %v3978_v27 = vld [vmem:[%s4253_s3 + $0x64] ss:$12 sps:$4 sm:$0xff]  }
 0x254   :  { %3068 = vmatprep.subr.bf16.mxu1 %v3396_v36 }
 0x255   :  { %1410 = vmatpush1.bf16.msra.mxu0 %v3545_v32  ;;  %v3255_v32 = vld [vmem:[%s4253_s3 + $0x68] ss:$12 sps:$4 sm:$0xff]  }
 0x256   :  { %1411 = vmatprep.subr.bf16.mxu0 %v3551_v33  ;;  %v3256_v33 = vld [vmem:[%s4253_s3 + $0x80] ss:$12 sps:$4 sm:$0xff]  }
 0x257   :  { %3069 = vmatpush3.bf16.msra.mxu1 %v3253_v29  ;;  %v3984_v29 = vld [vmem:[%s4253_s3 + $0x60] ss:$12 sps:$4 sm:$0xff]  }
 0x258   :  { %3070 = vmatprep.subr.bf16.mxu1 %v3396_v36 }
 0x259   :  { %1412 = vmatpush1.bf16.msra.mxu0 %v3556_v34  ;;  %v3257_v34 = vld [vmem:[%s4253_s3 + $0x98] ss:$12 sps:$4 sm:$0xff]  }
 0x25a   :  { %1413 = vmatprep.subr.bf16.mxu0 %v3568_v38  ;;  %v3258_v38 = vld [vmem:[%s4253_s3 + $0xb0] ss:$12 sps:$4 sm:$0xff]  }
 0x25b   :  { %3071 = vmatpush3.bf16.msra.mxu1 %v3254_v30  ;;  %v3278_v30 = vld [vmem:[%s4253_s3 + $0x68] ss:$12 sps:$4 sm:$0xff]  }
 0x25c   :  { %3072 = vmatprep.subr.bf16.mxu1 %v3396_v36 }
 0x25d   :  { %1414 = vmatpush1.bf16.msra.mxu0 %v3579_v40 }
 0x25e   :  { %1415 = vmatprep.subr.bf16.mxu0 %v3584_v41 }
 0x25f   :  { %3073 = vmatpush3.bf16.msra.mxu1 %v3255_v32  ;;  %v3993_v32 = vld [vmem:[%s4253_s3 + $0x7c] ss:$12 sps:$4 sm:$0xff]  }
 0x260   :  { %3074 = vmatprep.subr.bf16.mxu1 %v3396_v36 }
 0x261   :  { %1416 = vmatpush1.bf16.msra.mxu0 %v3598_v44 }
 0x262   :  { %1417 = vmatprep.subr.bf16.mxu0 %v3603_v45 }
 0x263   :  { %3075 = vmatpush3.bf16.msra.mxu1 %v3256_v33  ;;  %v3999_v33 = vld [vmem:[%s4253_s3 + $0x78] ss:$12 sps:$4 sm:$0xff]  }
 0x264   :  { %3076 = vmatprep.subr.bf16.mxu1 %v3396_v36 }
 0x265   :  { %1418 = vmatpush1.bf16.msra.mxu0 %v3615_v47 }
 0x266   :  { %1419 = vmatprep.subr.bf16.mxu0 %v3622_v48 }
 0x267   :  { %3077 = vmatpush3.bf16.msra.mxu1 %v3257_v34  ;;  %v3282_v34 = vld [vmem:[%s4253_s3 + $0x80] ss:$12 sps:$4 sm:$0xff]  }
 0x268   :  { %3078 = vmatprep.subr.bf16.mxu1 %v3396_v36 }
 0x269   :  { %1420 = vmatpush1.bf16.msra.mxu0 %v3633_v50 }
 0x26b   :  { %3079 = vmatpush3.bf16.msra.mxu1 %v3258_v38  ;;  %v4009_v38 = vld [vmem:[%s4253_s3 + $0x94] ss:$12 sps:$4 sm:$0xff]  }
 0x26c   :  { %3084 = vmatprep.subr.bf16.mxu1 %v3396_v36 }
 0x31f   :  { %v1160_v40 = vpop.f32.mrb[24].mxu0  ;;  %v1201_v41 = vpop.f32.mrb[16].mxu1 }
 0x320   :  { %v1207_v44 = vadd.f32 %v1160_v40, %v3721_v17  ;;  %v1162_v45 = vpop.f32.mrb[25].mxu0  ;;  %v3062_v47 = vpop.f32.mrb[17].mxu1  ;;  %v1228_v18 = vadd.f32 %v3769_v6, %v1201_v41  ;;  %v4015_v40 = vld [vmem:[%s4253_s3 + $0x90] ss:$12 sps:$4 sm:$0xff]   ;;  %v3286_v41 = vld [vmem:[%s4253_s3 + $0x98] ss:$12 sps:$4 sm:$0xff]  }
 0x321   :  { %v1214_v48 = vadd.f32 %v1162_v45, %v3723_v19  ;;  %v1164_v50 = vpop.f32.mrb[26].mxu0  ;;  %v1204_v42 = vpop.f32.mrb[18].mxu1  ;;  %v4031_v45 = vld [vmem:[%s4253_s3 + $0xa8] ss:$12 sps:$4 sm:$0xff]   ;;  %v3290_v47 = vld [vmem:[%s4253_s3 + $0xb0] ss:$12 sps:$4 sm:$0xff]  }
 0x322   :  { %v2752_v49 = vmul.f32 -1.442695, %v1207_v44  ;;  %v1165_v2 = vpop.f32.mrb[27].mxu0  ;;  %v3063_v4 = vpop.f32.mrb[19].mxu1  ;;  %v4025_v44 = vld [vmem:[%s4253_s3 + $0xac] ss:$12 sps:$4 sm:$0xff]  }
 0x323   :  { %v2753_v10 = vmul.f32 -1.442695, %v1214_v48 }
 0x324   :  { %3335 = vpow2.f32 %v2752_v49 }
 0x325   :  { %3337 = vpow2.f32 %v2753_v10 }
 0x32e   :  { %v3336_v7 = vpop.eup %3335 }
 0x32f   :  { %v1211_v8 = vadd.f32 1.0, %v3336_v7  ;;  %v3338_v9 = vpop.eup %3337 }
 0x330   :  { %v1218_v13 = vadd.f32 1.0, %v3338_v9 }
 0x331   :  { %3339 = vrcp.f32 %v1211_v8 }
 0x332   :  { %3341 = vrcp.f32 %v1218_v13 }
 0x33b   :  { %v3340_v17 = vpop.eup %3339 }
 0x33c   :  { %v1229_v20 = vmul.f32 %v3340_v17, %v1228_v18  ;;  %v3342_v21 = vpop.eup %3341 }
 0x33d   :  { %v1232_v23 = vsub.f32 1.0, %v3342_v21  ;;  %v1234_v43 = vmul.f32 %v3342_v21, %v3838_v61  ;;  %v3962_v61 = vld [vmem:[%s4253_s3 + $0x4c] ss:$12 sps:$4 sm:$0xff]  }
 0x33e   :  { %v1230_v19 = vadd.f32 %v1229_v20, %v3728_v25  ;;  %v3915_v25 = vld [vmem:[%s4253_s3 + $0x4] ss:$12 sps:$4 sm:$0xff]  }
 0x33f   :  { %1684 = vmatprep.subr.bf16.mxu0 %v3915_v25 }
 0x340   :  { %3343 = vtanh.f32 %v1230_v19 }
 0x34a   :  { %v3344_v35 = vpop.eup %3343 }
 0x34b   :  { %v1233_v39 = vmul.f32 %v3344_v35, %v1232_v23 }
 0x34d   :  { %v3901_v15 = vadd.f32 %v1234_v43, %v1233_v39 }
 0x34f   :  { %2755 = vst [vmem:[%s4257_s6 + $0x10] sm:$0xff] %v3901_v15  ;;  %v1244_v51 = vpack.c.bf16 %v3901_v15, %v3901_v15 }
 0x351   :  { %1438 = vmatmul.mubr.bf16.vlgmr.msra.gmra.mrb[28].mxu0 %v1244_v51  ;;  %3081 = vmatmul.mubr.bf16.vlgmr.msra.gmra.mrb[20].mxu1 %v1244_v51 }
 0x352   :  { %1716 = vmatprep.mubr.bf16.mxu0 %v3395_v1  ;;  %3100 = vmatprep.mubr.msk.bf16.mxu1 %vm3397_vm0, %v3396_v36 }
 0x353   :  { %1685 = vmatpush1.bf16.msra.mxu0 %v3920_v11  ;;  %3085 = vmatpush3.bf16.msra.mxu1 %v3262_v28 }
 0x354   :  { %3086 = vmatprep.subr.bf16.mxu1 %v3396_v36  ;;  %1686 = vmatprep.subr.bf16.mxu0 %v3930_v14 }
 0x357   :  { %1687 = vmatpush1.bf16.msra.mxu0 %v3936_v53  ;;  %3087 = vmatpush3.bf16.msra.mxu1 %v3266_v24 }
 0x358   :  { %3088 = vmatprep.subr.bf16.mxu1 %v3396_v36  ;;  %1688 = vmatprep.subr.bf16.mxu0 %v3946_v54 }
 0x35b   :  { %1689 = vmatpush1.bf16.msra.mxu0 %v3952_v56  ;;  %3089 = vmatpush3.bf16.msra.mxu1 %v3270_v58 }
 0x35c   :  { %3090 = vmatprep.subr.bf16.mxu1 %v3396_v36  ;;  %1690 = vmatprep.subr.bf16.mxu0 %v3962_v61 }
 0x35f   :  { %1691 = vmatpush1.bf16.msra.mxu0 %v3968_v63  ;;  %3091 = vmatpush3.bf16.msra.mxu1 %v3274_v26 }
 0x360   :  { %3092 = vmatprep.subr.bf16.mxu1 %v3396_v36  ;;  %1692 = vmatprep.subr.bf16.mxu0 %v3978_v27 }
 0x363   :  { %1693 = vmatpush1.bf16.msra.mxu0 %v3984_v29  ;;  %3093 = vmatpush3.bf16.msra.mxu1 %v3278_v30  ;;  %v3293_v30 = vld [vmem:[%s4253_s3 + $0x38] ss:$12 sps:$4 sm:$0xff]  }
 0x364   :  { %1694 = vmatprep.subr.bf16.mxu0 %v3993_v32  ;;  %3094 = vmatprep.subr.bf16.mxu1 %v3396_v36 }
 0x367   :  { %1695 = vmatpush1.bf16.msra.mxu0 %v3999_v33  ;;  %3095 = vmatpush3.bf16.msra.mxu1 %v3282_v34  ;;  %v3294_v34 = vld [vmem:[%s4253_s3 + $0x50] ss:$12 sps:$4 sm:$0xff]  }
 0x368   :  { %1696 = vmatprep.subr.bf16.mxu0 %v4009_v38  ;;  %3096 = vmatprep.subr.bf16.mxu1 %v3396_v36 }
 0x36b   :  { %1697 = vmatpush1.bf16.msra.mxu0 %v4015_v40  ;;  %3097 = vmatpush3.bf16.msra.mxu1 %v3286_v41  ;;  %v3295_v41 = vld [vmem:[%s4253_s3 + $0x68] ss:$12 sps:$4 sm:$0xff]  }
 0x36c   :  { %1698 = vmatprep.subr.bf16.mxu0 %v4025_v44  ;;  %3098 = vmatprep.subr.bf16.mxu1 %v3396_v36 }
 0x36f   :  { %1699 = vmatpush1.bf16.msra.mxu0 %v4031_v45  ;;  %3099 = vmatpush3.bf16.msra.mxu1 %v3290_v47  ;;  %v3296_v47 = vld [vmem:[%s4253_s3 + $0x80] ss:$12 sps:$4 sm:$0xff]  }
 0x370   :  { %1963 = vmatprep.subr.bf16.mxu0 %v3915_v25  ;;  %3104 = vmatprep.subr.bf16.mxu1 %v3396_v36 }
 0x424   :  { %v1439_v48 = vpop.f32.mrb[28].mxu0  ;;  %v1480_v50 = vpop.f32.mrb[20].mxu1 }
 0x425   :  { %v1486_v42 = vadd.f32 %v1439_v48, %v3725_v22  ;;  %v1441_v49 = vpop.f32.mrb[29].mxu0  ;;  %v3082_v2 = vpop.f32.mrb[21].mxu1  ;;  %v1507_v23 = vadd.f32 %v3769_v6, %v1480_v50  ;;  %v3297_v48 = vld [vmem:[%s4253_s3 + $0x98] ss:$12 sps:$4 sm:$0xff]   ;;  %v3298_v50 = vld [vmem:[%s4253_s3 + $0xb0] ss:$12 sps:$4 sm:$0xff]  }
 0x426   :  { %v1493_v4 = vadd.f32 %v1441_v49, %v3730_v31  ;;  %v1443_v10 = vpop.f32.mrb[30].mxu0  ;;  %v1483_v7 = vpop.f32.mrb[22].mxu1 }
 0x427   :  { %v2780_v8 = vmul.f32 -1.442695, %v1486_v42  ;;  %v1444_v9 = vpop.f32.mrb[31].mxu0  ;;  %v3083_v13 = vpop.f32.mrb[23].mxu1 }
 0x428   :  { %v2781_v18 = vmul.f32 -1.442695, %v1493_v4 }
 0x429   :  { %3345 = vpow2.f32 %v2780_v8 }
 0x42a   :  { %3347 = vpow2.f32 %v2781_v18 }
 0x433   :  { %v3346_v17 = vpop.eup %3345 }
 0x434   :  { %v1490_v20 = vadd.f32 1.0, %v3346_v17  ;;  %v3348_v19 = vpop.eup %3347 }
 0x435   :  { %v1497_v21 = vadd.f32 1.0, %v3348_v19 }
 0x436   :  { %3349 = vrcp.f32 %v1490_v20 }
 0x437   :  { %3351 = vrcp.f32 %v1497_v21 }
 0x440   :  { %v3350_v22 = vpop.eup %3349 }
 0x441   :  { %v1508_v35 = vmul.f32 %v3350_v22, %v1507_v23  ;;  %v3352_v39 = vpop.eup %3351 }
 0x442   :  { %v1511_v43 = vsub.f32 1.0, %v3352_v39  ;;  %v1513_v24 = vmul.f32 %v3352_v39, %v3901_v15  ;;  %v3292_v15 = vld [vmem:[%s4253_s3 + $0x20] ss:$12 sps:$4 sm:$0xff]  }
 0x443   :  { %v1509_v31 = vadd.f32 %v1508_v35, %v3733_v37  ;;  %v3291_v37 = vld [vmem:[%s4253_s3 + $0x8] ss:$12 sps:$4 sm:$0xff]  }
 0x445   :  { %3353 = vtanh.f32 %v1509_v31 }
 0x44f   :  { %v3354_v51 = vpop.eup %3353 }
 0x450   :  { %v1512_v28 = vmul.f32 %v3354_v51, %v1511_v43 }
 0x452   :  { %v4046_v58 = vadd.f32 %v1513_v24, %v1512_v28 }
 0x454   :  { %2783 = vst [vmem:[%s4257_s6 + $0x18] sm:$0xff] %v4046_v58  ;;  %v1523_v26 = vpack.c.bf16 %v4046_v58, %v4046_v58 }
 0x456   :  { %1717 = vmatmul.mubr.bf16.vlgmr.msra.gmra.mrb[32].mxu0 %v1523_v26  ;;  %3101 = vmatmul.mubr.bf16.vlgmr.msra.gmra.mrb[24].mxu1 %v1523_v26 }
 0x457   :  { %1964 = vmatpush1.bf16.msra.mxu0 %v3920_v11  ;;  %1995 = vmatprep.mubr.bf16.mxu0 %v3395_v1 }
 0x458   :  { %1965 = vmatprep.subr.bf16.mxu0 %v3930_v14  ;;  %3120 = vmatprep.mubr.msk.bf16.mxu1 %vm3397_vm0, %v3396_v36 }
 0x459   :  { %3105 = vmatpush3.bf16.msra.mxu1 %v3291_v37  ;;  %v3301_v37 = vld [vmem:[%s4253_s3 + $0x38] ss:$12 sps:$4 sm:$0xff]  }
 0x45a   :  { %3106 = vmatprep.subr.bf16.mxu1 %v3396_v36 }
 0x45b   :  { %1966 = vmatpush1.bf16.msra.mxu0 %v3936_v53 }
 0x45c   :  { %1967 = vmatprep.subr.bf16.mxu0 %v3946_v54 }
 0x45d   :  { %3107 = vmatpush3.bf16.msra.mxu1 %v3292_v15  ;;  %v3303_v15 = vld [vmem:[%s4253_s3 + $0x68] ss:$12 sps:$4 sm:$0xff]  }
 0x45e   :  { %3108 = vmatprep.subr.bf16.mxu1 %v3396_v36 }
 0x45f   :  { %1968 = vmatpush1.bf16.msra.mxu0 %v3952_v56 }
 0x460   :  { %1969 = vmatprep.subr.bf16.mxu0 %v3962_v61 }
 0x461   :  { %3109 = vmatpush3.bf16.msra.mxu1 %v3293_v30  ;;  %v3304_v30 = vld [vmem:[%s4253_s3 + $0x80] ss:$12 sps:$4 sm:$0xff]  }
 0x462   :  { %3110 = vmatprep.subr.bf16.mxu1 %v3396_v36 }
 0x463   :  { %1970 = vmatpush1.bf16.msra.mxu0 %v3968_v63 }
 0x464   :  { %1971 = vmatprep.subr.bf16.mxu0 %v3978_v27 }
 0x465   :  { %3111 = vmatpush3.bf16.msra.mxu1 %v3294_v34  ;;  %v3305_v34 = vld [vmem:[%s4253_s3 + $0x98] ss:$12 sps:$4 sm:$0xff]  }
 0x466   :  { %3112 = vmatprep.subr.bf16.mxu1 %v3396_v36 }
 0x467   :  { %1972 = vmatpush1.bf16.msra.mxu0 %v3984_v29 }
 0x468   :  { %1973 = vmatprep.subr.bf16.mxu0 %v3993_v32 }
 0x469   :  { %3113 = vmatpush3.bf16.msra.mxu1 %v3295_v41  ;;  %v3306_v41 = vld [vmem:[%s4253_s3 + $0xb0] ss:$12 sps:$4 sm:$0xff]  }
 0x46a   :  { %3114 = vmatprep.subr.bf16.mxu1 %v3396_v36 }
 0x46b   :  { %1974 = vmatpush1.bf16.msra.mxu0 %v3999_v33 }
 0x46c   :  { %1975 = vmatprep.subr.bf16.mxu0 %v4009_v38 }
 0x46d   :  { %3115 = vmatpush3.bf16.msra.mxu1 %v3296_v47 }
 0x46e   :  { %3116 = vmatprep.subr.bf16.mxu1 %v3396_v36 }
 0x46f   :  { %1976 = vmatpush1.bf16.msra.mxu0 %v4015_v40 }
 0x470   :  { %1977 = vmatprep.subr.bf16.mxu0 %v4025_v44 }
 0x471   :  { %3117 = vmatpush3.bf16.msra.mxu1 %v3297_v48 }
 0x472   :  { %3118 = vmatprep.subr.bf16.mxu1 %v3396_v36 }
 0x473   :  { %1978 = vmatpush1.bf16.msra.mxu0 %v4031_v45 }
 0x474   :  { %2242 = vmatprep.subr.bf16.mxu0 %v3915_v25 }
 0x475   :  { %3119 = vmatpush3.bf16.msra.mxu1 %v3298_v50 }
 0x476   :  { %3124 = vmatprep.subr.bf16.mxu1 %v3396_v36 }
 0x529   :  { %v1718_v42 = vpop.f32.mrb[32].mxu0  ;;  %v1759_v49 = vpop.f32.mrb[24].mxu1 }
 0x52a   :  { %v1765_v2 = vadd.f32 %v1718_v42, %v3738_v46  ;;  %v1720_v4 = vpop.f32.mrb[33].mxu0  ;;  %v3102_v10 = vpop.f32.mrb[25].mxu1  ;;  %v1786_v35 = vadd.f32 %v3769_v6, %v1759_v49 }
 0x52b   :  { %v1772_v7 = vadd.f32 %v1720_v4, %v3740_v52  ;;  %v1722_v8 = vpop.f32.mrb[34].mxu0  ;;  %v1762_v9 = vpop.f32.mrb[26].mxu1 }
 0x52c   :  { %v2808_v13 = vmul.f32 -1.442695, %v1765_v2  ;;  %v1723_v18 = vpop.f32.mrb[35].mxu0  ;;  %v3103_v17 = vpop.f32.mrb[27].mxu1 }
 0x52d   :  { %v2809_v20 = vmul.f32 -1.442695, %v1772_v7 }
 0x52e   :  { %3355 = vpow2.f32 %v2808_v13 }
 0x52f   :  { %3357 = vpow2.f32 %v2809_v20 }
 0x538   :  { %v3356_v19 = vpop.eup %3355 }
 0x539   :  { %v1769_v21 = vadd.f32 1.0, %v3356_v19  ;;  %v3358_v23 = vpop.eup %3357 }
 0x53a   :  { %v1776_v22 = vadd.f32 1.0, %v3358_v23 }
 0x53b   :  { %3359 = vrcp.f32 %v1769_v21 }
 0x53c   :  { %3361 = vrcp.f32 %v1776_v22 }
 0x545   :  { %v3360_v46 = vpop.eup %3359 }
 0x546   :  { %v1787_v31 = vmul.f32 %v3360_v46, %v1786_v35  ;;  %v3362_v39 = vpop.eup %3361 }
 0x547   :  { %v1790_v43 = vsub.f32 1.0, %v3362_v39  ;;  %v1792_v24 = vmul.f32 %v3362_v39, %v4046_v58  ;;  %v3300_v58 = vld [vmem:[%s4253_s3 + $0x20] ss:$12 sps:$4 sm:$0xff]  }
 0x548   :  { %v1788_v52 = vadd.f32 %v1787_v31, %v3750_v60  ;;  %v3299_v60 = vld [vmem:[%s4253_s3 + $0x8] ss:$12 sps:$4 sm:$0xff]  }
 0x54a   :  { %3363 = vtanh.f32 %v1788_v52 }
 0x554   :  { %v3364_v51 = vpop.eup %3363 }
 0x555   :  { %v1791_v28 = vmul.f32 %v3364_v51, %v1790_v43 }
 0x557   :  { %v4110_v26 = vadd.f32 %v1792_v24, %v1791_v28 }
 0x559   :  { %2811 = vst [vmem:[%s4257_s6 + $0x20] sm:$0xff] %v4110_v26  ;;  %v1802_v6 = vpack.c.bf16 %v4110_v26, %v4110_v26 }
 0x55b   :  { %1996 = vmatmul.mubr.bf16.vlgmr.msra.gmra.mrb[36].mxu0 %v1802_v6  ;;  %3121 = vmatmul.mubr.bf16.vlgmr.msra.gmra.mrb[28].mxu1 %v1802_v6 }
 0x55c   :  { %2243 = vmatpush1.bf16.msra.mxu0 %v3920_v11  ;;  %2274 = vmatprep.mubr.bf16.mxu0 %v3395_v1 }
 0x55d   :  { %2244 = vmatprep.subr.bf16.mxu0 %v3930_v14  ;;  %3140 = vmatprep.mubr.msk.bf16.mxu1 %vm3397_vm0, %v3396_v36 }
 0x55e   :  { %3125 = vmatpush3.bf16.msra.mxu1 %v3299_v60 }
 0x55f   :  { %3126 = vmatprep.subr.bf16.mxu1 %v3396_v36 }
 0x560   :  { %2245 = vmatpush1.bf16.msra.mxu0 %v3936_v53 }
 0x561   :  { %2246 = vmatprep.subr.bf16.mxu0 %v3946_v54 }
 0x562   :  { %3127 = vmatpush3.bf16.msra.mxu1 %v3300_v58 }
 0x563   :  { %3128 = vmatprep.subr.bf16.mxu1 %v3396_v36 }
 0x564   :  { %2247 = vmatpush1.bf16.msra.mxu0 %v3952_v56 }
 0x565   :  { %2248 = vmatprep.subr.bf16.mxu0 %v3962_v61 }
 0x566   :  { %3129 = vmatpush3.bf16.msra.mxu1 %v3301_v37 }
 0x567   :  { %3130 = vmatprep.subr.bf16.mxu1 %v3396_v36 }
 0x568   :  { %2249 = vmatpush1.bf16.msra.mxu0 %v3968_v63 }
 0x569   :  { %2250 = vmatprep.subr.bf16.mxu0 %v3978_v27 }
 0x56c   :  { %2251 = vmatpush1.bf16.msra.mxu0 %v3984_v29 }
 0x56d   :  { %2252 = vmatprep.subr.bf16.mxu0 %v3993_v32 }
 0x570   :  { %2253 = vmatpush1.bf16.msra.mxu0 %v3999_v33 }
 0x571   :  { %2254 = vmatprep.subr.bf16.mxu0 %v4009_v38 }
 0x574   :  { %2255 = vmatpush1.bf16.msra.mxu0 %v4015_v40 }
 0x575   :  { %2256 = vmatprep.subr.bf16.mxu0 %v4025_v44 }
 0x578   :  { %2257 = vmatpush1.bf16.msra.mxu0 %v4031_v45 }
 0x579   :  { %2521 = vmatprep.subr.bf16.mxu0 %v3915_v25  ;;  %v3302_v25 = vld [vmem:[%s4253_s3 + $0x50] ss:$12 sps:$4 sm:$0xff]  }
 0x57a   :  { %3131 = vmatpush3.bf16.msra.mxu1 %v3302_v25 }
 0x57b   :  { %3132 = vmatprep.subr.bf16.mxu1 %v3396_v36 }
 0x57e   :  { %3133 = vmatpush3.bf16.msra.mxu1 %v3303_v15 }
 0x57f   :  { %3134 = vmatprep.subr.bf16.mxu1 %v3396_v36 }
 0x582   :  { %3135 = vmatpush3.bf16.msra.mxu1 %v3304_v30 }
 0x583   :  { %3136 = vmatprep.subr.bf16.mxu1 %v3396_v36 }
 0x586   :  { %3137 = vmatpush3.bf16.msra.mxu1 %v3305_v34 }
 0x587   :  { %3138 = vmatprep.subr.bf16.mxu1 %v3396_v36 }
 0x58a   :  { %3139 = vmatpush3.bf16.msra.mxu1 %v3306_v41 }
 0x58b   :  { %3144 = vmatprep.subr.bf16.mxu1 %v3396_v36 }
 0x62e   :  { %v1997_v47 = vpop.f32.mrb[36].mxu0  ;;  %v2038_v48 = vpop.f32.mrb[28].mxu1 }
 0x62f   :  { %v2044_v50 = vadd.f32 %v1997_v47, %v3742_v55  ;;  %v1999_v42 = vpop.f32.mrb[37].mxu0  ;;  %v3122_v49 = vpop.f32.mrb[29].mxu1  ;;  %v4174_v55 = vld [vmem:[%s4256_s5] ss:$0 sm:$0xff] }
 0x630   :  { %v2051_v2 = vadd.f32 %v1999_v42, %v3747_v59  ;;  %v2001_v4 = vpop.f32.mrb[38].mxu0  ;;  %v2041_v10 = vpop.f32.mrb[30].mxu1  ;;  %v2065_v59 = vadd.f32 %v4174_v55, %v2038_v48 }
 0x631   :  { %v2836_v7 = vmul.f32 -1.442695, %v2044_v50  ;;  %v2002_v8 = vpop.f32.mrb[39].mxu0  ;;  %v3123_v9 = vpop.f32.mrb[31].mxu1 }
 0x632   :  { %v2837_v13 = vmul.f32 -1.442695, %v2051_v2 }
 0x633   :  { %3365 = vpow2.f32 %v2836_v7 }
 0x634   :  { %3367 = vpow2.f32 %v2837_v13 }
 0x63d   :  { %v3366_v18 = vpop.eup %3365 }
 0x63e   :  { %v2048_v17 = vadd.f32 1.0, %v3366_v18  ;;  %v3368_v20 = vpop.eup %3367 }
 0x63f   :  { %v2055_v19 = vadd.f32 1.0, %v3368_v20 }
 0x640   :  { %3369 = vrcp.f32 %v2048_v17 }
 0x641   :  { %3371 = vrcp.f32 %v2055_v19 }
 0x64a   :  { %v3370_v21 = vpop.eup %3369 }
 0x64b   :  { %v2066_v23 = vmul.f32 %v3370_v21, %v2065_v59  ;;  %v3372_v35 = vpop.eup %3371 }
 0x64c   :  { %v2069_v46 = vsub.f32 1.0, %v3372_v35  ;;  %v2071_v39 = vmul.f32 %v3372_v35, %v4110_v26 }
 0x64d   :  { %v2067_v22 = vadd.f32 %v2066_v23, %v3756_v0  ;;  %v3308_v0 = vld [vmem:[%s4253_s3 + $0x20] ss:$12 sps:$4 sm:$0xff]  }
 0x64f   :  { %3373 = vtanh.f32 %v2067_v22 }
 0x659   :  { %v3374_v31 = vpop.eup %3373 }
 0x65a   :  { %v2070_v52 = vmul.f32 %v3374_v31, %v2069_v46 }
 0x65c   :  { %v4179_v43 = vadd.f32 %v2071_v39, %v2070_v52 }
 0x65e   :  { %2839 = vst [vmem:[%s4257_s6 + $0x28] sm:$0xff] %v4179_v43  ;;  %v2081_v51 = vpack.c.bf16 %v4179_v43, %v4179_v43 }
 0x660   :  { %2275 = vmatmul.mubr.bf16.vlgmr.msra.gmra.mrb[40].mxu0 %v2081_v51  ;;  %3141 = vmatmul.mubr.bf16.vlgmr.msra.gmra.mrb[32].mxu1 %v2081_v51 }
 0x661   :  { %2522 = vmatpush1.bf16.msra.mxu0 %v3920_v11  ;;  %2553 = vmatprep.mubr.bf16.mxu0 %v3395_v1  ;;  %v3307_v1 = vld [vmem:[%s4253_s3 + $0x8] ss:$12 sps:$4 sm:$0xff]   ;;  %v3309_v11 = vld [vmem:[%s4253_s3 + $0x38] ss:$12 sps:$4 sm:$0xff]  }
 0x662   :  { %2523 = vmatprep.subr.bf16.mxu0 %v3930_v14  ;;  %3160 = vmatprep.mubr.msk.bf16.mxu1 %vm3397_vm0, %v3396_v36  ;;  %v3310_v14 = vld [vmem:[%s4253_s3 + $0x50] ss:$12 sps:$4 sm:$0xff]  }
 0x663   :  { %3145 = vmatpush3.bf16.msra.mxu1 %v3307_v1 }
 0x664   :  { %3146 = vmatprep.subr.bf16.mxu1 %v3396_v36 }
 0x665   :  { %2524 = vmatpush1.bf16.msra.mxu0 %v3936_v53  ;;  %v3311_v53 = vld [vmem:[%s4253_s3 + $0x68] ss:$12 sps:$4 sm:$0xff]  }
 0x666   :  { %2525 = vmatprep.subr.bf16.mxu0 %v3946_v54  ;;  %v3312_v54 = vld [vmem:[%s4253_s3 + $0x80] ss:$12 sps:$4 sm:$0xff]  }
 0x667   :  { %3147 = vmatpush3.bf16.msra.mxu1 %v3308_v0 }
 0x668   :  { %3148 = vmatprep.subr.bf16.mxu1 %v3396_v36 }
 0x669   :  { %2526 = vmatpush1.bf16.msra.mxu0 %v3952_v56  ;;  %v3313_v56 = vld [vmem:[%s4253_s3 + $0x98] ss:$12 sps:$4 sm:$0xff]  }
 0x66a   :  { %2527 = vmatprep.subr.bf16.mxu0 %v3962_v61  ;;  %v3314_v61 = vld [vmem:[%s4253_s3 + $0xb0] ss:$12 sps:$4 sm:$0xff]  }
 0x66b   :  { %3149 = vmatpush3.bf16.msra.mxu1 %v3309_v11 }
 0x66c   :  { %3150 = vmatprep.subr.bf16.mxu1 %v3396_v36 }
 0x66d   :  { %2528 = vmatpush1.bf16.msra.mxu0 %v3968_v63 }
 0x66e   :  { %2529 = vmatprep.subr.bf16.mxu0 %v3978_v27 }
 0x66f   :  { %3151 = vmatpush3.bf16.msra.mxu1 %v3310_v14 }
 0x670   :  { %3152 = vmatprep.subr.bf16.mxu1 %v3396_v36 }
 0x671   :  { %2530 = vmatpush1.bf16.msra.mxu0 %v3984_v29 }
 0x672   :  { %2531 = vmatprep.subr.bf16.mxu0 %v3993_v32 }
 0x673   :  { %3153 = vmatpush3.bf16.msra.mxu1 %v3311_v53 }
 0x674   :  { %3154 = vmatprep.subr.bf16.mxu1 %v3396_v36 }
 0x675   :  { %2532 = vmatpush1.bf16.msra.mxu0 %v3999_v33 }
 0x676   :  { %2533 = vmatprep.subr.bf16.mxu0 %v4009_v38 }
 0x677   :  { %3155 = vmatpush3.bf16.msra.mxu1 %v3312_v54 }
 0x678   :  { %3156 = vmatprep.subr.bf16.mxu1 %v3396_v36 }
 0x679   :  { %2534 = vmatpush1.bf16.msra.mxu0 %v4015_v40 }
 0x67a   :  { %2535 = vmatprep.subr.bf16.mxu0 %v4025_v44 }
 0x67b   :  { %3157 = vmatpush3.bf16.msra.mxu1 %v3313_v56 }
 0x67c   :  { %3158 = vmatprep.subr.bf16.mxu1 %v3396_v36 }
 0x67d   :  { %2536 = vmatpush1.bf16.msra.mxu0 %v4031_v45 }
 0x67f   :  { %3159 = vmatpush3.bf16.msra.mxu1 %v3314_v61 }
 0x733   :  { %v2276_v63 = vpop.f32.mrb[40].mxu0  ;;  %v2317_v27 = vpop.f32.mrb[32].mxu1 }
 0x734   :  { %v2323_v29 = vadd.f32 %v2276_v63, %v3758_v3  ;;  %v2278_v32 = vpop.f32.mrb[41].mxu0  ;;  %v3142_v33 = vpop.f32.mrb[33].mxu1  ;;  %v2344_v37 = vadd.f32 %v4174_v55, %v2317_v27 }
 0x735   :  { %v2330_v38 = vadd.f32 %v2278_v32, %v3760_v5  ;;  %v2280_v40 = vpop.f32.mrb[42].mxu0  ;;  %v2320_v44 = vpop.f32.mrb[34].mxu1 }
 0x736   :  { %v2864_v45 = vmul.f32 -1.442695, %v2323_v29  ;;  %v2281_v28 = vpop.f32.mrb[43].mxu0  ;;  %v3143_v24 = vpop.f32.mrb[35].mxu1 }
 0x737   :  { %v2865_v26 = vmul.f32 -1.442695, %v2330_v38 }
 0x738   :  { %3375 = vpow2.f32 %v2864_v45 }
 0x739   :  { %3377 = vpow2.f32 %v2865_v26 }
 0x742   :  { %v3376_v6 = vpop.eup %3375 }
 0x743   :  { %v2327_v60 = vadd.f32 1.0, %v3376_v6  ;;  %v3378_v36 = vpop.eup %3377 }
 0x744   :  { %v2334_v58 = vadd.f32 1.0, %v3378_v36 }
 0x745   :  { %3379 = vrcp.f32 %v2327_v60 }
 0x746   :  { %3381 = vrcp.f32 %v2334_v58 }
 0x74f   :  { %v3380_v3 = vpop.eup %3379 }
 0x750   :  { %v2345_v25 = vmul.f32 %v3380_v3, %v2344_v37  ;;  %v3382_v15 = vpop.eup %3381 }
 0x751   :  { %v2348_v30 = vsub.f32 1.0, %v3382_v15  ;;  %v2350_v47 = vmul.f32 %v3382_v15, %v4179_v43 }
 0x752   :  { %v2346_v5 = vadd.f32 %v2345_v25, %v3745_v57 }
 0x754   :  { %3383 = vtanh.f32 %v2346_v5 }
 0x75e   :  { %v3384_v34 = vpop.eup %3383 }
 0x75f   :  { %v2349_v41 = vmul.f32 %v3384_v34, %v2348_v30 }
 0x761   :  { %v2351_v48 = vadd.f32 %v2350_v47, %v2349_v41 }
 0x763   :  { %2867 = vst [vmem:[%s4257_s6 + $0x30] sm:$0xff] %v2351_v48  ;;  %v2360_v50 = vpack.c.bf16 %v2351_v48, %v2351_v48 }
 0x765   :  { %2554 = vmatmul.mubr.bf16.vlgmr.msra.gmra.mrb[44].mxu0 %v2360_v50  ;;  %3161 = vmatmul.mubr.bf16.vlgmr.msra.gmra.mrb[36].mxu1 %v2360_v50 }
 0x838   :  { %v2555_v42 = vpop.f32.mrb[44].mxu0  ;;  %v2596_v49 = vpop.f32.mrb[36].mxu1 }
 0x839   :  { %v2602_v2 = vadd.f32 %v2555_v42, %v3762_v12  ;;  %v2557_v57 = vpop.f32.mrb[45].mxu0  ;;  %v3162_v4 = vpop.f32.mrb[37].mxu1  ;;  %v2623_v23 = vadd.f32 %v4174_v55, %v2596_v49 }
 0x83a   :  { %v2609_v10 = vadd.f32 %v2557_v57, %v3764_v16  ;;  %v2559_v7 = vpop.f32.mrb[46].mxu0  ;;  %v2599_v8 = vpop.f32.mrb[38].mxu1 }
 0x83b   :  { %v2892_v9 = vmul.f32 -1.442695, %v2602_v2  ;;  %v2560_v13 = vpop.f32.mrb[47].mxu0  ;;  %v3163_v18 = vpop.f32.mrb[39].mxu1 }
 0x83c   :  { %v2893_v17 = vmul.f32 -1.442695, %v2609_v10 }
 0x83d   :  { %3385 = vpow2.f32 %v2892_v9 }
 0x83e   :  { %3387 = vpow2.f32 %v2893_v17 }
 0x847   :  { %v3386_v20 = vpop.eup %3385 }
 0x848   :  { %v2606_v19 = vadd.f32 1.0, %v3386_v20  ;;  %v3388_v59 = vpop.eup %3387 }
 0x849   :  { %v2613_v21 = vadd.f32 1.0, %v3388_v59 }
 0x84a   :  { %3389 = vrcp.f32 %v2606_v19 }
 0x84b   :  { %3391 = vrcp.f32 %v2613_v21 }
 0x854   :  { %v3390_v12 = vpop.eup %3389 }
 0x855   :  { %v2624_v22 = vmul.f32 %v3390_v12, %v2623_v23  ;;  %v3392_v35 = vpop.eup %3391 }
 0x856   :  { %v2627_v46 = vsub.f32 1.0, %v3392_v35  ;;  %v2629_v39 = vmul.f32 %v3392_v35, %v2351_v48 }
 0x857   :  { %v2625_v16 = vadd.f32 %v2624_v22, %v3753_v62 }
 0x859   :  { %3393 = vtanh.f32 %v2625_v16 }
 0x863   :  { %v3394_v31 = vpop.eup %3393 }
 0x864   :  { %v2628_v52 = vmul.f32 %v3394_v31, %v2627_v46 }
 0x866   :  { %v2630_v43 = vadd.f32 %v2629_v39, %v2628_v52 }
 0x868   :  { %2895 = vst [vmem:[%s4257_s6 + $0x38] sm:$0xff] %v2630_v43 }

</bundles_post_ra>
